<compile_context>
chip_gen: v7x
topology: tpu7x:2x2x1
jax: 0.10.0
libtpu: 0.0.40
codegen_flags: <defaults>
</compile_context>

<pallas_src>
import functools

import jax
import jax.numpy as jnp
from jax import lax
from jax.experimental import pallas as pl
from jax.experimental.pallas import tpu as pltpu

_BN_EPS = 1e-5           # PyTorch BatchNorm2d default
_LANE = 128


def _round_up(x, m):
    return (x + m - 1) // m * m


def _vmem_limit_bytes():
    """Generation-aware VMEM budget: ~3/4 of per-core VMEM, clamped."""
    try:
        cap = int(pltpu.get_tpu_info().vmem_capacity_bytes)
    except Exception:
        cap = None
    if not cap or cap <= 0:
        cap = 64 * 1024 * 1024
    return int(min(max(cap * 3 // 4, 32 * 1024 * 1024), 100 * 1024 * 1024))


def _pick_row_tile(H, pad):
    """Row-tile height: ~8-16 rows, must divide H and be >= the halo width."""
    for th in (8, 16, 14, 12, 10, 7, 6, 5, 4, 9, 11, 13, 15, 3, 2):
        if th <= H and H % th == 0 and th >= pad:
            return th
    return H


def _pick_flat_row_block(R, target=1024):
    """Largest row block <= target that divides R (prefer 8-aligned)."""
    t = min(target, R)
    for cand in range(t, 0, -1):
        if R % cand == 0 and (cand % 8 == 0 or cand == R):
            return cand
    return max(8, (t // 8) * 8)   # rare fallback; Pallas masks the tail block


# --------------------------------------------------------------------------
# K1 / K2: 3x3 stride-1 conv as 9 accumulated MXU matmuls over a row tile
# with a `dilation`-row halo, plus per-block partial BatchNorm statistics.
# K2 additionally fuses BN(prev)-apply + ReLU onto the conv input rows.
# --------------------------------------------------------------------------
def _conv_stats_kernel(*refs, pad, dilation, fuse_bn_relu):
    if fuse_bn_relu:
        (x_ref, w_ref, scale_ref, shift_ref,
         raw_ref, sum_ref, sumsq_ref, xpad_ref) = refs
    else:
        x_ref, w_ref, raw_ref, sum_ref, sumsq_ref, xpad_ref = refs
        scale_ref = shift_ref = None

    _, W, cin = x_ref.shape                 # (H, W, Cin)   full image, resident
    TH, _, cout_p = raw_ref.shape           # (TH, W, Cout_p) this row tile
    THp, Wp, _ = xpad_ref.shape             # (TH + 2*pad, W + 2*pad, Cin)

    HT = pl.num_programs(1)
    h = pl.program_id(1)
    r0 = pl.multiple_of(h * TH, TH)

    def rows(start, cnt):
        v = x_ref[pl.ds(start, cnt), :, :].astype(jnp.float32)   # (cnt, W, Cin)
        if fuse_bn_relu:
            # BN of the previous layer applied in f32, then ReLU.
            v = jnp.maximum(v * scale_ref[...] + shift_ref[...], 0.0)
        return v.astype(jnp.bfloat16)

    zrow = jnp.zeros((pad, Wp, cin), jnp.bfloat16)
    zcol = jnp.zeros((THp, pad, cin), jnp.bfloat16)

    # Zero-padding ring only (the interior is fully rewritten each step).  The
    # ring is rewritten every step so the persistent scratch never leaks stale
    # data even when the parallel grid is sharded across TensorCores.
    xpad_ref[:, 0:pad, :] = zcol
    xpad_ref[:, pad + W:, :] = zcol

    # Tile interior rows.
    xpad_ref[pad:pad + TH, pad:pad + W, :] = rows(r0, TH)

    # Top / bottom halo rows: zeros at the image border, real rows otherwise.
    @pl.when(h == 0)
    def _():
        xpad_ref[0:pad, :, :] = zrow

    @pl.when(h > 0)
    def _():
        xpad_ref[0:pad, pad:pad + W, :] = rows(r0 - pad, pad)

    @pl.when(h == HT - 1)
    def _():
        xpad_ref[pad + TH:, :, :] = zrow

    @pl.when(h < HT - 1)
    def _():
        xpad_ref[pad + TH:, pad:pad + W, :] = rows(r0 + TH, pad)

    # 3x3 conv as 9 accumulated MXU matmuls (K = Cin per tap).  No
    # materialised (HW, 9*Cin) im2col buffer.
    acc = None
    for t in range(9):
        ky, kx = divmod(t, 3)
        tap = xpad_ref[ky * dilation:ky * dilation + TH,
                       kx * dilation:kx * dilation + W, :]
        part = jnp.dot(tap.reshape(TH * W, cin), w_ref[t],
                       preferred_element_type=jnp.float32)
        acc = part if acc is None else acc + part

    raw_ref[...] = acc.reshape(TH, W, cout_p).astype(raw_ref.dtype)
    # Per-block partial BatchNorm statistics from the f32 accumulator
    # (reduced exactly over all blocks in the wrapper).  Single-pass
    # E[x^2]-E[x]^2 in f32 is adequate at these activation scales.
    sum_ref[...] = jnp.sum(acc, axis=0).reshape(1, 1, cout_p)
    sumsq_ref[...] = jnp.sum(acc * acc, axis=0).reshape(1, 1, cout_p)


def _conv_bn_stats(x, w, scale=None, shift=None, *, pad, dilation, row_tile,
                   vmem_limit):
    """3x3 stride-1 conv of x (NHWC) against per-tap weights w (9, Cin, Cout_p),
    optionally fusing an input-side BN-apply + ReLU; emits bf16 conv output and
    per-(image, row-tile) partial BN statistics."""
    N, H, W, cin = x.shape
    cout_p = w.shape[-1]
    TH = row_tile
    HT = H // TH
    fuse = scale is not None

    kernel = functools.partial(_conv_stats_kernel, pad=pad, dilation=dilation,
                               fuse_bn_relu=fuse)

    in_specs = [
        # Whole image resident in VMEM across the row-tile axis (block index
        # constant in h -> fetched once per image), true channel count.
        pl.BlockSpec((None, H, W, cin), lambda n, h: (n, 0, 0, 0)),
        # Weights: constant index_map -> fetched once, stays resident.
        pl.BlockSpec((9, cin, cout_p), lambda n, h: (0, 0, 0)),
    ]
    inputs = [x, w]
    if fuse:
        in_specs += [pl.BlockSpec((1, cin), lambda n, h: (0, 0)),
                     pl.BlockSpec((1, cin), lambda n, h: (0, 0))]
        inputs += [scale, shift]

    out_shape = (
        jax.ShapeDtypeStruct((N, H, W, cout_p), jnp.bfloat16),   # raw conv out
        jax.ShapeDtypeStruct((N, HT, 1, cout_p), jnp.float32),   # partial sum
        jax.ShapeDtypeStruct((N, HT, 1, cout_p), jnp.float32),   # partial sumsq
    )
    out_specs = (
        pl.BlockSpec((None, TH, W, cout_p), lambda n, h: (n, h, 0, 0)),
        pl.BlockSpec((None, 1, 1, cout_p), lambda n, h: (n, h, 0, 0)),
        pl.BlockSpec((None, 1, 1, cout_p), lambda n, h: (n, h, 0, 0)),
    )

    return pl.pallas_call(
        kernel,
        out_shape=out_shape,
        grid=(N, HT),
        in_specs=in_specs,
        out_specs=out_specs,
        scratch_shapes=[
            pltpu.VMEM((TH + 2 * pad, W + 2 * pad, cin), jnp.bfloat16),
        ],
        compiler_params=pltpu.CompilerParams(
            dimension_semantics=("parallel", "parallel"),
            vmem_limit_bytes=vmem_limit),
    )(*inputs)


# --------------------------------------------------------------------------
# K3: BN2-apply + identity residual + ReLU over flat row tiles (true-C out).
# --------------------------------------------------------------------------
def _bn_add_relu_kernel(c_ref, scale_ref, shift_ref, res_ref, out_ref):
    c = c_ref[...].astype(jnp.float32)
    y = c * scale_ref[...] + shift_ref[...]
    cout = out_ref.shape[1]
    out_ref[...] = jnp.maximum(y[:, :cout] + res_ref[...], 0.0)


def _bn_add_relu(c_flat, scale, shift, res_flat, *, vmem_limit):
    R, Cp = c_flat.shape
    C = res_flat.shape[1]
    tr = _pick_flat_row_block(R, target=1024)
    return pl.pallas_call(
        _bn_add_relu_kernel,
        out_shape=jax.ShapeDtypeStruct((R, C), jnp.float32),
        grid=(pl.cdiv(R, tr),),
        in_specs=[pl.BlockSpec((tr, Cp), lambda i: (i, 0)),
                  pl.BlockSpec((1, Cp), lambda i: (0, 0)),
                  pl.BlockSpec((1, Cp), lambda i: (0, 0)),
                  pl.BlockSpec((tr, C), lambda i: (i, 0))],
        out_specs=pl.BlockSpec((tr, C), lambda i: (i, 0)),
        compiler_params=pltpu.CompilerParams(
            dimension_semantics=("parallel",),
            vmem_limit_bytes=vmem_limit),
    )(c_flat, scale, shift, res_flat)


# --------------------------------------------------------------------------
# Wrapper glue (layout / parameter prep / BN finalize) — plain JAX, tiny.
# --------------------------------------------------------------------------
def _prep_weight(w_torch, cin_pad, cout_pad):
    # torch (Cout, Cin, 3, 3) -> (3, 3, Cin, Cout) -> pad -> (9, Cin_pad, Cout_pad) bf16
    w = jnp.transpose(w_torch, (2, 3, 1, 0)).astype(jnp.float32)
    kh, kw, cin, cout = w.shape
    w = jnp.pad(w, ((0, 0), (0, 0), (0, cin_pad - cin), (0, cout_pad - cout)))
    return w.reshape(kh * kw, cin_pad, cout_pad).astype(jnp.bfloat16)


def _pad_channels_1d(v, Cp):
    return jnp.pad(v.astype(jnp.float32), (0, Cp - v.shape[0]))


def _finalize_bn(sum_p, sumsq_p, gamma_p, beta_p, count):
    # Exact global (train-mode) batch statistics from per-block partials.
    s = jnp.sum(sum_p, axis=(0, 1, 2))
    ss = jnp.sum(sumsq_p, axis=(0, 1, 2))
    mean = s / count
    var = jnp.maximum(ss / count - mean * mean, 0.0)
    scale = gamma_p * lax.rsqrt(var + _BN_EPS)
    shift = beta_p - mean * scale
    return scale.reshape(1, -1), shift.reshape(1, -1)


@functools.partial(jax.jit, static_argnames=("stride", "dilation"))
def basic_block_forward(x_nchw, params, *, stride=1, dilation=1):
    """Pallas implementation of _BasicBlock.forward (downsample=None, groups=1)."""
    # TODO(synk): stride > 1 requires the downsample branch for the residual and
    # running_mean / running_var buffer updates are not modeled (forward-only).
    assert stride == 1, "stride > 1 requires a downsample branch (not modeled)"

    N, C, H, W = x_nchw.shape
    Cp = _round_up(C, _LANE)
    pad = dilation
    vmem_limit = _vmem_limit_bytes()
    TH = _pick_row_tile(H, pad)
    count = N * H * W

    # Single layout pass NCHW -> NHWC.  Channels are NOT padded here: K1 reads
    # the true-C input and K3 writes the true-C output (no channel-pad / slice
    # HBM round trip); intermediates stay lane-dense at Cp channels in bf16.
    x = jnp.transpose(x_nchw, (0, 2, 3, 1)).astype(jnp.float32)

    w1 = _prep_weight(params["conv1_w"], C, Cp)    # dense K = Cin per tap
    w2 = _prep_weight(params["conv2_w"], Cp, Cp)
    g1 = _pad_channels_1d(params["bn1_gamma"], Cp)
    b1 = _pad_channels_1d(params["bn1_beta"], Cp)
    g2 = _pad_channels_1d(params["bn2_gamma"], Cp)
    b2 = _pad_channels_1d(params["bn2_beta"], Cp)

    # K1: conv1 + partial BN1 statistics.
    c1, s1, ss1 = _conv_bn_stats(x, w1, pad=pad, dilation=dilation,
                                 row_tile=TH, vmem_limit=vmem_limit)
    scale1, shift1 = _finalize_bn(s1, ss1, g1, b1, count)

    # K2: BN1-apply + ReLU fused onto the conv2 input + conv2 + BN2 stats.
    c2, s2, ss2 = _conv_bn_stats(c1, w2, scale1, shift1, pad=pad,
                                 dilation=dilation, row_tile=TH,
                                 vmem_limit=vmem_limit)
    scale2, shift2 = _finalize_bn(s2, ss2, g2, b2, count)

    # K3: BN2-apply + identity residual + ReLU, true-C output.
    out_flat = _bn_add_relu(c2.reshape(N * H * W, Cp), scale2, shift2,
                            x.reshape(N * H * W, C), vmem_limit=vmem_limit)
    out = out_flat.reshape(N, H, W, C)
    return jnp.transpose(out, (0, 3, 1, 2))                      # back to NCHW


# --------------------------------------------------------------------------
# Pure-JAX reference (train-mode BN).  Conv inputs cast to bf16 with f32
# accumulation to mirror the kernel's MXU precision.
# --------------------------------------------------------------------------
def _reference(x_nchw, params, *, dilation=1):
    x = jnp.transpose(x_nchw, (0, 2, 3, 1)).astype(jnp.float32)

    def conv(y, w_torch):
        w = jnp.transpose(w_torch, (2, 3, 1, 0))
        return lax.conv_general_dilated(
            y.astype(jnp.bfloat16), w.astype(jnp.bfloat16), (1, 1),
            [(dilation, dilation), (dilation, dilation)],
            rhs_dilation=(dilation, dilation),
            dimension_numbers=("NHWC", "HWIO", "NHWC"),
            preferred_element_type=jnp.float32)

    def bn(y, g, b):
        m = jnp.mean(y, axis=(0, 1, 2), keepdims=True)
        v = jnp.mean((y - m) ** 2, axis=(0, 1, 2), keepdims=True)
        return (y - m) * lax.rsqrt(v + _BN_EPS) * g + b

    h = jax.nn.relu(bn(conv(x, params["conv1_w"]),
                       params["bn1_gamma"], params["bn1_beta"]))
    o = bn(conv(h, params["conv2_w"]),
           params["bn2_gamma"], params["bn2_beta"])
    o = jax.nn.relu(o + x)
    return jnp.transpose(o, (0, 3, 1, 2))


if __name__ == "__main__":
    key = jax.random.PRNGKey(0)
    N, C, H, W = 2, 8, 16, 16          # in_channels == out_channels, stride=1
    ks = jax.random.split(key, 7)

    x = jax.random.normal(ks[0], (N, C, H, W), jnp.float32)
    params = {
        "conv1_w":  0.1 * jax.random.normal(ks[1], (C, C, 3, 3), jnp.float32),
        "conv2_w":  0.1 * jax.random.normal(ks[2], (C, C, 3, 3), jnp.float32),
        "bn1_gamma": 1.0 + 0.1 * jax.random.normal(ks[3], (C,), jnp.float32),
        "bn1_beta":  0.1 * jax.random.normal(ks[4], (C,), jnp.float32),
        "bn2_gamma": 1.0 + 0.1 * jax.random.normal(ks[5], (C,), jnp.float32),
        "bn2_beta":  0.1 * jax.random.normal(ks[6], (C,), jnp.float32),
    }

    out = basic_block_forward(x, params, stride=1, dilation=1)
    out = jax.block_until_ready(out)

    ref = _reference(x, params, dilation=1)
    assert out.shape == (N, C, H, W)
    max_err = float(jnp.max(jnp.abs(out - ref)))
    assert jnp.allclose(out, ref, atol=2e-2, rtol=2e-2), (
        f"mismatch vs JAX reference (max abs err {max_err})")

    print("KERNEL_OK")
</pallas_src>

<mosaic_0001>
module attributes {stable_mosaic.version = 11 : i64} {
  func.func @_conv_stats_kernel(%arg0: i32, %arg1: i32, %arg2: memref<1x16x16x8xf32, #tpu.memory_space<vmem>>, %arg3: memref<9x8x128xbf16, #tpu.memory_space<vmem>>, %arg4: memref<1x8x16x128xbf16, #tpu.memory_space<vmem>>, %arg5: memref<1x1x1x128xf32, #tpu.memory_space<vmem>>, %arg6: memref<1x1x1x128xf32, #tpu.memory_space<vmem>>, %arg7: memref<10x18x8xbf16, #tpu.memory_space<vmem>>) attributes {dimension_semantics = [#tpu.dimension_semantics<parallel>, #tpu.dimension_semantics<parallel>], iteration_bounds = array<i64: 2, 2>, scalar_prefetch = 0 : i64, scratch_operands = 1 : i64, tpu.core_type = #tpu.core_type<tc>, window_params = [{transform_indices = @transform_0, window_bounds = array<i64: 1, 16, 16, 8>}, {pipeline_mode = #tpu.pipeline_mode<synchronous>, transform_indices = @transform_1, window_bounds = array<i64: 9, 8, 128>}, {transform_indices = @transform_2, window_bounds = array<i64: 1, 8, 16, 128>}, {transform_indices = @transform_3, window_bounds = array<i64: 1, 1, 1, 128>}, {transform_indices = @transform_4, window_bounds = array<i64: 1, 1, 1, 128>}]} {
    %c8_i32 = arith.constant 8 : i32
    %0 = arith.muli %arg1, %c8_i32 : i32
    %1 = tpu.assume_multiple %0, 8 : i32
    %cst = arith.constant 0.000000e+00 : bf16
    %2 = vector.broadcast %cst : bf16 to vector<1x18x8xbf16>
    %cst_0 = arith.constant 0.000000e+00 : bf16
    %3 = vector.broadcast %cst_0 : bf16 to vector<10x1x8xbf16>
    %c0 = arith.constant 0 : index
    %c0_1 = arith.constant 0 : index
    %c0_2 = arith.constant 0 : index
    %4 = vector.load %arg7[%c0, %c0_1, %c0_2] : memref<10x18x8xbf16, #tpu.memory_space<vmem>>, vector<10x1x8xbf16>
    tpu.vector_store %arg7[%c0, %c0_1, %c0_2], %3 {strides = array<i32>} : memref<10x18x8xbf16, #tpu.memory_space<vmem>>, vector<10x1x8xbf16>,
    %c0_3 = arith.constant 0 : index
    %c17 = arith.constant 17 : index
    %c0_4 = arith.constant 0 : index
    %5 = vector.load %arg7[%c0_3, %c17, %c0_4] : memref<10x18x8xbf16, #tpu.memory_space<vmem>>, vector<10x1x8xbf16>
    tpu.vector_store %arg7[%c0_3, %c17, %c0_4], %3 {strides = array<i32>} : memref<10x18x8xbf16, #tpu.memory_space<vmem>>, vector<10x1x8xbf16>,
    %c0_5 = arith.constant 0 : index
    %6 = arith.index_cast %1 : i32 to index
    %c0_6 = arith.constant 0 : index
    %c0_7 = arith.constant 0 : index
    %7 = vector.load %arg2[%c0_5, %6, %c0_6, %c0_7] : memref<1x16x16x8xf32, #tpu.memory_space<vmem>>, vector<1x8x16x8xf32>
    %8 = vector.shape_cast %7 : vector<1x8x16x8xf32> to vector<8x16x8xf32>
    %9 = arith.truncf %8 : vector<8x16x8xf32> to vector<8x16x8xbf16>
    %c1 = arith.constant 1 : index
    %c1_8 = arith.constant 1 : index
    %c0_9 = arith.constant 0 : index
    %10 = vector.load %arg7[%c1, %c1_8, %c0_9] : memref<10x18x8xbf16, #tpu.memory_space<vmem>>, vector<8x16x8xbf16>
    tpu.vector_store %arg7[%c1, %c1_8, %c0_9], %9 {strides = array<i32>} : memref<10x18x8xbf16, #tpu.memory_space<vmem>>, vector<8x16x8xbf16>,
    %c0_i32 = arith.constant 0 : i32
    %11 = arith.cmpi eq, %arg1, %c0_i32 : i32
    %12 = arith.extui %11 : i1 to i32
    %c0_i32_10 = arith.constant 0 : i32
    %13 = arith.cmpi ne, %12, %c0_i32_10 : i32
    scf.if %13 {
      %c0_86 = arith.constant 0 : index
      %c0_87 = arith.constant 0 : index
      %c0_88 = arith.constant 0 : index
      %92 = vector.load %arg7[%c0_86, %c0_87, %c0_88] : memref<10x18x8xbf16, #tpu.memory_space<vmem>>, vector<1x18x8xbf16>
      tpu.vector_store %arg7[%c0_86, %c0_87, %c0_88], %2 {strides = array<i32>} : memref<10x18x8xbf16, #tpu.memory_space<vmem>>, vector<1x18x8xbf16>,
    } else {
    }
    %c0_i32_11 = arith.constant 0 : i32
    %14 = arith.cmpi sgt, %arg1, %c0_i32_11 : i32
    %15 = arith.extui %14 : i1 to i32
    %c0_i32_12 = arith.constant 0 : i32
    %16 = arith.cmpi ne, %15, %c0_i32_12 : i32
    scf.if %16 {
      %c1_i32_86 = arith.constant 1 : i32
      %92 = arith.subi %1, %c1_i32_86 : i32
      %c0_87 = arith.constant 0 : index
      %93 = arith.index_cast %92 : i32 to index
      %c0_88 = arith.constant 0 : index
      %c0_89 = arith.constant 0 : index
      %94 = vector.load %arg2[%c0_87, %93, %c0_88, %c0_89] : memref<1x16x16x8xf32, #tpu.memory_space<vmem>>, vector<1x1x16x8xf32>
      %95 = vector.shape_cast %94 : vector<1x1x16x8xf32> to vector<1x16x8xf32>
      %96 = arith.truncf %95 : vector<1x16x8xf32> to vector<1x16x8xbf16>
      %c0_90 = arith.constant 0 : index
      %c1_91 = arith.constant 1 : index
      %c0_92 = arith.constant 0 : index
      %97 = vector.load %arg7[%c0_90, %c1_91, %c0_92] : memref<10x18x8xbf16, #tpu.memory_space<vmem>>, vector<1x16x8xbf16>
      tpu.vector_store %arg7[%c0_90, %c1_91, %c0_92], %96 {strides = array<i32>} : memref<10x18x8xbf16, #tpu.memory_space<vmem>>, vector<1x16x8xbf16>,
    } else {
    }
    %c1_i32 = arith.constant 1 : i32
    %17 = arith.cmpi eq, %arg1, %c1_i32 : i32
    %18 = arith.extui %17 : i1 to i32
    %c0_i32_13 = arith.constant 0 : i32
    %19 = arith.cmpi ne, %18, %c0_i32_13 : i32
    scf.if %19 {
      %c9 = arith.constant 9 : index
      %c0_86 = arith.constant 0 : index
      %c0_87 = arith.constant 0 : index
      %92 = vector.load %arg7[%c9, %c0_86, %c0_87] : memref<10x18x8xbf16, #tpu.memory_space<vmem>>, vector<1x18x8xbf16>
      tpu.vector_store %arg7[%c9, %c0_86, %c0_87], %2 {strides = array<i32>} : memref<10x18x8xbf16, #tpu.memory_space<vmem>>, vector<1x18x8xbf16>,
    } else {
    }
    %c1_i32_14 = arith.constant 1 : i32
    %20 = arith.cmpi slt, %arg1, %c1_i32_14 : i32
    %21 = arith.extui %20 : i1 to i32
    %c0_i32_15 = arith.constant 0 : i32
    %22 = arith.cmpi ne, %21, %c0_i32_15 : i32
    scf.if %22 {
      %c8_i32_86 = arith.constant 8 : i32
      %92 = arith.addi %1, %c8_i32_86 : i32
      %c0_87 = arith.constant 0 : index
      %93 = arith.index_cast %92 : i32 to index
      %c0_88 = arith.constant 0 : index
      %c0_89 = arith.constant 0 : index
      %94 = vector.load %arg2[%c0_87, %93, %c0_88, %c0_89] : memref<1x16x16x8xf32, #tpu.memory_space<vmem>>, vector<1x1x16x8xf32>
      %95 = vector.shape_cast %94 : vector<1x1x16x8xf32> to vector<1x16x8xf32>
      %96 = arith.truncf %95 : vector<1x16x8xf32> to vector<1x16x8xbf16>
      %c9 = arith.constant 9 : index
      %c1_90 = arith.constant 1 : index
      %c0_91 = arith.constant 0 : index
      %97 = vector.load %arg7[%c9, %c1_90, %c0_91] : memref<10x18x8xbf16, #tpu.memory_space<vmem>>, vector<1x16x8xbf16>
      tpu.vector_store %arg7[%c9, %c1_90, %c0_91], %96 {strides = array<i32>} : memref<10x18x8xbf16, #tpu.memory_space<vmem>>, vector<1x16x8xbf16>,
    } else {
    }
    %c0_16 = arith.constant 0 : index
    %c0_17 = arith.constant 0 : index
    %c0_18 = arith.constant 0 : index
    %23 = vector.load %arg7[%c0_16, %c0_17, %c0_18] : memref<10x18x8xbf16, #tpu.memory_space<vmem>>, vector<8x16x8xbf16>
    %24 = vector.shape_cast %23 : vector<8x16x8xbf16> to vector<128x8xbf16>
    %c0_19 = arith.constant 0 : index
    %c0_20 = arith.constant 0 : index
    %c0_21 = arith.constant 0 : index
    %25 = vector.load %arg3[%c0_19, %c0_20, %c0_21] : memref<9x8x128xbf16, #tpu.memory_space<vmem>>, vector<1x8x128xbf16>
    %26 = vector.shape_cast %25 : vector<1x8x128xbf16> to vector<8x128xbf16>
    %cst_22 = arith.constant dense<0.000000e+00> : vector<128x128xf32>
    %27 = tpu.matmul %24, %26, %cst_22 {dimension_numbers = #tpu.dot_dimension_numbers<[1], [0], [0], [1], [0, 0, 1, 1], [], []>} : vector<128x8xbf16>, vector<8x128xbf16>, vector<128x128xf32> -> vector<128x128xf32>
    %c0_23 = arith.constant 0 : index
    %c1_24 = arith.constant 1 : index
    %c0_25 = arith.constant 0 : index
    %28 = vector.load %arg7[%c0_23, %c1_24, %c0_25] : memref<10x18x8xbf16, #tpu.memory_space<vmem>>, vector<8x16x8xbf16>
    %29 = vector.shape_cast %28 : vector<8x16x8xbf16> to vector<128x8xbf16>
    %c1_26 = arith.constant 1 : index
    %c0_27 = arith.constant 0 : index
    %c0_28 = arith.constant 0 : index
    %30 = vector.load %arg3[%c1_26, %c0_27, %c0_28] : memref<9x8x128xbf16, #tpu.memory_space<vmem>>, vector<1x8x128xbf16>
    %31 = vector.shape_cast %30 : vector<1x8x128xbf16> to vector<8x128xbf16>
    %cst_29 = arith.constant dense<0.000000e+00> : vector<128x128xf32>
    %32 = tpu.matmul %29, %31, %cst_29 {dimension_numbers = #tpu.dot_dimension_numbers<[1], [0], [0], [1], [0, 0, 1, 1], [], []>} : vector<128x8xbf16>, vector<8x128xbf16>, vector<128x128xf32> -> vector<128x128xf32>
    %33 = arith.addf %27, %32 : vector<128x128xf32>
    %c0_30 = arith.constant 0 : index
    %c2 = arith.constant 2 : index
    %c0_31 = arith.constant 0 : index
    %34 = vector.load %arg7[%c0_30, %c2, %c0_31] : memref<10x18x8xbf16, #tpu.memory_space<vmem>>, vector<8x16x8xbf16>
    %35 = vector.shape_cast %34 : vector<8x16x8xbf16> to vector<128x8xbf16>
    %c2_32 = arith.constant 2 : index
    %c0_33 = arith.constant 0 : index
    %c0_34 = arith.constant 0 : index
    %36 = vector.load %arg3[%c2_32, %c0_33, %c0_34] : memref<9x8x128xbf16, #tpu.memory_space<vmem>>, vector<1x8x128xbf16>
    %37 = vector.shape_cast %36 : vector<1x8x128xbf16> to vector<8x128xbf16>
    %cst_35 = arith.constant dense<0.000000e+00> : vector<128x128xf32>
    %38 = tpu.matmul %35, %37, %cst_35 {dimension_numbers = #tpu.dot_dimension_numbers<[1], [0], [0], [1], [0, 0, 1, 1], [], []>} : vector<128x8xbf16>, vector<8x128xbf16>, vector<128x128xf32> -> vector<128x128xf32>
    %39 = arith.addf %33, %38 : vector<128x128xf32>
    %c1_36 = arith.constant 1 : index
    %c0_37 = arith.constant 0 : index
    %c0_38 = arith.constant 0 : index
    %40 = vector.load %arg7[%c1_36, %c0_37, %c0_38] : memref<10x18x8xbf16, #tpu.memory_space<vmem>>, vector<8x16x8xbf16>
    %41 = vector.shape_cast %40 : vector<8x16x8xbf16> to vector<128x8xbf16>
    %c3 = arith.constant 3 : index
    %c0_39 = arith.constant 0 : index
    %c0_40 = arith.constant 0 : index
    %42 = vector.load %arg3[%c3, %c0_39, %c0_40] : memref<9x8x128xbf16, #tpu.memory_space<vmem>>, vector<1x8x128xbf16>
    %43 = vector.shape_cast %42 : vector<1x8x128xbf16> to vector<8x128xbf16>
    %cst_41 = arith.constant dense<0.000000e+00> : vector<128x128xf32>
    %44 = tpu.matmul %41, %43, %cst_41 {dimension_numbers = #tpu.dot_dimension_numbers<[1], [0], [0], [1], [0, 0, 1, 1], [], []>} : vector<128x8xbf16>, vector<8x128xbf16>, vector<128x128xf32> -> vector<128x128xf32>
    %45 = arith.addf %39, %44 : vector<128x128xf32>
    %c1_42 = arith.constant 1 : index
    %c1_43 = arith.constant 1 : index
    %c0_44 = arith.constant 0 : index
    %46 = vector.load %arg7[%c1_42, %c1_43, %c0_44] : memref<10x18x8xbf16, #tpu.memory_space<vmem>>, vector<8x16x8xbf16>
    %47 = vector.shape_cast %46 : vector<8x16x8xbf16> to vector<128x8xbf16>
    %c4 = arith.constant 4 : index
    %c0_45 = arith.constant 0 : index
    %c0_46 = arith.constant 0 : index
    %48 = vector.load %arg3[%c4, %c0_45, %c0_46] : memref<9x8x128xbf16, #tpu.memory_space<vmem>>, vector<1x8x128xbf16>
    %49 = vector.shape_cast %48 : vector<1x8x128xbf16> to vector<8x128xbf16>
    %cst_47 = arith.constant dense<0.000000e+00> : vector<128x128xf32>
    %50 = tpu.matmul %47, %49, %cst_47 {dimension_numbers = #tpu.dot_dimension_numbers<[1], [0], [0], [1], [0, 0, 1, 1], [], []>} : vector<128x8xbf16>, vector<8x128xbf16>, vector<128x128xf32> -> vector<128x128xf32>
    %51 = arith.addf %45, %50 : vector<128x128xf32>
    %c1_48 = arith.constant 1 : index
    %c2_49 = arith.constant 2 : index
    %c0_50 = arith.constant 0 : index
    %52 = vector.load %arg7[%c1_48, %c2_49, %c0_50] : memref<10x18x8xbf16, #tpu.memory_space<vmem>>, vector<8x16x8xbf16>
    %53 = vector.shape_cast %52 : vector<8x16x8xbf16> to vector<128x8xbf16>
    %c5 = arith.constant 5 : index
    %c0_51 = arith.constant 0 : index
    %c0_52 = arith.constant 0 : index
    %54 = vector.load %arg3[%c5, %c0_51, %c0_52] : memref<9x8x128xbf16, #tpu.memory_space<vmem>>, vector<1x8x128xbf16>
    %55 = vector.shape_cast %54 : vector<1x8x128xbf16> to vector<8x128xbf16>
    %cst_53 = arith.constant dense<0.000000e+00> : vector<128x128xf32>
    %56 = tpu.matmul %53, %55, %cst_53 {dimension_numbers = #tpu.dot_dimension_numbers<[1], [0], [0], [1], [0, 0, 1, 1], [], []>} : vector<128x8xbf16>, vector<8x128xbf16>, vector<128x128xf32> -> vector<128x128xf32>
    %57 = arith.addf %51, %56 : vector<128x128xf32>
    %c2_54 = arith.constant 2 : index
    %c0_55 = arith.constant 0 : index
    %c0_56 = arith.constant 0 : index
    %58 = vector.load %arg7[%c2_54, %c0_55, %c0_56] : memref<10x18x8xbf16, #tpu.memory_space<vmem>>, vector<8x16x8xbf16>
    %59 = vector.shape_cast %58 : vector<8x16x8xbf16> to vector<128x8xbf16>
    %c6 = arith.constant 6 : index
    %c0_57 = arith.constant 0 : index
    %c0_58 = arith.constant 0 : index
    %60 = vector.load %arg3[%c6, %c0_57, %c0_58] : memref<9x8x128xbf16, #tpu.memory_space<vmem>>, vector<1x8x128xbf16>
    %61 = vector.shape_cast %60 : vector<1x8x128xbf16> to vector<8x128xbf16>
    %cst_59 = arith.constant dense<0.000000e+00> : vector<128x128xf32>
    %62 = tpu.matmul %59, %61, %cst_59 {dimension_numbers = #tpu.dot_dimension_numbers<[1], [0], [0], [1], [0, 0, 1, 1], [], []>} : vector<128x8xbf16>, vector<8x128xbf16>, vector<128x128xf32> -> vector<128x128xf32>
    %63 = arith.addf %57, %62 : vector<128x128xf32>
    %c2_60 = arith.constant 2 : index
    %c1_61 = arith.constant 1 : index
    %c0_62 = arith.constant 0 : index
    %64 = vector.load %arg7[%c2_60, %c1_61, %c0_62] : memref<10x18x8xbf16, #tpu.memory_space<vmem>>, vector<8x16x8xbf16>
    %65 = vector.shape_cast %64 : vector<8x16x8xbf16> to vector<128x8xbf16>
    %c7 = arith.constant 7 : index
    %c0_63 = arith.constant 0 : index
    %c0_64 = arith.constant 0 : index
    %66 = vector.load %arg3[%c7, %c0_63, %c0_64] : memref<9x8x128xbf16, #tpu.memory_space<vmem>>, vector<1x8x128xbf16>
    %67 = vector.shape_cast %66 : vector<1x8x128xbf16> to vector<8x128xbf16>
    %cst_65 = arith.constant dense<0.000000e+00> : vector<128x128xf32>
    %68 = tpu.matmul %65, %67, %cst_65 {dimension_numbers = #tpu.dot_dimension_numbers<[1], [0], [0], [1], [0, 0, 1, 1], [], []>} : vector<128x8xbf16>, vector<8x128xbf16>, vector<128x128xf32> -> vector<128x128xf32>
    %69 = arith.addf %63, %68 : vector<128x128xf32>
    %c2_66 = arith.constant 2 : index
    %c2_67 = arith.constant 2 : index
    %c0_68 = arith.constant 0 : index
    %70 = vector.load %arg7[%c2_66, %c2_67, %c0_68] : memref<10x18x8xbf16, #tpu.memory_space<vmem>>, vector<8x16x8xbf16>
    %71 = vector.shape_cast %70 : vector<8x16x8xbf16> to vector<128x8xbf16>
    %c8 = arith.constant 8 : index
    %c0_69 = arith.constant 0 : index
    %c0_70 = arith.constant 0 : index
    %72 = vector.load %arg3[%c8, %c0_69, %c0_70] : memref<9x8x128xbf16, #tpu.memory_space<vmem>>, vector<1x8x128xbf16>
    %73 = vector.shape_cast %72 : vector<1x8x128xbf16> to vector<8x128xbf16>
    %cst_71 = arith.constant dense<0.000000e+00> : vector<128x128xf32>
    %74 = tpu.matmul %71, %73, %cst_71 {dimension_numbers = #tpu.dot_dimension_numbers<[1], [0], [0], [1], [0, 0, 1, 1], [], []>} : vector<128x8xbf16>, vector<8x128xbf16>, vector<128x128xf32> -> vector<128x128xf32>
    %75 = arith.addf %69, %74 : vector<128x128xf32>
    %76 = vector.shape_cast %75 : vector<128x128xf32> to vector<8x16x128xf32>
    %77 = arith.truncf %76 : vector<8x16x128xf32> to vector<8x16x128xbf16>
    %c0_72 = arith.constant 0 : index
    %c0_73 = arith.constant 0 : index
    %c0_74 = arith.constant 0 : index
    %c0_75 = arith.constant 0 : index
    %78 = vector.load %arg4[%c0_72, %c0_73, %c0_74, %c0_75] : memref<1x8x16x128xbf16, #tpu.memory_space<vmem>>, vector<1x8x16x128xbf16>
    %79 = vector.shape_cast %78 : vector<1x8x16x128xbf16> to vector<8x16x128xbf16>
    %80 = vector.shape_cast %77 : vector<8x16x128xbf16> to vector<1x8x16x128xbf16>
    tpu.vector_store %arg4[%c0_72, %c0_73, %c0_74, %c0_75], %80 {strides = array<i32>} : memref<1x8x16x128xbf16, #tpu.memory_space<vmem>>, vector<1x8x16x128xbf16>,
    %cst_76 = arith.constant dense<0.000000e+00> : vector<128xf32>
    %81 = vector.multi_reduction <add>, %75, %cst_76 [0] : vector<128x128xf32> to vector<128xf32>
    %82 = vector.shape_cast %81 : vector<128xf32> to vector<1x1x128xf32>
    %c0_77 = arith.constant 0 : index
    %c0_78 = arith.constant 0 : index
    %c0_79 = arith.constant 0 : index
    %c0_80 = arith.constant 0 : index
    %83 = vector.load %arg5[%c0_77, %c0_78, %c0_79, %c0_80] : memref<1x1x1x128xf32, #tpu.memory_space<vmem>>, vector<1x1x1x128xf32>
    %84 = vector.shape_cast %83 : vector<1x1x1x128xf32> to vector<1x1x128xf32>
    %85 = vector.shape_cast %82 : vector<1x1x128xf32> to vector<1x1x1x128xf32>
    tpu.vector_store %arg5[%c0_77, %c0_78, %c0_79, %c0_80], %85 {strides = array<i32>} : memref<1x1x1x128xf32, #tpu.memory_space<vmem>>, vector<1x1x1x128xf32>,
    %86 = arith.mulf %75, %75 : vector<128x128xf32>
    %cst_81 = arith.constant dense<0.000000e+00> : vector<128xf32>
    %87 = vector.multi_reduction <add>, %86, %cst_81 [0] : vector<128x128xf32> to vector<128xf32>
    %88 = vector.shape_cast %87 : vector<128xf32> to vector<1x1x128xf32>
    %c0_82 = arith.constant 0 : index
    %c0_83 = arith.constant 0 : index
    %c0_84 = arith.constant 0 : index
    %c0_85 = arith.constant 0 : index
    %89 = vector.load %arg6[%c0_82, %c0_83, %c0_84, %c0_85] : memref<1x1x1x128xf32, #tpu.memory_space<vmem>>, vector<1x1x1x128xf32>
    %90 = vector.shape_cast %89 : vector<1x1x1x128xf32> to vector<1x1x128xf32>
    %91 = vector.shape_cast %88 : vector<1x1x128xf32> to vector<1x1x1x128xf32>
    tpu.vector_store %arg6[%c0_82, %c0_83, %c0_84, %c0_85], %91 {strides = array<i32>} : memref<1x1x1x128xf32, #tpu.memory_space<vmem>>, vector<1x1x1x128xf32>,
    return
  }
  func.func @transform_0(%arg0: i32, %arg1: i32) -> (i32, i32, i32, i32) {
    %c0_i32 = arith.constant 0 : i32
    %c0_i32_0 = arith.constant 0 : i32
    %c0_i32_1 = arith.constant 0 : i32
    %c0_i32_2 = arith.constant 0 : i32
    return %arg0, %c0_i32, %c0_i32_0, %c0_i32_1 : i32, i32, i32, i32
  }
  func.func @transform_1(%arg0: i32, %arg1: i32) -> (i32, i32, i32) {
    %c0_i32 = arith.constant 0 : i32
    %c0_i32_0 = arith.constant 0 : i32
    %c0_i32_1 = arith.constant 0 : i32
    %c0_i32_2 = arith.constant 0 : i32
    return %c0_i32, %c0_i32_0, %c0_i32_1 : i32, i32, i32
  }
  func.func @transform_2(%arg0: i32, %arg1: i32) -> (i32, i32, i32, i32) {
    %c0_i32 = arith.constant 0 : i32
    %c0_i32_0 = arith.constant 0 : i32
    %c0_i32_1 = arith.constant 0 : i32
    return %arg0, %arg1, %c0_i32, %c0_i32_0 : i32, i32, i32, i32
  }
  func.func @transform_3(%arg0: i32, %arg1: i32) -> (i32, i32, i32, i32) {
    %c0_i32 = arith.constant 0 : i32
    %c0_i32_0 = arith.constant 0 : i32
    %c0_i32_1 = arith.constant 0 : i32
    return %arg0, %arg1, %c0_i32, %c0_i32_0 : i32, i32, i32, i32
  }
  func.func @transform_4(%arg0: i32, %arg1: i32) -> (i32, i32, i32, i32) {
    %c0_i32 = arith.constant 0 : i32
    %c0_i32_0 = arith.constant 0 : i32
    %c0_i32_1 = arith.constant 0 : i32
    return %arg0, %arg1, %c0_i32, %c0_i32_0 : i32, i32, i32, i32
  }
}

module attributes {stable_mosaic.version = 11 : i64} {
  func.func @_bn_add_relu_kernel(%arg0: i32, %arg1: memref<512x128xbf16, #tpu.memory_space<vmem>>, %arg2: memref<1x128xf32, #tpu.memory_space<vmem>>, %arg3: memref<1x128xf32, #tpu.memory_space<vmem>>, %arg4: memref<512x8xf32, #tpu.memory_space<vmem>>, %arg5: memref<512x8xf32, #tpu.memory_space<vmem>>) attributes {dimension_semantics = [#tpu.dimension_semantics<parallel>], iteration_bounds = array<i64: 1>, scalar_prefetch = 0 : i64, scratch_operands = 0 : i64, tpu.core_type = #tpu.core_type<tc>, window_params = [{transform_indices = @transform_0, window_bounds = array<i64: 512, 128>}, {pipeline_mode = #tpu.pipeline_mode<synchronous>, transform_indices = @transform_1, window_bounds = array<i64: 1, 128>}, {pipeline_mode = #tpu.pipeline_mode<synchronous>, transform_indices = @transform_2, window_bounds = array<i64: 1, 128>}, {transform_indices = @transform_3, window_bounds = array<i64: 512, 8>}, {transform_indices = @transform_4, window_bounds = array<i64: 512, 8>}]} {
    %c0 = arith.constant 0 : index
    %c0_0 = arith.constant 0 : index
    %0 = vector.load %arg1[%c0, %c0_0] : memref<512x128xbf16, #tpu.memory_space<vmem>>, vector<512x128xbf16>
    %1 = arith.extf %0 : vector<512x128xbf16> to vector<512x128xf32>
    %c0_1 = arith.constant 0 : index
    %c0_2 = arith.constant 0 : index
    %2 = vector.load %arg2[%c0_1, %c0_2] : memref<1x128xf32, #tpu.memory_space<vmem>>, vector<1x128xf32>
    %3 = vector.broadcast %2 : vector<1x128xf32> to vector<512x128xf32>
    %4 = arith.mulf %1, %3 : vector<512x128xf32>
    %c0_3 = arith.constant 0 : index
    %c0_4 = arith.constant 0 : index
    %5 = vector.load %arg3[%c0_3, %c0_4] : memref<1x128xf32, #tpu.memory_space<vmem>>, vector<1x128xf32>
    %6 = vector.broadcast %5 : vector<1x128xf32> to vector<512x128xf32>
    %7 = arith.addf %4, %6 : vector<512x128xf32>
    %8 = vector.extract_strided_slice %7 {offsets = [0, 0], sizes = [512, 8], strides = [1, 1]} : vector<512x128xf32> to vector<512x8xf32>
    %c0_5 = arith.constant 0 : index
    %c0_6 = arith.constant 0 : index
    %9 = vector.load %arg4[%c0_5, %c0_6] : memref<512x8xf32, #tpu.memory_space<vmem>>, vector<512x8xf32>
    %10 = arith.addf %8, %9 : vector<512x8xf32>
    %cst = arith.constant 0.000000e+00 : f32
    %11 = vector.broadcast %cst : f32 to vector<512x8xf32>
    %12 = arith.maximumf %10, %11 : vector<512x8xf32>
    %c0_7 = arith.constant 0 : index
    %c0_8 = arith.constant 0 : index
    %13 = vector.load %arg5[%c0_7, %c0_8] : memref<512x8xf32, #tpu.memory_space<vmem>>, vector<512x8xf32>
    tpu.vector_store %arg5[%c0_7, %c0_8], %12 {strides = array<i32>} : memref<512x8xf32, #tpu.memory_space<vmem>>, vector<512x8xf32>,
    return
  }
  func.func @transform_0(%arg0: i32) -> (i32, i32) {
    %c0_i32 = arith.constant 0 : i32
    %c0_i32_0 = arith.constant 0 : i32
    return %arg0, %c0_i32 : i32, i32
  }
  func.func @transform_1(%arg0: i32) -> (i32, i32) {
    %c0_i32 = arith.constant 0 : i32
    %c0_i32_0 = arith.constant 0 : i32
    %c0_i32_1 = arith.constant 0 : i32
    return %c0_i32, %c0_i32_0 : i32, i32
  }
  func.func @transform_2(%arg0: i32) -> (i32, i32) {
    %c0_i32 = arith.constant 0 : i32
    %c0_i32_0 = arith.constant 0 : i32
    %c0_i32_1 = arith.constant 0 : i32
    return %c0_i32, %c0_i32_0 : i32, i32
  }
  func.func @transform_3(%arg0: i32) -> (i32, i32) {
    %c0_i32 = arith.constant 0 : i32
    %c0_i32_0 = arith.constant 0 : i32
    return %arg0, %c0_i32 : i32, i32
  }
  func.func @transform_4(%arg0: i32) -> (i32, i32) {
    %c0_i32 = arith.constant 0 : i32
    %c0_i32_0 = arith.constant 0 : i32
    return %arg0, %c0_i32 : i32, i32
  }
}

module attributes {stable_mosaic.version = 11 : i64} {
  func.func @_conv_stats_kernel(%arg0: i32, %arg1: i32, %arg2: memref<1x16x16x128xbf16, #tpu.memory_space<vmem>>, %arg3: memref<9x128x128xbf16, #tpu.memory_space<vmem>>, %arg4: memref<1x128xf32, #tpu.memory_space<vmem>>, %arg5: memref<1x128xf32, #tpu.memory_space<vmem>>, %arg6: memref<1x8x16x128xbf16, #tpu.memory_space<vmem>>, %arg7: memref<1x1x1x128xf32, #tpu.memory_space<vmem>>, %arg8: memref<1x1x1x128xf32, #tpu.memory_space<vmem>>, %arg9: memref<10x18x128xbf16, #tpu.memory_space<vmem>>) attributes {dimension_semantics = [#tpu.dimension_semantics<parallel>, #tpu.dimension_semantics<parallel>], iteration_bounds = array<i64: 2, 2>, scalar_prefetch = 0 : i64, scratch_operands = 1 : i64, tpu.core_type = #tpu.core_type<tc>, window_params = [{transform_indices = @transform_0, window_bounds = array<i64: 1, 16, 16, 128>}, {pipeline_mode = #tpu.pipeline_mode<synchronous>, transform_indices = @transform_1, window_bounds = array<i64: 9, 128, 128>}, {pipeline_mode = #tpu.pipeline_mode<synchronous>, transform_indices = @transform_2, window_bounds = array<i64: 1, 128>}, {pipeline_mode = #tpu.pipeline_mode<synchronous>, transform_indices = @transform_3, window_bounds = array<i64: 1, 128>}, {transform_indices = @transform_4, window_bounds = array<i64: 1, 8, 16, 128>}, {transform_indices = @transform_5, window_bounds = array<i64: 1, 1, 1, 128>}, {transform_indices = @transform_6, window_bounds = array<i64: 1, 1, 1, 128>}]} {
    %c8_i32 = arith.constant 8 : i32
    %0 = arith.muli %arg1, %c8_i32 : i32
    %1 = tpu.assume_multiple %0, 8 : i32
    %cst = arith.constant 0.000000e+00 : bf16
    %2 = vector.broadcast %cst : bf16 to vector<1x18x128xbf16>
    %cst_0 = arith.constant 0.000000e+00 : bf16
    %3 = vector.broadcast %cst_0 : bf16 to vector<10x1x128xbf16>
    %c0 = arith.constant 0 : index
    %c0_1 = arith.constant 0 : index
    %c0_2 = arith.constant 0 : index
    %4 = vector.load %arg9[%c0, %c0_1, %c0_2] : memref<10x18x128xbf16, #tpu.memory_space<vmem>>, vector<10x1x128xbf16>
    tpu.vector_store %arg9[%c0, %c0_1, %c0_2], %3 {strides = array<i32>} : memref<10x18x128xbf16, #tpu.memory_space<vmem>>, vector<10x1x128xbf16>,
    %c0_3 = arith.constant 0 : index
    %c17 = arith.constant 17 : index
    %c0_4 = arith.constant 0 : index
    %5 = vector.load %arg9[%c0_3, %c17, %c0_4] : memref<10x18x128xbf16, #tpu.memory_space<vmem>>, vector<10x1x128xbf16>
    tpu.vector_store %arg9[%c0_3, %c17, %c0_4], %3 {strides = array<i32>} : memref<10x18x128xbf16, #tpu.memory_space<vmem>>, vector<10x1x128xbf16>,
    %c0_5 = arith.constant 0 : index
    %6 = arith.index_cast %1 : i32 to index
    %c0_6 = arith.constant 0 : index
    %c0_7 = arith.constant 0 : index
    %7 = vector.load %arg2[%c0_5, %6, %c0_6, %c0_7] : memref<1x16x16x128xbf16, #tpu.memory_space<vmem>>, vector<1x8x16x128xbf16>
    %8 = vector.shape_cast %7 : vector<1x8x16x128xbf16> to vector<8x16x128xbf16>
    %9 = arith.extf %8 : vector<8x16x128xbf16> to vector<8x16x128xf32>
    %c0_8 = arith.constant 0 : index
    %c0_9 = arith.constant 0 : index
    %10 = vector.load %arg4[%c0_8, %c0_9] : memref<1x128xf32, #tpu.memory_space<vmem>>, vector<1x128xf32>
    %11 = vector.shape_cast %10 : vector<1x128xf32> to vector<1x1x128xf32>
    %12 = vector.broadcast %11 : vector<1x1x128xf32> to vector<8x16x128xf32>
    %13 = arith.mulf %9, %12 : vector<8x16x128xf32>
    %c0_10 = arith.constant 0 : index
    %c0_11 = arith.constant 0 : index
    %14 = vector.load %arg5[%c0_10, %c0_11] : memref<1x128xf32, #tpu.memory_space<vmem>>, vector<1x128xf32>
    %15 = vector.shape_cast %14 : vector<1x128xf32> to vector<1x1x128xf32>
    %16 = vector.broadcast %15 : vector<1x1x128xf32> to vector<8x16x128xf32>
    %17 = arith.addf %13, %16 : vector<8x16x128xf32>
    %cst_12 = arith.constant 0.000000e+00 : f32
    %18 = vector.broadcast %cst_12 : f32 to vector<8x16x128xf32>
    %19 = arith.maximumf %17, %18 : vector<8x16x128xf32>
    %20 = arith.truncf %19 : vector<8x16x128xf32> to vector<8x16x128xbf16>
    %c1 = arith.constant 1 : index
    %c1_13 = arith.constant 1 : index
    %c0_14 = arith.constant 0 : index
    %21 = vector.load %arg9[%c1, %c1_13, %c0_14] : memref<10x18x128xbf16, #tpu.memory_space<vmem>>, vector<8x16x128xbf16>
    tpu.vector_store %arg9[%c1, %c1_13, %c0_14], %20 {strides = array<i32>} : memref<10x18x128xbf16, #tpu.memory_space<vmem>>, vector<8x16x128xbf16>,
    %c0_i32 = arith.constant 0 : i32
    %22 = arith.cmpi eq, %arg1, %c0_i32 : i32
    %23 = arith.extui %22 : i1 to i32
    %c0_i32_15 = arith.constant 0 : i32
    %24 = arith.cmpi ne, %23, %c0_i32_15 : i32
    scf.if %24 {
      %c0_91 = arith.constant 0 : index
      %c0_92 = arith.constant 0 : index
      %c0_93 = arith.constant 0 : index
      %103 = vector.load %arg9[%c0_91, %c0_92, %c0_93] : memref<10x18x128xbf16, #tpu.memory_space<vmem>>, vector<1x18x128xbf16>
      tpu.vector_store %arg9[%c0_91, %c0_92, %c0_93], %2 {strides = array<i32>} : memref<10x18x128xbf16, #tpu.memory_space<vmem>>, vector<1x18x128xbf16>,
    } else {
    }
    %c0_i32_16 = arith.constant 0 : i32
    %25 = arith.cmpi sgt, %arg1, %c0_i32_16 : i32
    %26 = arith.extui %25 : i1 to i32
    %c0_i32_17 = arith.constant 0 : i32
    %27 = arith.cmpi ne, %26, %c0_i32_17 : i32
    scf.if %27 {
      %c1_i32_91 = arith.constant 1 : i32
      %103 = arith.subi %1, %c1_i32_91 : i32
      %c0_92 = arith.constant 0 : index
      %104 = arith.index_cast %103 : i32 to index
      %c0_93 = arith.constant 0 : index
      %c0_94 = arith.constant 0 : index
      %105 = vector.load %arg2[%c0_92, %104, %c0_93, %c0_94] : memref<1x16x16x128xbf16, #tpu.memory_space<vmem>>, vector<1x1x16x128xbf16>
      %106 = vector.shape_cast %105 : vector<1x1x16x128xbf16> to vector<1x16x128xbf16>
      %107 = arith.extf %106 : vector<1x16x128xbf16> to vector<1x16x128xf32>
      %c0_95 = arith.constant 0 : index
      %c0_96 = arith.constant 0 : index
      %108 = vector.load %arg4[%c0_95, %c0_96] : memref<1x128xf32, #tpu.memory_space<vmem>>, vector<1x128xf32>
      %109 = vector.shape_cast %108 : vector<1x128xf32> to vector<1x1x128xf32>
      %110 = vector.broadcast %109 : vector<1x1x128xf32> to vector<1x16x128xf32>
      %111 = arith.mulf %107, %110 : vector<1x16x128xf32>
      %c0_97 = arith.constant 0 : index
      %c0_98 = arith.constant 0 : index
      %112 = vector.load %arg5[%c0_97, %c0_98] : memref<1x128xf32, #tpu.memory_space<vmem>>, vector<1x128xf32>
      %113 = vector.shape_cast %112 : vector<1x128xf32> to vector<1x1x128xf32>
      %114 = vector.broadcast %113 : vector<1x1x128xf32> to vector<1x16x128xf32>
      %115 = arith.addf %111, %114 : vector<1x16x128xf32>
      %cst_99 = arith.constant 0.000000e+00 : f32
      %116 = vector.broadcast %cst_99 : f32 to vector<1x16x128xf32>
      %117 = arith.maximumf %115, %116 : vector<1x16x128xf32>
      %118 = arith.truncf %117 : vector<1x16x128xf32> to vector<1x16x128xbf16>
      %c0_100 = arith.constant 0 : index
      %c1_101 = arith.constant 1 : index
      %c0_102 = arith.constant 0 : index
      %119 = vector.load %arg9[%c0_100, %c1_101, %c0_102] : memref<10x18x128xbf16, #tpu.memory_space<vmem>>, vector<1x16x128xbf16>
      tpu.vector_store %arg9[%c0_100, %c1_101, %c0_102], %118 {strides = array<i32>} : memref<10x18x128xbf16, #tpu.memory_space<vmem>>, vector<1x16x128xbf16>,
    } else {
    }
    %c1_i32 = arith.constant 1 : i32
    %28 = arith.cmpi eq, %arg1, %c1_i32 : i32
    %29 = arith.extui %28 : i1 to i32
    %c0_i32_18 = arith.constant 0 : i32
    %30 = arith.cmpi ne, %29, %c0_i32_18 : i32
    scf.if %30 {
      %c9 = arith.constant 9 : index
      %c0_91 = arith.constant 0 : index
      %c0_92 = arith.constant 0 : index
      %103 = vector.load %arg9[%c9, %c0_91, %c0_92] : memref<10x18x128xbf16, #tpu.memory_space<vmem>>, vector<1x18x128xbf16>
      tpu.vector_store %arg9[%c9, %c0_91, %c0_92], %2 {strides = array<i32>} : memref<10x18x128xbf16, #tpu.memory_space<vmem>>, vector<1x18x128xbf16>,
    } else {
    }
    %c1_i32_19 = arith.constant 1 : i32
    %31 = arith.cmpi slt, %arg1, %c1_i32_19 : i32
    %32 = arith.extui %31 : i1 to i32
    %c0_i32_20 = arith.constant 0 : i32
    %33 = arith.cmpi ne, %32, %c0_i32_20 : i32
    scf.if %33 {
      %c8_i32_91 = arith.constant 8 : i32
      %103 = arith.addi %1, %c8_i32_91 : i32
      %c0_92 = arith.constant 0 : index
      %104 = arith.index_cast %103 : i32 to index
      %c0_93 = arith.constant 0 : index
      %c0_94 = arith.constant 0 : index
      %105 = vector.load %arg2[%c0_92, %104, %c0_93, %c0_94] : memref<1x16x16x128xbf16, #tpu.memory_space<vmem>>, vector<1x1x16x128xbf16>
      %106 = vector.shape_cast %105 : vector<1x1x16x128xbf16> to vector<1x16x128xbf16>
      %107 = arith.extf %106 : vector<1x16x128xbf16> to vector<1x16x128xf32>
      %c0_95 = arith.constant 0 : index
      %c0_96 = arith.constant 0 : index
      %108 = vector.load %arg4[%c0_95, %c0_96] : memref<1x128xf32, #tpu.memory_space<vmem>>, vector<1x128xf32>
      %109 = vector.shape_cast %108 : vector<1x128xf32> to vector<1x1x128xf32>
      %110 = vector.broadcast %109 : vector<1x1x128xf32> to vector<1x16x128xf32>
      %111 = arith.mulf %107, %110 : vector<1x16x128xf32>
      %c0_97 = arith.constant 0 : index
      %c0_98 = arith.constant 0 : index
      %112 = vector.load %arg5[%c0_97, %c0_98] : memref<1x128xf32, #tpu.memory_space<vmem>>, vector<1x128xf32>
      %113 = vector.shape_cast %112 : vector<1x128xf32> to vector<1x1x128xf32>
      %114 = vector.broadcast %113 : vector<1x1x128xf32> to vector<1x16x128xf32>
      %115 = arith.addf %111, %114 : vector<1x16x128xf32>
      %cst_99 = arith.constant 0.000000e+00 : f32
      %116 = vector.broadcast %cst_99 : f32 to vector<1x16x128xf32>
      %117 = arith.maximumf %115, %116 : vector<1x16x128xf32>
      %118 = arith.truncf %117 : vector<1x16x128xf32> to vector<1x16x128xbf16>
      %c9 = arith.constant 9 : index
      %c1_100 = arith.constant 1 : index
      %c0_101 = arith.constant 0 : index
      %119 = vector.load %arg9[%c9, %c1_100, %c0_101] : memref<10x18x128xbf16, #tpu.memory_space<vmem>>, vector<1x16x128xbf16>
      tpu.vector_store %arg9[%c9, %c1_100, %c0_101], %118 {strides = array<i32>} : memref<10x18x128xbf16, #tpu.memory_space<vmem>>, vector<1x16x128xbf16>,
    } else {
    }
    %c0_21 = arith.constant 0 : index
    %c0_22 = arith.constant 0 : index
    %c0_23 = arith.constant 0 : index
    %34 = vector.load %arg9[%c0_21, %c0_22, %c0_23] : memref<10x18x128xbf16, #tpu.memory_space<vmem>>, vector<8x16x128xbf16>
    %35 = vector.shape_cast %34 : vector<8x16x128xbf16> to vector<128x128xbf16>
    %c0_24 = arith.constant 0 : index
    %c0_25 = arith.constant 0 : index
    %c0_26 = arith.constant 0 : index
    %36 = vector.load %arg3[%c0_24, %c0_25, %c0_26] : memref<9x128x128xbf16, #tpu.memory_space<vmem>>, vector<1x128x128xbf16>
    %37 = vector.shape_cast %36 : vector<1x128x128xbf16> to vector<128x128xbf16>
    %cst_27 = arith.constant dense<0.000000e+00> : vector<128x128xf32>
    %38 = tpu.matmul %35, %37, %cst_27 {dimension_numbers = #tpu.dot_dimension_numbers<[1], [0], [0], [1], [0, 0, 1, 1], [], []>} : vector<128x128xbf16>, vector<128x128xbf16>, vector<128x128xf32> -> vector<128x128xf32>
    %c0_28 = arith.constant 0 : index
    %c1_29 = arith.constant 1 : index
    %c0_30 = arith.constant 0 : index
    %39 = vector.load %arg9[%c0_28, %c1_29, %c0_30] : memref<10x18x128xbf16, #tpu.memory_space<vmem>>, vector<8x16x128xbf16>
    %40 = vector.shape_cast %39 : vector<8x16x128xbf16> to vector<128x128xbf16>
    %c1_31 = arith.constant 1 : index
    %c0_32 = arith.constant 0 : index
    %c0_33 = arith.constant 0 : index
    %41 = vector.load %arg3[%c1_31, %c0_32, %c0_33] : memref<9x128x128xbf16, #tpu.memory_space<vmem>>, vector<1x128x128xbf16>
    %42 = vector.shape_cast %41 : vector<1x128x128xbf16> to vector<128x128xbf16>
    %cst_34 = arith.constant dense<0.000000e+00> : vector<128x128xf32>
    %43 = tpu.matmul %40, %42, %cst_34 {dimension_numbers = #tpu.dot_dimension_numbers<[1], [0], [0], [1], [0, 0, 1, 1], [], []>} : vector<128x128xbf16>, vector<128x128xbf16>, vector<128x128xf32> -> vector<128x128xf32>
    %44 = arith.addf %38, %43 : vector<128x128xf32>
    %c0_35 = arith.constant 0 : index
    %c2 = arith.constant 2 : index
    %c0_36 = arith.constant 0 : index
    %45 = vector.load %arg9[%c0_35, %c2, %c0_36] : memref<10x18x128xbf16, #tpu.memory_space<vmem>>, vector<8x16x128xbf16>
    %46 = vector.shape_cast %45 : vector<8x16x128xbf16> to vector<128x128xbf16>
    %c2_37 = arith.constant 2 : index
    %c0_38 = arith.constant 0 : index
    %c0_39 = arith.constant 0 : index
    %47 = vector.load %arg3[%c2_37, %c0_38, %c0_39] : memref<9x128x128xbf16, #tpu.memory_space<vmem>>, vector<1x128x128xbf16>
    %48 = vector.shape_cast %47 : vector<1x128x128xbf16> to vector<128x128xbf16>
    %cst_40 = arith.constant dense<0.000000e+00> : vector<128x128xf32>
    %49 = tpu.matmul %46, %48, %cst_40 {dimension_numbers = #tpu.dot_dimension_numbers<[1], [0], [0], [1], [0, 0, 1, 1], [], []>} : vector<128x128xbf16>, vector<128x128xbf16>, vector<128x128xf32> -> vector<128x128xf32>
    %50 = arith.addf %44, %49 : vector<128x128xf32>
    %c1_41 = arith.constant 1 : index
    %c0_42 = arith.constant 0 : index
    %c0_43 = arith.constant 0 : index
    %51 = vector.load %arg9[%c1_41, %c0_42, %c0_43] : memref<10x18x128xbf16, #tpu.memory_space<vmem>>, vector<8x16x128xbf16>
    %52 = vector.shape_cast %51 : vector<8x16x128xbf16> to vector<128x128xbf16>
    %c3 = arith.constant 3 : index
    %c0_44 = arith.constant 0 : index
    %c0_45 = arith.constant 0 : index
    %53 = vector.load %arg3[%c3, %c0_44, %c0_45] : memref<9x128x128xbf16, #tpu.memory_space<vmem>>, vector<1x128x128xbf16>
    %54 = vector.shape_cast %53 : vector<1x128x128xbf16> to vector<128x128xbf16>
    %cst_46 = arith.constant dense<0.000000e+00> : vector<128x128xf32>
    %55 = tpu.matmul %52, %54, %cst_46 {dimension_numbers = #tpu.dot_dimension_numbers<[1], [0], [0], [1], [0, 0, 1, 1], [], []>} : vector<128x128xbf16>, vector<128x128xbf16>, vector<128x128xf32> -> vector<128x128xf32>
    %56 = arith.addf %50, %55 : vector<128x128xf32>
    %c1_47 = arith.constant 1 : index
    %c1_48 = arith.constant 1 : index
    %c0_49 = arith.constant 0 : index
    %57 = vector.load %arg9[%c1_47, %c1_48, %c0_49] : memref<10x18x128xbf16, #tpu.memory_space<vmem>>, vector<8x16x128xbf16>
    %58 = vector.shape_cast %57 : vector<8x16x128xbf16> to vector<128x128xbf16>
    %c4 = arith.constant 4 : index
    %c0_50 = arith.constant 0 : index
    %c0_51 = arith.constant 0 : index
    %59 = vector.load %arg3[%c4, %c0_50, %c0_51] : memref<9x128x128xbf16, #tpu.memory_space<vmem>>, vector<1x128x128xbf16>
    %60 = vector.shape_cast %59 : vector<1x128x128xbf16> to vector<128x128xbf16>
    %cst_52 = arith.constant dense<0.000000e+00> : vector<128x128xf32>
    %61 = tpu.matmul %58, %60, %cst_52 {dimension_numbers = #tpu.dot_dimension_numbers<[1], [0], [0], [1], [0, 0, 1, 1], [], []>} : vector<128x128xbf16>, vector<128x128xbf16>, vector<128x128xf32> -> vector<128x128xf32>
    %62 = arith.addf %56, %61 : vector<128x128xf32>
    %c1_53 = arith.constant 1 : index
    %c2_54 = arith.constant 2 : index
    %c0_55 = arith.constant 0 : index
    %63 = vector.load %arg9[%c1_53, %c2_54, %c0_55] : memref<10x18x128xbf16, #tpu.memory_space<vmem>>, vector<8x16x128xbf16>
    %64 = vector.shape_cast %63 : vector<8x16x128xbf16> to vector<128x128xbf16>
    %c5 = arith.constant 5 : index
    %c0_56 = arith.constant 0 : index
    %c0_57 = arith.constant 0 : index
    %65 = vector.load %arg3[%c5, %c0_56, %c0_57] : memref<9x128x128xbf16, #tpu.memory_space<vmem>>, vector<1x128x128xbf16>
    %66 = vector.shape_cast %65 : vector<1x128x128xbf16> to vector<128x128xbf16>
    %cst_58 = arith.constant dense<0.000000e+00> : vector<128x128xf32>
    %67 = tpu.matmul %64, %66, %cst_58 {dimension_numbers = #tpu.dot_dimension_numbers<[1], [0], [0], [1], [0, 0, 1, 1], [], []>} : vector<128x128xbf16>, vector<128x128xbf16>, vector<128x128xf32> -> vector<128x128xf32>
    %68 = arith.addf %62, %67 : vector<128x128xf32>
    %c2_59 = arith.constant 2 : index
    %c0_60 = arith.constant 0 : index
    %c0_61 = arith.constant 0 : index
    %69 = vector.load %arg9[%c2_59, %c0_60, %c0_61] : memref<10x18x128xbf16, #tpu.memory_space<vmem>>, vector<8x16x128xbf16>
    %70 = vector.shape_cast %69 : vector<8x16x128xbf16> to vector<128x128xbf16>
    %c6 = arith.constant 6 : index
    %c0_62 = arith.constant 0 : index
    %c0_63 = arith.constant 0 : index
    %71 = vector.load %arg3[%c6, %c0_62, %c0_63] : memref<9x128x128xbf16, #tpu.memory_space<vmem>>, vector<1x128x128xbf16>
    %72 = vector.shape_cast %71 : vector<1x128x128xbf16> to vector<128x128xbf16>
    %cst_64 = arith.constant dense<0.000000e+00> : vector<128x128xf32>
    %73 = tpu.matmul %70, %72, %cst_64 {dimension_numbers = #tpu.dot_dimension_numbers<[1], [0], [0], [1], [0, 0, 1, 1], [], []>} : vector<128x128xbf16>, vector<128x128xbf16>, vector<128x128xf32> -> vector<128x128xf32>
    %74 = arith.addf %68, %73 : vector<128x128xf32>
    %c2_65 = arith.constant 2 : index
    %c1_66 = arith.constant 1 : index
    %c0_67 = arith.constant 0 : index
    %75 = vector.load %arg9[%c2_65, %c1_66, %c0_67] : memref<10x18x128xbf16, #tpu.memory_space<vmem>>, vector<8x16x128xbf16>
    %76 = vector.shape_cast %75 : vector<8x16x128xbf16> to vector<128x128xbf16>
    %c7 = arith.constant 7 : index
    %c0_68 = arith.constant 0 : index
    %c0_69 = arith.constant 0 : index
    %77 = vector.load %arg3[%c7, %c0_68, %c0_69] : memref<9x128x128xbf16, #tpu.memory_space<vmem>>, vector<1x128x128xbf16>
    %78 = vector.shape_cast %77 : vector<1x128x128xbf16> to vector<128x128xbf16>
    %cst_70 = arith.constant dense<0.000000e+00> : vector<128x128xf32>
    %79 = tpu.matmul %76, %78, %cst_70 {dimension_numbers = #tpu.dot_dimension_numbers<[1], [0], [0], [1], [0, 0, 1, 1], [], []>} : vector<128x128xbf16>, vector<128x128xbf16>, vector<128x128xf32> -> vector<128x128xf32>
    %80 = arith.addf %74, %79 : vector<128x128xf32>
    %c2_71 = arith.constant 2 : index
    %c2_72 = arith.constant 2 : index
    %c0_73 = arith.constant 0 : index
    %81 = vector.load %arg9[%c2_71, %c2_72, %c0_73] : memref<10x18x128xbf16, #tpu.memory_space<vmem>>, vector<8x16x128xbf16>
    %82 = vector.shape_cast %81 : vector<8x16x128xbf16> to vector<128x128xbf16>
    %c8 = arith.constant 8 : index
    %c0_74 = arith.constant 0 : index
    %c0_75 = arith.constant 0 : index
    %83 = vector.load %arg3[%c8, %c0_74, %c0_75] : memref<9x128x128xbf16, #tpu.memory_space<vmem>>, vector<1x128x128xbf16>
    %84 = vector.shape_cast %83 : vector<1x128x128xbf16> to vector<128x128xbf16>
    %cst_76 = arith.constant dense<0.000000e+00> : vector<128x128xf32>
    %85 = tpu.matmul %82, %84, %cst_76 {dimension_numbers = #tpu.dot_dimension_numbers<[1], [0], [0], [1], [0, 0, 1, 1], [], []>} : vector<128x128xbf16>, vector<128x128xbf16>, vector<128x128xf32> -> vector<128x128xf32>
    %86 = arith.addf %80, %85 : vector<128x128xf32>
    %87 = vector.shape_cast %86 : vector<128x128xf32> to vector<8x16x128xf32>
    %88 = arith.truncf %87 : vector<8x16x128xf32> to vector<8x16x128xbf16>
    %c0_77 = arith.constant 0 : index
    %c0_78 = arith.constant 0 : index
    %c0_79 = arith.constant 0 : index
    %c0_80 = arith.constant 0 : index
    %89 = vector.load %arg6[%c0_77, %c0_78, %c0_79, %c0_80] : memref<1x8x16x128xbf16, #tpu.memory_space<vmem>>, vector<1x8x16x128xbf16>
    %90 = vector.shape_cast %89 : vector<1x8x16x128xbf16> to vector<8x16x128xbf16>
    %91 = vector.shape_cast %88 : vector<8x16x128xbf16> to vector<1x8x16x128xbf16>
    tpu.vector_store %arg6[%c0_77, %c0_78, %c0_79, %c0_80], %91 {strides = array<i32>} : memref<1x8x16x128xbf16, #tpu.memory_space<vmem>>, vector<1x8x16x128xbf16>,
    %cst_81 = arith.constant dense<0.000000e+00> : vector<128xf32>
    %92 = vector.multi_reduction <add>, %86, %cst_81 [0] : vector<128x128xf32> to vector<128xf32>
    %93 = vector.shape_cast %92 : vector<128xf32> to vector<1x1x128xf32>
    %c0_82 = arith.constant 0 : index
    %c0_83 = arith.constant 0 : index
    %c0_84 = arith.constant 0 : index
    %c0_85 = arith.constant 0 : index
    %94 = vector.load %arg7[%c0_82, %c0_83, %c0_84, %c0_85] : memref<1x1x1x128xf32, #tpu.memory_space<vmem>>, vector<1x1x1x128xf32>
    %95 = vector.shape_cast %94 : vector<1x1x1x128xf32> to vector<1x1x128xf32>
    %96 = vector.shape_cast %93 : vector<1x1x128xf32> to vector<1x1x1x128xf32>
    tpu.vector_store %arg7[%c0_82, %c0_83, %c0_84, %c0_85], %96 {strides = array<i32>} : memref<1x1x1x128xf32, #tpu.memory_space<vmem>>, vector<1x1x1x128xf32>,
    %97 = arith.mulf %86, %86 : vector<128x128xf32>
    %cst_86 = arith.constant dense<0.000000e+00> : vector<128xf32>
    %98 = vector.multi_reduction <add>, %97, %cst_86 [0] : vector<128x128xf32> to vector<128xf32>
    %99 = vector.shape_cast %98 : vector<128xf32> to vector<1x1x128xf32>
    %c0_87 = arith.constant 0 : index
    %c0_88 = arith.constant 0 : index
    %c0_89 = arith.constant 0 : index
    %c0_90 = arith.constant 0 : index
    %100 = vector.load %arg8[%c0_87, %c0_88, %c0_89, %c0_90] : memref<1x1x1x128xf32, #tpu.memory_space<vmem>>, vector<1x1x1x128xf32>
    %101 = vector.shape_cast %100 : vector<1x1x1x128xf32> to vector<1x1x128xf32>
    %102 = vector.shape_cast %99 : vector<1x1x128xf32> to vector<1x1x1x128xf32>
    tpu.vector_store %arg8[%c0_87, %c0_88, %c0_89, %c0_90], %102 {strides = array<i32>} : memref<1x1x1x128xf32, #tpu.memory_space<vmem>>, vector<1x1x1x128xf32>,
    return
  }
  func.func @transform_0(%arg0: i32, %arg1: i32) -> (i32, i32, i32, i32) {
    %c0_i32 = arith.constant 0 : i32
    %c0_i32_0 = arith.constant 0 : i32
    %c0_i32_1 = arith.constant 0 : i32
    %c0_i32_2 = arith.constant 0 : i32
    return %arg0, %c0_i32, %c0_i32_0, %c0_i32_1 : i32, i32, i32, i32
  }
  func.func @transform_1(%arg0: i32, %arg1: i32) -> (i32, i32, i32) {
    %c0_i32 = arith.constant 0 : i32
    %c0_i32_0 = arith.constant 0 : i32
    %c0_i32_1 = arith.constant 0 : i32
    %c0_i32_2 = arith.constant 0 : i32
    return %c0_i32, %c0_i32_0, %c0_i32_1 : i32, i32, i32
  }
  func.func @transform_2(%arg0: i32, %arg1: i32) -> (i32, i32) {
    %c0_i32 = arith.constant 0 : i32
    %c0_i32_0 = arith.constant 0 : i32
    %c0_i32_1 = arith.constant 0 : i32
    return %c0_i32, %c0_i32_0 : i32, i32
  }
  func.func @transform_3(%arg0: i32, %arg1: i32) -> (i32, i32) {
    %c0_i32 = arith.constant 0 : i32
    %c0_i32_0 = arith.constant 0 : i32
    %c0_i32_1 = arith.constant 0 : i32
    return %c0_i32, %c0_i32_0 : i32, i32
  }
  func.func @transform_4(%arg0: i32, %arg1: i32) -> (i32, i32, i32, i32) {
    %c0_i32 = arith.constant 0 : i32
    %c0_i32_0 = arith.constant 0 : i32
    %c0_i32_1 = arith.constant 0 : i32
    return %arg0, %arg1, %c0_i32, %c0_i32_0 : i32, i32, i32, i32
  }
  func.func @transform_5(%arg0: i32, %arg1: i32) -> (i32, i32, i32, i32) {
    %c0_i32 = arith.constant 0 : i32
    %c0_i32_0 = arith.constant 0 : i32
    %c0_i32_1 = arith.constant 0 : i32
    return %arg0, %arg1, %c0_i32, %c0_i32_0 : i32, i32, i32, i32
  }
  func.func @transform_6(%arg0: i32, %arg1: i32) -> (i32, i32, i32, i32) {
    %c0_i32 = arith.constant 0 : i32
    %c0_i32_0 = arith.constant 0 : i32
    %c0_i32_1 = arith.constant 0 : i32
    return %arg0, %arg1, %c0_i32, %c0_i32_0 : i32, i32, i32, i32
  }
}

</mosaic_0001>

<bundles_post_ra>
// kernel: basic_block_forward.5
= control target key start
LH: loop header
LB: loop body
LE: loop exit
PB: predicated region body
PF: predicated region fallthrough
CT: control target
= control target key end

     0   :  { %vm479_vm0 = vcmask 64512   ;;  %s1416_s0 = inlined_call_operand.vmem [shape: bf16[512,128], index: 0, kind: input, shape index: {}]   ;;  %s1417_s1 = inlined_call_operand.vmem [shape: f32[1,128], index: 1, kind: input, shape index: {}]   ;;  %s1418_s2 = inlined_call_operand.vmem [shape: f32[1,128], index: 2, kind: input, shape index: {}]   ;;  %s1419_s3 = inlined_call_operand.vmem [shape: f32[512,8], index: 3, kind: input, shape index: {}]   ;;  %s1420_s4 = inlined_call_operand.vmem [shape: f32[512,8], index: 4, kind: output, shape index: {}]  }
   0x1   :  { %v551_v0 = vld [vmem:[%s1416_s0] sm:$0xff]   ;;  %v678_v4 = vld [vmem:[%s1416_s0 + $0x8] sm:$0xff]   ;;  %v679_v8 = vld [vmem:[%s1416_s0 + $0x10] sm:$0xff]  }
   0x2   :  { %v740_v1 = vld [vmem:[%s1417_s1] ss:$0 sm:$0xff]  ;;  %v552_v2 = vunpack.c.l.bf16 %v551_v0  ;;  %v553_v3 = vunpack.c.h.bf16 %v551_v0  ;;  %v556_v6 = vunpack.c.l.bf16 %v678_v4  ;;  %v557_v7 = vunpack.c.h.bf16 %v678_v4  ;;  %v680_v13 = vld [vmem:[%s1416_s0 + $0x18] sm:$0xff]   ;;  %v288_v15 = vld [vmem:[%s1419_s3 + $0x8] sm:$0xff] }
   0x3   :  { %v748_v5 = vld [vmem:[%s1418_s2] ss:$0 sm:$0xff]  ;;  %v560_v11 = vunpack.c.l.bf16 %v679_v8  ;;  %v561_v12 = vunpack.c.h.bf16 %v679_v8  ;;  %v564_v18 = vunpack.c.l.bf16 %v680_v13  ;;  %v565_v19 = vunpack.c.h.bf16 %v680_v13  ;;  %v289_v22 = vld [vmem:[%s1419_s3 + $0x10] sm:$0xff]  ;;  %v290_v23 = vld [vmem:[%s1419_s3 + $0x18] sm:$0xff] }
   0x4   :  { %v152_v9 = vmul.f32 %v552_v2, %v740_v1  ;;  %v153_v10 = vmul.f32 %v553_v3, %v740_v1  ;;  %v287_v14 = vld [vmem:[%s1419_s3] sm:$0xff]  ;;  %v154_v16 = vmul.f32 %v556_v6, %v740_v1  ;;  %v155_v17 = vmul.f32 %v557_v7, %v740_v1  ;;  %v292_v29 = vld [vmem:[%s1419_s3 + $0x28] sm:$0xff]  ;;  %v293_v36 = vld [vmem:[%s1419_s3 + $0x30] sm:$0xff] }
   0x5   :  { %v156_v24 = vmul.f32 %v560_v11, %v740_v1  ;;  %v157_v25 = vmul.f32 %v561_v12, %v740_v1  ;;  %v291_v28 = vld [vmem:[%s1419_s3 + $0x20] sm:$0xff]  ;;  %v158_v30 = vmul.f32 %v564_v18, %v740_v1  ;;  %v159_v31 = vmul.f32 %v565_v19, %v740_v1  ;;  %v294_v37 = vld [vmem:[%s1419_s3 + $0x38] sm:$0xff]  ;;  %v682_v47 = vld [vmem:[%s1416_s0 + $0x28] sm:$0xff]  }
   0x6   :  { %v223_v20 = vadd.f32 %v748_v5, %v152_v9  ;;  %v224_v21 = vadd.f32 %v748_v5, %v153_v10  ;;  %v225_v26 = vadd.f32 %v748_v5, %v154_v16  ;;  %v226_v27 = vadd.f32 %v748_v5, %v155_v17  ;;  %v681_v42 = vld [vmem:[%s1416_s0 + $0x20] sm:$0xff]   ;;  %v683_v52 = vld [vmem:[%s1416_s0 + $0x30] sm:$0xff]   ;;  %v684_v57 = vld [vmem:[%s1416_s0 + $0x38] sm:$0xff]  }
   0x7   :  { %v227_v34 = vadd.f32 %v748_v5, %v156_v24  ;;  %v228_v35 = vadd.f32 %v748_v5, %v157_v25  ;;  %v229_v40 = vadd.f32 %v748_v5, %v158_v30  ;;  %v230_v41 = vadd.f32 %v748_v5, %v159_v31  ;;  %v295_v3 = vld [vmem:[%s1419_s3 + $0x40] sm:$0xff]  ;;  %v296_v4 = vld [vmem:[%s1419_s3 + $0x48] sm:$0xff]  ;;  %v297_v12 = vld [vmem:[%s1419_s3 + $0x50] sm:$0xff] }
   0x8   :  { %v351_v32 = vadd.f32 %v287_v14, %v223_v20  ;;  %v352_v33 = vadd.f32 %v288_v15, %v224_v21  ;;  %v353_v38 = vadd.f32 %v289_v22, %v225_v26  ;;  %v354_v39 = vadd.f32 %v290_v23, %v226_v27  ;;  %v298_v13 = vld [vmem:[%s1419_s3 + $0x58] sm:$0xff]  ;;  %v299_v18 = vld [vmem:[%s1419_s3 + $0x60] sm:$0xff]  ;;  %v300_v19 = vld [vmem:[%s1419_s3 + $0x68] sm:$0xff] }
   0x9   :  { %v355_v45 = vadd.f32 %v291_v28, %v227_v34  ;;  %v356_v46 = vadd.f32 %v292_v29, %v228_v35  ;;  %v357_v50 = vadd.f32 %v293_v36, %v229_v40  ;;  %v358_v51 = vadd.f32 %v294_v37, %v230_v41  ;;  %v301_v26 = vld [vmem:[%s1419_s3 + $0x70] sm:$0xff]  ;;  %v302_v27 = vld [vmem:[%s1419_s3 + $0x78] sm:$0xff]  ;;  %v686_v37 = vld [vmem:[%s1416_s0 + $0x48] sm:$0xff]  }
   0xa   :  { %v415_v43 = vmax.f32 %v351_v32, 0.0  ;;  %v416_v44 = vmax.f32 %v352_v33, 0.0  ;;  %v417_v48 = vmax.f32 %v353_v38, 0.0  ;;  %v418_v49 = vmax.f32 %v354_v39, 0.0  ;;  %v685_v32 = vld [vmem:[%s1416_s0 + $0x40] sm:$0xff]  }
   0xb   :  { %v419_v53 = vmax.f32 %v355_v45, 0.0  ;;  %v420_v54 = vmax.f32 %v356_v46, 0.0  ;;  %v568_v55 = vunpack.c.l.bf16 %v681_v42  ;;  %v569_v56 = vunpack.c.h.bf16 %v681_v42  ;;  %v687_v42 = vld [vmem:[%s1416_s0 + $0x50] sm:$0xff]  }
   0xc   :  { %480 = vst.msk [vmem:[%s1420_s4] sm:$0xff] %vm479_vm0, %v415_v43  ;;  %481 = vst.msk [vmem:[%s1420_s4 + $0x8] sm:$0xff] %vm479_vm0, %v416_v44  ;;  %v421_v58 = vmax.f32 %v357_v50, 0.0  ;;  %v422_v59 = vmax.f32 %v358_v51, 0.0  ;;  %v572_v60 = vunpack.c.l.bf16 %v682_v47  ;;  %v573_v61 = vunpack.c.h.bf16 %v682_v47  ;;  %v688_v47 = vld [vmem:[%s1416_s0 + $0x58] sm:$0xff]  }
   0xd   :  { %482 = vst.msk [vmem:[%s1420_s4 + $0x10] sm:$0xff] %vm479_vm0, %v417_v48  ;;  %483 = vst.msk [vmem:[%s1420_s4 + $0x18] sm:$0xff] %vm479_vm0, %v418_v49  ;;  %v160_v62 = vmul.f32 %v568_v55, %v740_v1  ;;  %v161_v63 = vmul.f32 %v569_v56, %v740_v1  ;;  %v576_v0 = vunpack.c.l.bf16 %v683_v52  ;;  %v577_v2 = vunpack.c.h.bf16 %v683_v52  ;;  %v303_v56 = vld [vmem:[%s1419_s3 + $0x80] sm:$0xff] }
   0xe   :  { %484 = vst.msk [vmem:[%s1420_s4 + $0x20] sm:$0xff] %vm479_vm0, %v419_v53  ;;  %485 = vst.msk [vmem:[%s1420_s4 + $0x28] sm:$0xff] %vm479_vm0, %v420_v54  ;;  %v162_v6 = vmul.f32 %v572_v60, %v740_v1  ;;  %v163_v7 = vmul.f32 %v573_v61, %v740_v1  ;;  %v580_v8 = vunpack.c.l.bf16 %v684_v57  ;;  %v581_v9 = vunpack.c.h.bf16 %v684_v57  ;;  %v304_v57 = vld [vmem:[%s1419_s3 + $0x88] sm:$0xff] }
   0xf   :  { %486 = vst.msk [vmem:[%s1420_s4 + $0x30] sm:$0xff] %vm479_vm0, %v421_v58  ;;  %487 = vst.msk [vmem:[%s1420_s4 + $0x38] sm:$0xff] %vm479_vm0, %v422_v59  ;;  %v231_v10 = vadd.f32 %v748_v5, %v160_v62  ;;  %v232_v11 = vadd.f32 %v748_v5, %v161_v63  ;;  %v164_v14 = vmul.f32 %v576_v0, %v740_v1  ;;  %v584_v45 = vunpack.c.l.bf16 %v685_v32  ;;  %v305_v0 = vld [vmem:[%s1419_s3 + $0x90] sm:$0xff] }
  0x10   :  { %v165_v15 = vmul.f32 %v577_v2, %v740_v1  ;;  %v233_v16 = vadd.f32 %v748_v5, %v162_v6  ;;  %v234_v17 = vadd.f32 %v748_v5, %v163_v7  ;;  %v166_v20 = vmul.f32 %v580_v8, %v740_v1  ;;  %v306_v2 = vld [vmem:[%s1419_s3 + $0x98] sm:$0xff]  ;;  %v307_v8 = vld [vmem:[%s1419_s3 + $0xa0] sm:$0xff] }
  0x11   :  { %v167_v21 = vmul.f32 %v581_v9, %v740_v1  ;;  %v359_v22 = vadd.f32 %v295_v3, %v231_v10  ;;  %v360_v23 = vadd.f32 %v296_v4, %v232_v11  ;;  %v235_v24 = vadd.f32 %v748_v5, %v164_v14  ;;  %v308_v9 = vld [vmem:[%s1419_s3 + $0xa8] sm:$0xff] }
  0x12   :  { %v236_v25 = vadd.f32 %v748_v5, %v165_v15  ;;  %v361_v28 = vadd.f32 %v297_v12, %v233_v16  ;;  %v362_v29 = vadd.f32 %v298_v13, %v234_v17  ;;  %v237_v30 = vadd.f32 %v748_v5, %v166_v20  ;;  %v309_v16 = vld [vmem:[%s1419_s3 + $0xb0] sm:$0xff]  ;;  %v310_v17 = vld [vmem:[%s1419_s3 + $0xb8] sm:$0xff] }
  0x13   :  { %v238_v31 = vadd.f32 %v748_v5, %v167_v21  ;;  %v423_v33 = vmax.f32 %v359_v22, 0.0  ;;  %v424_v34 = vmax.f32 %v360_v23, 0.0  ;;  %v363_v35 = vadd.f32 %v299_v18, %v235_v24  ;;  %v689_v22 = vld [vmem:[%s1416_s0 + $0x60] sm:$0xff]  }
  0x14   :  { %v364_v36 = vadd.f32 %v300_v19, %v236_v25  ;;  %v425_v38 = vmax.f32 %v361_v28, 0.0  ;;  %v426_v39 = vmax.f32 %v362_v29, 0.0  ;;  %v365_v40 = vadd.f32 %v301_v26, %v237_v30 }
  0x15   :  { %v366_v41 = vadd.f32 %v302_v27, %v238_v31  ;;  %488 = vst.msk [vmem:[%s1420_s4 + $0x40] sm:$0xff] %vm479_vm0, %v423_v33  ;;  %489 = vst.msk [vmem:[%s1420_s4 + $0x48] sm:$0xff] %vm479_vm0, %v424_v34  ;;  %v427_v43 = vmax.f32 %v363_v35, 0.0  ;;  %v585_v46 = vunpack.c.h.bf16 %v685_v32  ;;  %v588_v50 = vunpack.c.l.bf16 %v686_v37  ;;  %v690_v27 = vld [vmem:[%s1416_s0 + $0x68] sm:$0xff]   ;;  %v691_v32 = vld [vmem:[%s1416_s0 + $0x70] sm:$0xff]  }
  0x16   :  { %v428_v44 = vmax.f32 %v364_v36, 0.0  ;;  %490 = vst.msk [vmem:[%s1420_s4 + $0x50] sm:$0xff] %vm479_vm0, %v425_v38  ;;  %491 = vst.msk [vmem:[%s1420_s4 + $0x58] sm:$0xff] %vm479_vm0, %v426_v39  ;;  %v429_v48 = vmax.f32 %v365_v40, 0.0  ;;  %v589_v51 = vunpack.c.h.bf16 %v686_v37  ;;  %v168_v52 = vmul.f32 %v584_v45, %v740_v1  ;;  %v692_v37 = vld [vmem:[%s1416_s0 + $0x78] sm:$0xff]  }
  0x17   :  { %v430_v49 = vmax.f32 %v366_v41, 0.0  ;;  %492 = vst.msk [vmem:[%s1420_s4 + $0x60] sm:$0xff] %vm479_vm0, %v427_v43  ;;  %v169_v53 = vmul.f32 %v585_v46, %v740_v1  ;;  %v592_v54 = vunpack.c.l.bf16 %v687_v42  ;;  %v593_v55 = vunpack.c.h.bf16 %v687_v42  ;;  %v311_v46 = vld [vmem:[%s1419_s3 + $0xc0] sm:$0xff] }
  0x18   :  { %493 = vst.msk [vmem:[%s1420_s4 + $0x68] sm:$0xff] %vm479_vm0, %v428_v44  ;;  %494 = vst.msk [vmem:[%s1420_s4 + $0x70] sm:$0xff] %vm479_vm0, %v429_v48  ;;  %v170_v58 = vmul.f32 %v588_v50, %v740_v1  ;;  %v171_v59 = vmul.f32 %v589_v51, %v740_v1  ;;  %v596_v60 = vunpack.c.l.bf16 %v688_v47  ;;  %v597_v61 = vunpack.c.h.bf16 %v688_v47  ;;  %v312_v47 = vld [vmem:[%s1419_s3 + $0xc8] sm:$0xff] }
  0x19   :  { %495 = vst.msk [vmem:[%s1420_s4 + $0x78] sm:$0xff] %vm479_vm0, %v430_v49  ;;  %v239_v62 = vadd.f32 %v748_v5, %v168_v52  ;;  %v240_v63 = vadd.f32 %v748_v5, %v169_v53  ;;  %v172_v3 = vmul.f32 %v592_v54, %v740_v1  ;;  %v173_v4 = vmul.f32 %v593_v55, %v740_v1  ;;  %v313_v54 = vld [vmem:[%s1419_s3 + $0xd0] sm:$0xff]  ;;  %v314_v55 = vld [vmem:[%s1419_s3 + $0xd8] sm:$0xff] }
  0x1a   :  { %v241_v6 = vadd.f32 %v748_v5, %v170_v58  ;;  %v242_v7 = vadd.f32 %v748_v5, %v171_v59  ;;  %v174_v10 = vmul.f32 %v596_v60, %v740_v1  ;;  %v175_v11 = vmul.f32 %v597_v61, %v740_v1  ;;  %v315_v60 = vld [vmem:[%s1419_s3 + $0xe0] sm:$0xff]  ;;  %v316_v61 = vld [vmem:[%s1419_s3 + $0xe8] sm:$0xff] }
  0x1b   :  { %v367_v12 = vadd.f32 %v303_v56, %v239_v62  ;;  %v368_v13 = vadd.f32 %v304_v57, %v240_v63  ;;  %v243_v14 = vadd.f32 %v748_v5, %v172_v3  ;;  %v244_v15 = vadd.f32 %v748_v5, %v173_v4 }
  0x1c   :  { %v369_v18 = vadd.f32 %v305_v0, %v241_v6  ;;  %v370_v19 = vadd.f32 %v306_v2, %v242_v7  ;;  %v245_v20 = vadd.f32 %v748_v5, %v174_v10  ;;  %v246_v21 = vadd.f32 %v748_v5, %v175_v11  ;;  %v317_v6 = vld [vmem:[%s1419_s3 + $0xf0] sm:$0xff]  ;;  %v318_v7 = vld [vmem:[%s1419_s3 + $0xf8] sm:$0xff] }
  0x1d   :  { %v431_v23 = vmax.f32 %v367_v12, 0.0  ;;  %v432_v24 = vmax.f32 %v368_v13, 0.0  ;;  %v371_v25 = vadd.f32 %v307_v8, %v243_v14  ;;  %v372_v26 = vadd.f32 %v308_v9, %v244_v15  ;;  %v693_v12 = vld [vmem:[%s1416_s0 + $0x80] sm:$0xff]  }
  0x1e   :  { %v433_v28 = vmax.f32 %v369_v18, 0.0  ;;  %v434_v29 = vmax.f32 %v370_v19, 0.0  ;;  %v373_v30 = vadd.f32 %v309_v16, %v245_v20  ;;  %v374_v31 = vadd.f32 %v310_v17, %v246_v21  ;;  %v694_v17 = vld [vmem:[%s1416_s0 + $0x88] sm:$0xff]  }
  0x1f   :  { %496 = vst.msk [vmem:[%s1420_s4 + $0x80] sm:$0xff] %vm479_vm0, %v431_v23  ;;  %497 = vst.msk [vmem:[%s1420_s4 + $0x88] sm:$0xff] %vm479_vm0, %v432_v24  ;;  %v435_v33 = vmax.f32 %v371_v25, 0.0  ;;  %v436_v34 = vmax.f32 %v372_v26, 0.0  ;;  %v600_v35 = vunpack.c.l.bf16 %v689_v22  ;;  %v601_v36 = vunpack.c.h.bf16 %v689_v22  ;;  %v695_v22 = vld [vmem:[%s1416_s0 + $0x90] sm:$0xff]  }
  0x20   :  { %498 = vst.msk [vmem:[%s1420_s4 + $0x90] sm:$0xff] %vm479_vm0, %v433_v28  ;;  %499 = vst.msk [vmem:[%s1420_s4 + $0x98] sm:$0xff] %vm479_vm0, %v434_v29  ;;  %v437_v38 = vmax.f32 %v373_v30, 0.0  ;;  %v438_v39 = vmax.f32 %v374_v31, 0.0  ;;  %v604_v40 = vunpack.c.l.bf16 %v690_v27  ;;  %v605_v41 = vunpack.c.h.bf16 %v690_v27  ;;  %v696_v27 = vld [vmem:[%s1416_s0 + $0x98] sm:$0xff]  }
  0x21   :  { %500 = vst.msk [vmem:[%s1420_s4 + $0xa0] sm:$0xff] %vm479_vm0, %v435_v33  ;;  %501 = vst.msk [vmem:[%s1420_s4 + $0xa8] sm:$0xff] %vm479_vm0, %v436_v34  ;;  %v176_v42 = vmul.f32 %v600_v35, %v740_v1  ;;  %v177_v43 = vmul.f32 %v601_v36, %v740_v1  ;;  %v608_v44 = vunpack.c.l.bf16 %v691_v32  ;;  %v609_v45 = vunpack.c.h.bf16 %v691_v32  ;;  %v319_v36 = vld [vmem:[%s1419_s3 + $0x100] sm:$0xff] }
  0x22   :  { %502 = vst.msk [vmem:[%s1420_s4 + $0xb0] sm:$0xff] %vm479_vm0, %v437_v38  ;;  %503 = vst.msk [vmem:[%s1420_s4 + $0xb8] sm:$0xff] %vm479_vm0, %v438_v39  ;;  %v178_v48 = vmul.f32 %v604_v40, %v740_v1  ;;  %v179_v49 = vmul.f32 %v605_v41, %v740_v1  ;;  %v612_v50 = vunpack.c.l.bf16 %v692_v37  ;;  %v613_v51 = vunpack.c.h.bf16 %v692_v37  ;;  %v320_v37 = vld [vmem:[%s1419_s3 + $0x108] sm:$0xff] }
  0x23   :  { %v247_v52 = vadd.f32 %v748_v5, %v176_v42  ;;  %v248_v53 = vadd.f32 %v748_v5, %v177_v43  ;;  %v180_v56 = vmul.f32 %v608_v44, %v740_v1  ;;  %v181_v57 = vmul.f32 %v609_v45, %v740_v1  ;;  %v321_v44 = vld [vmem:[%s1419_s3 + $0x110] sm:$0xff]  ;;  %v322_v45 = vld [vmem:[%s1419_s3 + $0x118] sm:$0xff] }
  0x24   :  { %v249_v58 = vadd.f32 %v748_v5, %v178_v48  ;;  %v250_v59 = vadd.f32 %v748_v5, %v179_v49  ;;  %v182_v62 = vmul.f32 %v612_v50, %v740_v1  ;;  %v183_v63 = vmul.f32 %v613_v51, %v740_v1  ;;  %v323_v50 = vld [vmem:[%s1419_s3 + $0x120] sm:$0xff]  ;;  %v324_v51 = vld [vmem:[%s1419_s3 + $0x128] sm:$0xff] }
  0x25   :  { %v375_v0 = vadd.f32 %v311_v46, %v247_v52  ;;  %v376_v2 = vadd.f32 %v312_v47, %v248_v53  ;;  %v251_v3 = vadd.f32 %v748_v5, %v180_v56  ;;  %v252_v4 = vadd.f32 %v748_v5, %v181_v57 }
  0x26   :  { %v377_v8 = vadd.f32 %v313_v54, %v249_v58  ;;  %v378_v9 = vadd.f32 %v314_v55, %v250_v59  ;;  %v253_v10 = vadd.f32 %v748_v5, %v182_v62  ;;  %v254_v11 = vadd.f32 %v748_v5, %v183_v63  ;;  %v325_v58 = vld [vmem:[%s1419_s3 + $0x130] sm:$0xff]  ;;  %v326_v59 = vld [vmem:[%s1419_s3 + $0x138] sm:$0xff] }
  0x27   :  { %v439_v13 = vmax.f32 %v375_v0, 0.0  ;;  %v440_v14 = vmax.f32 %v376_v2, 0.0  ;;  %v379_v15 = vadd.f32 %v315_v60, %v251_v3  ;;  %v380_v16 = vadd.f32 %v316_v61, %v252_v4  ;;  %v697_v0 = vld [vmem:[%s1416_s0 + $0xa0] sm:$0xff]  }
  0x28   :  { %v441_v18 = vmax.f32 %v377_v8, 0.0  ;;  %v442_v19 = vmax.f32 %v378_v9, 0.0  ;;  %v381_v20 = vadd.f32 %v317_v6, %v253_v10  ;;  %v382_v21 = vadd.f32 %v318_v7, %v254_v11  ;;  %v698_v7 = vld [vmem:[%s1416_s0 + $0xa8] sm:$0xff]  }
  0x29   :  { %504 = vst.msk [vmem:[%s1420_s4 + $0xc0] sm:$0xff] %vm479_vm0, %v439_v13  ;;  %505 = vst.msk [vmem:[%s1420_s4 + $0xc8] sm:$0xff] %vm479_vm0, %v440_v14  ;;  %v443_v23 = vmax.f32 %v379_v15, 0.0  ;;  %v444_v24 = vmax.f32 %v380_v16, 0.0  ;;  %v616_v25 = vunpack.c.l.bf16 %v693_v12  ;;  %v617_v26 = vunpack.c.h.bf16 %v693_v12  ;;  %v699_v12 = vld [vmem:[%s1416_s0 + $0xb0] sm:$0xff]  }
  0x2a   :  { %506 = vst.msk [vmem:[%s1420_s4 + $0xd0] sm:$0xff] %vm479_vm0, %v441_v18  ;;  %507 = vst.msk [vmem:[%s1420_s4 + $0xd8] sm:$0xff] %vm479_vm0, %v442_v19  ;;  %v445_v28 = vmax.f32 %v381_v20, 0.0  ;;  %v446_v29 = vmax.f32 %v382_v21, 0.0  ;;  %v620_v30 = vunpack.c.l.bf16 %v694_v17  ;;  %v621_v31 = vunpack.c.h.bf16 %v694_v17  ;;  %v700_v17 = vld [vmem:[%s1416_s0 + $0xb8] sm:$0xff]  }
  0x2b   :  { %508 = vst.msk [vmem:[%s1420_s4 + $0xe0] sm:$0xff] %vm479_vm0, %v443_v23  ;;  %509 = vst.msk [vmem:[%s1420_s4 + $0xe8] sm:$0xff] %vm479_vm0, %v444_v24  ;;  %v184_v32 = vmul.f32 %v616_v25, %v740_v1  ;;  %v185_v33 = vmul.f32 %v617_v26, %v740_v1  ;;  %v624_v34 = vunpack.c.l.bf16 %v695_v22  ;;  %v625_v35 = vunpack.c.h.bf16 %v695_v22  ;;  %v327_v26 = vld [vmem:[%s1419_s3 + $0x140] sm:$0xff] }
  0x2c   :  { %510 = vst.msk [vmem:[%s1420_s4 + $0xf0] sm:$0xff] %vm479_vm0, %v445_v28  ;;  %511 = vst.msk [vmem:[%s1420_s4 + $0xf8] sm:$0xff] %vm479_vm0, %v446_v29  ;;  %v186_v38 = vmul.f32 %v620_v30, %v740_v1  ;;  %v187_v39 = vmul.f32 %v621_v31, %v740_v1  ;;  %v628_v40 = vunpack.c.l.bf16 %v696_v27  ;;  %v629_v41 = vunpack.c.h.bf16 %v696_v27  ;;  %v328_v27 = vld [vmem:[%s1419_s3 + $0x148] sm:$0xff] }
  0x2d   :  { %v255_v42 = vadd.f32 %v748_v5, %v184_v32  ;;  %v256_v43 = vadd.f32 %v748_v5, %v185_v33  ;;  %v188_v46 = vmul.f32 %v624_v34, %v740_v1  ;;  %v189_v47 = vmul.f32 %v625_v35, %v740_v1  ;;  %v329_v34 = vld [vmem:[%s1419_s3 + $0x150] sm:$0xff]  ;;  %v330_v35 = vld [vmem:[%s1419_s3 + $0x158] sm:$0xff] }
  0x2e   :  { %v257_v48 = vadd.f32 %v748_v5, %v186_v38  ;;  %v258_v49 = vadd.f32 %v748_v5, %v187_v39  ;;  %v190_v52 = vmul.f32 %v628_v40, %v740_v1  ;;  %v191_v53 = vmul.f32 %v629_v41, %v740_v1  ;;  %v331_v40 = vld [vmem:[%s1419_s3 + $0x160] sm:$0xff]  ;;  %v332_v41 = vld [vmem:[%s1419_s3 + $0x168] sm:$0xff] }
  0x2f   :  { %v383_v54 = vadd.f32 %v319_v36, %v255_v42  ;;  %v384_v55 = vadd.f32 %v320_v37, %v256_v43  ;;  %v259_v56 = vadd.f32 %v748_v5, %v188_v46  ;;  %v260_v57 = vadd.f32 %v748_v5, %v189_v47 }
  0x30   :  { %v385_v60 = vadd.f32 %v321_v44, %v257_v48  ;;  %v386_v61 = vadd.f32 %v322_v45, %v258_v49  ;;  %v261_v62 = vadd.f32 %v748_v5, %v190_v52  ;;  %v262_v63 = vadd.f32 %v748_v5, %v191_v53  ;;  %v333_v48 = vld [vmem:[%s1419_s3 + $0x170] sm:$0xff]  ;;  %v334_v49 = vld [vmem:[%s1419_s3 + $0x178] sm:$0xff] }
  0x31   :  { %v447_v2 = vmax.f32 %v383_v54, 0.0  ;;  %v448_v3 = vmax.f32 %v384_v55, 0.0  ;;  %v387_v4 = vadd.f32 %v323_v50, %v259_v56  ;;  %v388_v6 = vadd.f32 %v324_v51, %v260_v57  ;;  %v701_v54 = vld [vmem:[%s1416_s0 + $0xc0] sm:$0xff]  }
  0x32   :  { %v449_v8 = vmax.f32 %v385_v60, 0.0  ;;  %v450_v9 = vmax.f32 %v386_v61, 0.0  ;;  %v389_v10 = vadd.f32 %v325_v58, %v261_v62  ;;  %v390_v11 = vadd.f32 %v326_v59, %v262_v63  ;;  %v702_v59 = vld [vmem:[%s1416_s0 + $0xc8] sm:$0xff]  }
  0x33   :  { %512 = vst.msk [vmem:[%s1420_s4 + $0x100] sm:$0xff] %vm479_vm0, %v447_v2  ;;  %513 = vst.msk [vmem:[%s1420_s4 + $0x108] sm:$0xff] %vm479_vm0, %v448_v3  ;;  %v451_v13 = vmax.f32 %v387_v4, 0.0  ;;  %v452_v14 = vmax.f32 %v388_v6, 0.0  ;;  %v632_v15 = vunpack.c.l.bf16 %v697_v0  ;;  %v633_v16 = vunpack.c.h.bf16 %v697_v0  ;;  %v703_v0 = vld [vmem:[%s1416_s0 + $0xd0] sm:$0xff]  }
  0x34   :  { %514 = vst.msk [vmem:[%s1420_s4 + $0x110] sm:$0xff] %vm479_vm0, %v449_v8  ;;  %515 = vst.msk [vmem:[%s1420_s4 + $0x118] sm:$0xff] %vm479_vm0, %v450_v9  ;;  %v453_v18 = vmax.f32 %v389_v10, 0.0  ;;  %v454_v19 = vmax.f32 %v390_v11, 0.0  ;;  %v636_v20 = vunpack.c.l.bf16 %v698_v7  ;;  %v637_v21 = vunpack.c.h.bf16 %v698_v7  ;;  %v704_v7 = vld [vmem:[%s1416_s0 + $0xd8] sm:$0xff]  }
  0x35   :  { %516 = vst.msk [vmem:[%s1420_s4 + $0x120] sm:$0xff] %vm479_vm0, %v451_v13  ;;  %517 = vst.msk [vmem:[%s1420_s4 + $0x128] sm:$0xff] %vm479_vm0, %v452_v14  ;;  %v192_v22 = vmul.f32 %v632_v15, %v740_v1  ;;  %v193_v23 = vmul.f32 %v633_v16, %v740_v1  ;;  %v640_v24 = vunpack.c.l.bf16 %v699_v12  ;;  %v641_v25 = vunpack.c.h.bf16 %v699_v12  ;;  %v335_v16 = vld [vmem:[%s1419_s3 + $0x180] sm:$0xff] }
  0x36   :  { %518 = vst.msk [vmem:[%s1420_s4 + $0x130] sm:$0xff] %vm479_vm0, %v453_v18  ;;  %519 = vst.msk [vmem:[%s1420_s4 + $0x138] sm:$0xff] %vm479_vm0, %v454_v19  ;;  %v194_v28 = vmul.f32 %v636_v20, %v740_v1  ;;  %v195_v29 = vmul.f32 %v637_v21, %v740_v1  ;;  %v644_v30 = vunpack.c.l.bf16 %v700_v17  ;;  %v645_v31 = vunpack.c.h.bf16 %v700_v17  ;;  %v336_v17 = vld [vmem:[%s1419_s3 + $0x188] sm:$0xff] }
  0x37   :  { %v263_v32 = vadd.f32 %v748_v5, %v192_v22  ;;  %v264_v33 = vadd.f32 %v748_v5, %v193_v23  ;;  %v196_v36 = vmul.f32 %v640_v24, %v740_v1  ;;  %v197_v37 = vmul.f32 %v641_v25, %v740_v1  ;;  %v337_v24 = vld [vmem:[%s1419_s3 + $0x190] sm:$0xff]  ;;  %v338_v25 = vld [vmem:[%s1419_s3 + $0x198] sm:$0xff] }
  0x38   :  { %v265_v38 = vadd.f32 %v748_v5, %v194_v28  ;;  %v266_v39 = vadd.f32 %v748_v5, %v195_v29  ;;  %v198_v42 = vmul.f32 %v644_v30, %v740_v1  ;;  %v199_v43 = vmul.f32 %v645_v31, %v740_v1  ;;  %v339_v30 = vld [vmem:[%s1419_s3 + $0x1a0] sm:$0xff]  ;;  %v340_v31 = vld [vmem:[%s1419_s3 + $0x1a8] sm:$0xff] }
  0x39   :  { %v391_v44 = vadd.f32 %v327_v26, %v263_v32  ;;  %v392_v45 = vadd.f32 %v328_v27, %v264_v33  ;;  %v267_v46 = vadd.f32 %v748_v5, %v196_v36  ;;  %v268_v47 = vadd.f32 %v748_v5, %v197_v37 }
  0x3a   :  { %v393_v50 = vadd.f32 %v329_v34, %v265_v38  ;;  %v394_v51 = vadd.f32 %v330_v35, %v266_v39  ;;  %v269_v52 = vadd.f32 %v748_v5, %v198_v42  ;;  %v270_v53 = vadd.f32 %v748_v5, %v199_v43  ;;  %v341_v38 = vld [vmem:[%s1419_s3 + $0x1b0] sm:$0xff]  ;;  %v342_v39 = vld [vmem:[%s1419_s3 + $0x1b8] sm:$0xff] }
  0x3b   :  { %v455_v55 = vmax.f32 %v391_v44, 0.0  ;;  %v456_v56 = vmax.f32 %v392_v45, 0.0  ;;  %v395_v57 = vadd.f32 %v331_v40, %v267_v46  ;;  %v396_v58 = vadd.f32 %v332_v41, %v268_v47  ;;  %v705_v44 = vld [vmem:[%s1416_s0 + $0xe0] sm:$0xff]  }
  0x3c   :  { %v457_v60 = vmax.f32 %v393_v50, 0.0  ;;  %v458_v61 = vmax.f32 %v394_v51, 0.0  ;;  %v397_v62 = vadd.f32 %v333_v48, %v269_v52  ;;  %v398_v63 = vadd.f32 %v334_v49, %v270_v53  ;;  %v706_v49 = vld [vmem:[%s1416_s0 + $0xe8] sm:$0xff]  }
  0x3d   :  { %520 = vst.msk [vmem:[%s1420_s4 + $0x140] sm:$0xff] %vm479_vm0, %v455_v55  ;;  %521 = vst.msk [vmem:[%s1420_s4 + $0x148] sm:$0xff] %vm479_vm0, %v456_v56  ;;  %v459_v2 = vmax.f32 %v395_v57, 0.0  ;;  %v460_v3 = vmax.f32 %v396_v58, 0.0  ;;  %v648_v4 = vunpack.c.l.bf16 %v701_v54  ;;  %v649_v6 = vunpack.c.h.bf16 %v701_v54  ;;  %v707_v54 = vld [vmem:[%s1416_s0 + $0xf0] sm:$0xff]  }
  0x3e   :  { %522 = vst.msk [vmem:[%s1420_s4 + $0x150] sm:$0xff] %vm479_vm0, %v457_v60  ;;  %523 = vst.msk [vmem:[%s1420_s4 + $0x158] sm:$0xff] %vm479_vm0, %v458_v61  ;;  %v461_v8 = vmax.f32 %v397_v62, 0.0  ;;  %v462_v9 = vmax.f32 %v398_v63, 0.0  ;;  %v652_v10 = vunpack.c.l.bf16 %v702_v59  ;;  %v653_v11 = vunpack.c.h.bf16 %v702_v59  ;;  %v708_v59 = vld [vmem:[%s1416_s0 + $0xf8] sm:$0xff]  }
  0x3f   :  { %524 = vst.msk [vmem:[%s1420_s4 + $0x160] sm:$0xff] %vm479_vm0, %v459_v2  ;;  %525 = vst.msk [vmem:[%s1420_s4 + $0x168] sm:$0xff] %vm479_vm0, %v460_v3  ;;  %v200_v12 = vmul.f32 %v648_v4, %v740_v1  ;;  %v201_v13 = vmul.f32 %v649_v6, %v740_v1  ;;  %v656_v14 = vunpack.c.l.bf16 %v703_v0  ;;  %v657_v15 = vunpack.c.h.bf16 %v703_v0  ;;  %v343_v6 = vld [vmem:[%s1419_s3 + $0x1c0] sm:$0xff] }
  0x40   :  { %526 = vst.msk [vmem:[%s1420_s4 + $0x170] sm:$0xff] %vm479_vm0, %v461_v8  ;;  %527 = vst.msk [vmem:[%s1420_s4 + $0x178] sm:$0xff] %vm479_vm0, %v462_v9  ;;  %v202_v18 = vmul.f32 %v652_v10, %v740_v1  ;;  %v203_v19 = vmul.f32 %v653_v11, %v740_v1  ;;  %v660_v20 = vunpack.c.l.bf16 %v704_v7  ;;  %v661_v21 = vunpack.c.h.bf16 %v704_v7  ;;  %v344_v7 = vld [vmem:[%s1419_s3 + $0x1c8] sm:$0xff] }
  0x41   :  { %v271_v22 = vadd.f32 %v748_v5, %v200_v12  ;;  %v272_v23 = vadd.f32 %v748_v5, %v201_v13  ;;  %v204_v26 = vmul.f32 %v656_v14, %v740_v1  ;;  %v205_v27 = vmul.f32 %v657_v15, %v740_v1  ;;  %v345_v14 = vld [vmem:[%s1419_s3 + $0x1d0] sm:$0xff]  ;;  %v346_v15 = vld [vmem:[%s1419_s3 + $0x1d8] sm:$0xff] }
  0x42   :  { %v273_v28 = vadd.f32 %v748_v5, %v202_v18  ;;  %v274_v29 = vadd.f32 %v748_v5, %v203_v19  ;;  %v206_v32 = vmul.f32 %v660_v20, %v740_v1  ;;  %v207_v33 = vmul.f32 %v661_v21, %v740_v1  ;;  %v347_v20 = vld [vmem:[%s1419_s3 + $0x1e0] sm:$0xff]  ;;  %v348_v21 = vld [vmem:[%s1419_s3 + $0x1e8] sm:$0xff] }
  0x43   :  { %v399_v34 = vadd.f32 %v335_v16, %v271_v22  ;;  %v400_v35 = vadd.f32 %v336_v17, %v272_v23  ;;  %v275_v36 = vadd.f32 %v748_v5, %v204_v26  ;;  %v276_v37 = vadd.f32 %v748_v5, %v205_v27 }
  0x44   :  { %v401_v40 = vadd.f32 %v337_v24, %v273_v28  ;;  %v402_v41 = vadd.f32 %v338_v25, %v274_v29  ;;  %v277_v42 = vadd.f32 %v748_v5, %v206_v32  ;;  %v278_v43 = vadd.f32 %v748_v5, %v207_v33  ;;  %v349_v28 = vld [vmem:[%s1419_s3 + $0x1f0] sm:$0xff]  ;;  %v350_v29 = vld [vmem:[%s1419_s3 + $0x1f8] sm:$0xff] }
  0x45   :  { %v463_v45 = vmax.f32 %v399_v34, 0.0  ;;  %v464_v46 = vmax.f32 %v400_v35, 0.0  ;;  %v403_v47 = vadd.f32 %v339_v30, %v275_v36  ;;  %v404_v48 = vadd.f32 %v340_v31, %v276_v37 }
  0x46   :  { %v465_v50 = vmax.f32 %v401_v40, 0.0  ;;  %v466_v51 = vmax.f32 %v402_v41, 0.0  ;;  %v405_v52 = vadd.f32 %v341_v38, %v277_v42  ;;  %v406_v53 = vadd.f32 %v342_v39, %v278_v43 }
  0x47   :  { %528 = vst.msk [vmem:[%s1420_s4 + $0x180] sm:$0xff] %vm479_vm0, %v463_v45  ;;  %529 = vst.msk [vmem:[%s1420_s4 + $0x188] sm:$0xff] %vm479_vm0, %v464_v46  ;;  %v467_v55 = vmax.f32 %v403_v47, 0.0  ;;  %v468_v56 = vmax.f32 %v404_v48, 0.0  ;;  %v664_v57 = vunpack.c.l.bf16 %v705_v44  ;;  %v665_v58 = vunpack.c.h.bf16 %v705_v44 }
  0x48   :  { %530 = vst.msk [vmem:[%s1420_s4 + $0x190] sm:$0xff] %vm479_vm0, %v465_v50  ;;  %531 = vst.msk [vmem:[%s1420_s4 + $0x198] sm:$0xff] %vm479_vm0, %v466_v51  ;;  %v469_v60 = vmax.f32 %v405_v52, 0.0  ;;  %v470_v61 = vmax.f32 %v406_v53, 0.0  ;;  %v668_v62 = vunpack.c.l.bf16 %v706_v49  ;;  %v669_v63 = vunpack.c.h.bf16 %v706_v49 }
  0x49   :  { %532 = vst.msk [vmem:[%s1420_s4 + $0x1a0] sm:$0xff] %vm479_vm0, %v467_v55  ;;  %533 = vst.msk [vmem:[%s1420_s4 + $0x1a8] sm:$0xff] %vm479_vm0, %v468_v56  ;;  %v208_v0 = vmul.f32 %v664_v57, %v740_v1  ;;  %v209_v2 = vmul.f32 %v665_v58, %v740_v1  ;;  %v672_v3 = vunpack.c.l.bf16 %v707_v54  ;;  %v673_v4 = vunpack.c.h.bf16 %v707_v54 }
  0x4a   :  { %534 = vst.msk [vmem:[%s1420_s4 + $0x1b0] sm:$0xff] %vm479_vm0, %v469_v60  ;;  %535 = vst.msk [vmem:[%s1420_s4 + $0x1b8] sm:$0xff] %vm479_vm0, %v470_v61  ;;  %v210_v8 = vmul.f32 %v668_v62, %v740_v1  ;;  %v211_v9 = vmul.f32 %v669_v63, %v740_v1  ;;  %v676_v10 = vunpack.c.l.bf16 %v708_v59  ;;  %v677_v11 = vunpack.c.h.bf16 %v708_v59 }
  0x4b   :  { %v279_v12 = vadd.f32 %v748_v5, %v208_v0  ;;  %v280_v13 = vadd.f32 %v748_v5, %v209_v2  ;;  %v212_v16 = vmul.f32 %v672_v3, %v740_v1  ;;  %v213_v17 = vmul.f32 %v673_v4, %v740_v1 }
  0x4c   :  { %v281_v18 = vadd.f32 %v748_v5, %v210_v8  ;;  %v282_v19 = vadd.f32 %v748_v5, %v211_v9  ;;  %v214_v22 = vmul.f32 %v676_v10, %v740_v1  ;;  %v215_v23 = vmul.f32 %v677_v11, %v740_v1 }
  0x4d   :  { %v407_v24 = vadd.f32 %v343_v6, %v279_v12  ;;  %v408_v25 = vadd.f32 %v344_v7, %v280_v13  ;;  %v283_v26 = vadd.f32 %v748_v5, %v212_v16  ;;  %v284_v27 = vadd.f32 %v748_v5, %v213_v17 }
  0x4e   :  { %v409_v30 = vadd.f32 %v345_v14, %v281_v18  ;;  %v410_v31 = vadd.f32 %v346_v15, %v282_v19  ;;  %v285_v32 = vadd.f32 %v748_v5, %v214_v22  ;;  %v286_v1 = vadd.f32 %v748_v5, %v215_v23 }
  0x4f   :  { %v471_v33 = vmax.f32 %v407_v24, 0.0  ;;  %v472_v34 = vmax.f32 %v408_v25, 0.0  ;;  %v411_v35 = vadd.f32 %v347_v20, %v283_v26  ;;  %v412_v36 = vadd.f32 %v348_v21, %v284_v27 }
  0x50   :  { %v473_v37 = vmax.f32 %v409_v30, 0.0  ;;  %v474_v38 = vmax.f32 %v410_v31, 0.0  ;;  %v413_v39 = vadd.f32 %v349_v28, %v285_v32  ;;  %v414_v40 = vadd.f32 %v350_v29, %v286_v1 }
  0x51   :  { %536 = vst.msk [vmem:[%s1420_s4 + $0x1c0] sm:$0xff] %vm479_vm0, %v471_v33  ;;  %537 = vst.msk [vmem:[%s1420_s4 + $0x1c8] sm:$0xff] %vm479_vm0, %v472_v34  ;;  %v475_v41 = vmax.f32 %v411_v35, 0.0  ;;  %v476_v5 = vmax.f32 %v412_v36, 0.0 }
  0x52   :  { %538 = vst.msk [vmem:[%s1420_s4 + $0x1d0] sm:$0xff] %vm479_vm0, %v473_v37  ;;  %539 = vst.msk [vmem:[%s1420_s4 + $0x1d8] sm:$0xff] %vm479_vm0, %v474_v38  ;;  %v477_v42 = vmax.f32 %v413_v39, 0.0  ;;  %v478_v43 = vmax.f32 %v414_v40, 0.0 }
  0x53   :  { %540 = vst.msk [vmem:[%s1420_s4 + $0x1e0] sm:$0xff] %vm479_vm0, %v475_v41  ;;  %541 = vst.msk [vmem:[%s1420_s4 + $0x1e8] sm:$0xff] %vm479_vm0, %v476_v5 }
  0x54   :  { %542 = vst.msk [vmem:[%s1420_s4 + $0x1f0] sm:$0xff] %vm479_vm0, %v477_v42  ;;  %543 = vst.msk [vmem:[%s1420_s4 + $0x1f8] sm:$0xff] %vm479_vm0, %v478_v43 }

// kernel: basic_block_forward.4
= control target key start
LH: loop header
LB: loop body
LE: loop exit
PB: predicated region body
PF: predicated region fallthrough
CT: control target
= control target key end

     0   :  { %s5359_s21 = smov 0   ;;  %s5361_s22 = smov 0   ;;  %s6573_s0 = inlined_call_operand.vmem [shape: bf16[2,16,16,128], index: 0, kind: input, shape index: {}]   ;;  %s6574_s1 = inlined_call_operand.vmem [shape: bf16[9,128,128], index: 1, kind: input, shape index: {}]   ;;  %s6575_s2 = inlined_call_operand.vmem [shape: f32[1,128], index: 2, kind: input, shape index: {}]   ;;  %s6576_s3 = inlined_call_operand.vmem [shape: f32[1,128], index: 3, kind: input, shape index: {}]   ;;  %s6577_s4 = inlined_call_operand.vmem [shape: bf16[2,16,16,128], index: 4, kind: output, shape index: {0}]   ;;  %s6578_s5 = inlined_call_operand.vmem [shape: f32[2,2,1,128], index: 5, kind: output, shape index: {1}]   ;;  %s6579_s6 = inlined_call_operand.vmem [shape: f32[2,2,1,128], index: 6, kind: output, shape index: {2}]  }
   0x1   :  { %s5363_s23 = smov 0   ;;  %s5365_s24 = smov 0  }
   0x2   :  { %s5367_s25 = smov 0  }
   0x3 LB: > { %s26_s26 = sadd.s32 1, %s5312_s23  ;;  %s29_s27 = sadd.s32 1, %s5316_s24  ;;  %s5320_s25 = sphi %s5367_s25, %s17_s25   ;;  %s5316_s24 = sphi %s5365_s24, %s6604_s24   ;;  %s5312_s23 = sphi %s5363_s23, %s6603_s23   ;;  %s5308_s22 = sphi %s5361_s22, %s6602_s22   ;;  %s5304_s21 = sphi %s5359_s21, %s6601_s21  }
   0x4   : > { %p27_p0 = scmp.ge.s32.totalorder %s26_s26, 2  ;;  %p4065_p1 = scmp.ge.s32.totalorder %s5320_s25, 1 }
   0x5   : > { %p235_p2 = scmp.lt.s32.totalorder %s5320_s25, 5 }
   0x6   : > { %s6606_s26 = smov (%p27_p0, %s26_s26), 0  ;;  %s6608_s27 = smov (!%p27_p0, %s29_s27), %s5316_s24 }
   0x7   : > { %p236_p3 = pnand %p4065_p1, %p235_p2  ;;  %p31_p4 = scmp.ge.s32.totalorder %s6608_s27, 2 }
   0x9   : > { %s6610_s27 = smov (%p31_p4, %s6608_s27), 0  ;;  %239 = sbr.rel (%p236_p3) target bundleno = 597 (0x255), region = 36 }
  0x10   : > { %vm316_vm0 = vcmask 1040384   ;;  %vm317_vm1 = vsmask.f32 256  ;;  %v322_v0 = vld [vmem:[#allocation2 + $0xc] sm:$0x1]  ;;  %p284_p5 = scmp.lt.s32.totalorder %s5308_s22, 1 }
  0x11   : > { %vm5393_vm2 = vmand %vm316_vm0, %vm317_vm1  ;;  %v325_v2 = vld [vmem:[#allocation2 + $0x18] sm:$0x1]  ;;  %v328_v3 = vld [vmem:[#allocation2 + $0x24] sm:$0x1]  ;;  %vm349_vm3 = vsmask.f32 7938 }
  0x12   : > { %v323_v4 = vsel %vm5393_vm2, 0, %v322_v0  ;;  %v326_v5 = vsel %vm5393_vm2, 0, %v325_v2  ;;  %v329_v6 = vsel %vm5393_vm2, 0, %v328_v3  ;;  %v331_v7 = vld [vmem:[#allocation2 + $0x30] sm:$0x1]  ;;  %s6612_s22 = smov (!%p284_p5, %s5308_s22), 1  ;;  %vm5409_vm4 = vmand %vm316_vm0, %vm349_vm3 }
  0x13   : > { %324 = vst [vmem:[#allocation2 + $0xc] sm:$0x1] %v323_v4  ;;  %327 = vst [vmem:[#allocation2 + $0x18] sm:$0x1] %v326_v5  ;;  %v332_v8 = vsel %vm5393_vm2, 0, %v331_v7  ;;  %s5414_s28 = sshll.u32 %s5304_s21, 3 }
  0x14   : > { %330 = vst [vmem:[#allocation2 + $0x24] sm:$0x1] %v329_v6  ;;  %v334_v9 = vld [vmem:[#allocation2 + $0x3c] sm:$0x1]  ;;  %v337_v10 = vld [vmem:[#allocation2 + $0x48] sm:$0x1] }
  0x15   : > { %333 = vst [vmem:[#allocation2 + $0x30] sm:$0x1] %v332_v8  ;;  %v335_v12 = vsel %vm5393_vm2, 0, %v334_v9  ;;  %v338_v13 = vsel %vm5393_vm2, 0, %v337_v10  ;;  %v340_v14 = vld [vmem:[#allocation2 + $0x54] sm:$0x1] }
  0x16   : > { %v343_v15 = vld [vmem:[#allocation2 + $0x60] sm:$0x1]  ;;  %336 = vst [vmem:[#allocation2 + $0x3c] sm:$0x1] %v335_v12  ;;  %339 = vst [vmem:[#allocation2 + $0x48] sm:$0x1] %v338_v13 }
  0x17   : > { %v341_v16 = vsel %vm5393_vm2, 0, %v340_v14  ;;  %v344_v17 = vsel %vm5393_vm2, 0, %v343_v15  ;;  %v354_v18 = vld [vmem:[#allocation2 + $0x14] sm:$0x1]  ;;  %v357_v19 = vld [vmem:[#allocation2 + $0x20] sm:$0x1] }
  0x18   : > { %342 = vst [vmem:[#allocation2 + $0x54] sm:$0x1] %v341_v16  ;;  %345 = vst [vmem:[#allocation2 + $0x60] sm:$0x1] %v344_v17  ;;  %v355_v20 = vsel %vm5409_vm4, 0, %v354_v18  ;;  %v358_v21 = vsel %vm5409_vm4, 0, %v357_v19 }
  0x19   : > { %v360_v22 = vld [vmem:[#allocation2 + $0x2c] sm:$0x1]  ;;  %v363_v23 = vld [vmem:[#allocation2 + $0x38] sm:$0x1]  ;;  %356 = vst [vmem:[#allocation2 + $0x14] sm:$0x1] %v355_v20 }
  0x1a   : > { %359 = vst [vmem:[#allocation2 + $0x20] sm:$0x1] %v358_v21  ;;  %v361_v24 = vsel %vm5409_vm4, 0, %v360_v22  ;;  %v364_v25 = vsel %vm5409_vm4, 0, %v363_v23  ;;  %v366_v26 = vld [vmem:[#allocation2 + $0x44] sm:$0x1] }
  0x1b   : > { %v369_v27 = vld [vmem:[#allocation2 + $0x50] sm:$0x1]  ;;  %362 = vst [vmem:[#allocation2 + $0x2c] sm:$0x1] %v361_v24  ;;  %365 = vst [vmem:[#allocation2 + $0x38] sm:$0x1] %v364_v25 }
  0x1c   : > { %v367_v28 = vsel %vm5409_vm4, 0, %v366_v26  ;;  %v370_v29 = vsel %vm5409_vm4, 0, %v369_v27  ;;  %v372_v30 = vld [vmem:[#allocation2 + $0x5c] sm:$0x1]  ;;  %v375_v31 = vld [vmem:[#allocation2 + $0x68] sm:$0x1] }
  0x1d   : > { %368 = vst [vmem:[#allocation2 + $0x44] sm:$0x1] %v367_v28  ;;  %371 = vst [vmem:[#allocation2 + $0x50] sm:$0x1] %v370_v29  ;;  %v373_v32 = vsel %vm5409_vm4, 0, %v372_v30  ;;  %v376_v33 = vsel %vm5409_vm4, 0, %v375_v31 }
  0x1e   : > { %v319_v34 = vld [vmem:[#allocation2] sm:$0x1]  ;;  %v346_v35 = vld [vmem:[#allocation2 + $0x6c] sm:$0x1]  ;;  %374 = vst [vmem:[#allocation2 + $0x5c] sm:$0x1] %v373_v32 }
  0x1f   : > { %377 = vst [vmem:[#allocation2 + $0x68] sm:$0x1] %v376_v33  ;;  %v320_v36 = vsel %vm5393_vm2, 0, %v319_v34  ;;  %v347_v37 = vsel %vm5393_vm2, 0, %v346_v35  ;;  %v351_v38 = vld [vmem:[#allocation2 + $0x8] sm:$0x1] }
  0x20   : > { %v378_v39 = vld [vmem:[#allocation2 + $0x74] sm:$0x1]  ;;  %321 = vst [vmem:[#allocation2] sm:$0x1] %v320_v36  ;;  %348 = vst [vmem:[#allocation2 + $0x6c] sm:$0x1] %v347_v37 }
  0x21   : > { %v352_v40 = vsel %vm5409_vm4, 0, %v351_v38  ;;  %v379_v41 = vsel %vm5409_vm4, 0, %v378_v39  ;;  %s4428_s29 = sshll.u32 %s6612_s22, 7  ;;  %p292_p6 = scmp.lt.s32.totalorder %s5414_s28, 15  ;;  %v5465_v42 = vld [vmem:[%s6575_s2] ss:$0 sm:$0xff] }
  0x22   : > { %353 = vst [vmem:[#allocation2 + $0x8] sm:$0x1] %v352_v40  ;;  %380 = vst [vmem:[#allocation2 + $0x74] sm:$0x1] %v379_v41  ;;  %s5453_s8 = scalar_lea.vmem %s6573_s0, %s4428_s29  ;;  %s4070_s9 = sshll.u32 %s6612_s22, 5  ;;  %vm689_vm5 = vcmask 1043456  }
  0x23   : > { %s293_s10 = scalar_select %p292_p6, %s5414_s28, 15  ;;  %v5483_v51 = vld [vmem:[%s6576_s3] ss:$0 sm:$0xff]  ;;  %vm526_vm6 = vsmask.f32 4368  ;;  %vm5517_vm7 = vmand %vm689_vm5, %vm349_vm3 }
  0x24   : > { %p302_p7 = scmp.lt.s32.totalorder %s5304_s21, 1  ;;  %s4430_s12 = sshll.u32 %s5304_s21, 6  ;;  %v691_v35 = vld [vmem:[#allocation2 + $0xc] sm:$0xf]  ;;  %vm5523_vm8 = vmor %vm317_vm1, %vm526_vm6  ;;  %v695_v40 = vld [vmem:[#allocation2 + $0x14] sm:$0x1] }
  0x25   : > { %s4069_s11 = sshll.u32 %s293_s10, 1  ;;  %s5460_s14 = scalar_lea.vmem %s5453_s8, %s4430_s12 }
  0x26   : > { %s296_s13 = sadd.s32 %s4070_s9, %s4069_s11  ;;  %v4470_v43 = vld [vmem:[%s5460_s14] sm:$0xff]   ;;  %v4549_v44 = vld [vmem:[%s5460_s14 + $0x8] sm:$0xff]   ;;  %v4550_v45 = vld [vmem:[%s5460_s14 + $0x10] sm:$0xff]   ;;  %s4072_s29 = sshll.u32 %s6612_s22, 1 }
  0x27   : > { %s4071_s17 = sshll.u32 %s296_s13, 2  ;;  %v4471_v46 = vunpack.c.l.bf16 %v4470_v43  ;;  %v4472_v47 = vunpack.c.h.bf16 %v4470_v43  ;;  %v4475_v48 = vunpack.c.l.bf16 %v4549_v44  ;;  %v4476_v49 = vunpack.c.h.bf16 %v4549_v44  ;;  %v4551_v50 = vld [vmem:[%s5460_s14 + $0x18] sm:$0xff]   ;;  %p4095_p8 = scmp.ne.s32.totalorder %s5304_s21, 0 }
  0x28   : > { %s5473_s20 = scalar_lea.vmem %s6577_s4, %s4071_s17  ;;  %v4479_v52 = vunpack.c.l.bf16 %v4550_v45  ;;  %v4480_v53 = vunpack.c.h.bf16 %v4550_v45  ;;  %v4483_v54 = vunpack.c.l.bf16 %v4551_v50  ;;  %v4484_v55 = vunpack.c.h.bf16 %v4551_v50  ;;  %v698_v50 = vld [vmem:[#allocation2 + $0x18] sm:$0xf] }
  0x29   : > { %s303_s30 = scalar_select %p302_p7, %s5304_s21, 1  ;;  %v423_v56 = vmul.f32 %v4471_v46, %v5465_v42  ;;  %v424_v57 = vmul.f32 %v4472_v47, %v5465_v42  ;;  %v425_v58 = vmul.f32 %v4475_v48, %v5465_v42  ;;  %v426_v59 = vmul.f32 %v4476_v49, %v5465_v42 }
  0x2a   : > { %v427_v60 = vmul.f32 %v4479_v52, %v5465_v42  ;;  %v428_v61 = vmul.f32 %v4480_v53, %v5465_v42  ;;  %v429_v62 = vmul.f32 %v4483_v54, %v5465_v42  ;;  %v430_v63 = vmul.f32 %v4484_v55, %v5465_v42  ;;  %v702_v52 = vld [vmem:[#allocation2 + $0x20] sm:$0x1] }
  0x2b   : > { %s5489_s22 = sadd.s32 %s4072_s29, %s303_s30  ;;  %v446_v0 = vadd.f32 %v5483_v51, %v423_v56  ;;  %v447_v2 = vadd.f32 %v5483_v51, %v424_v57  ;;  %v448_v3 = vadd.f32 %v5483_v51, %v425_v58  ;;  %v449_v4 = vadd.f32 %v5483_v51, %v426_v59 }
  0x2c   : > { %s306_s12 = scalar_lea.vmem %s6578_s5, %s5489_s22  ;;  %s313_s16 = scalar_lea.vmem %s6579_s6, %s5489_s22  ;;  %v450_v5 = vadd.f32 %v5483_v51, %v427_v60  ;;  %v451_v6 = vadd.f32 %v5483_v51, %v428_v61  ;;  %v452_v7 = vadd.f32 %v5483_v51, %v429_v62  ;;  %v453_v8 = vadd.f32 %v5483_v51, %v430_v63 }
  0x2d   : > { %v462_v9 = vmax.f32 %v446_v0, 0.0  ;;  %v463_v10 = vmax.f32 %v447_v2, 0.0  ;;  %v464_v11 = vmax.f32 %v448_v3, 0.0  ;;  %v465_v12 = vmax.f32 %v449_v4, 0.0  ;;  %v705_v0 = vld [vmem:[#allocation2 + $0x24] sm:$0xf] }
  0x2e   : > { %v466_v13 = vmax.f32 %v450_v5, 0.0  ;;  %v467_v14 = vmax.f32 %v451_v6, 0.0  ;;  %v468_v15 = vmax.f32 %v452_v7, 0.0  ;;  %v469_v16 = vmax.f32 %v453_v8, 0.0  ;;  %v4552_v3 = vld [vmem:[%s5460_s14 + $0x20] sm:$0xff]  }
  0x2f   : > { %v4431_v17 = vpack.c.bf16 %v462_v9, %v462_v9  ;;  %v4432_v18 = vpack.c.bf16 %v463_v10, %v463_v10  ;;  %v4433_v19 = vpack.c.bf16 %v464_v11, %v464_v11  ;;  %v4434_v20 = vpack.c.bf16 %v465_v12, %v465_v12  ;;  %v709_v6 = vld [vmem:[#allocation2 + $0x2c] sm:$0x1] }
  0x30   : > { %v4435_v21 = vpack.c.bf16 %v466_v13, %v466_v13  ;;  %v4436_v22 = vpack.c.bf16 %v467_v14, %v467_v14  ;;  %v5511_v23 = vpack.c.bf16 %v468_v15, %v468_v15  ;;  %v5513_v24 = vpack.c.bf16 %v469_v16, %v469_v16  ;;  %v4553_v9 = vld [vmem:[%s5460_s14 + $0x28] sm:$0xff]  }
  0x31   : > { %v529_v25 = vshrl.u32 %v4431_v17, 16  ;;  %v532_v26 = vshll.u32 %v4431_v17, 16  ;;  %v537_v27 = vshrl.u32 %v4432_v18, 16  ;;  %v540_v28 = vshll.u32 %v4432_v18, 16 }
  0x32   : > { %v546_v29 = vshrl.u32 %v4433_v19, 16  ;;  %v549_v30 = vshll.u32 %v4433_v19, 16  ;;  %v554_v31 = vshrl.u32 %v4434_v20, 16  ;;  %v557_v32 = vshll.u32 %v4434_v20, 16  ;;  %v712_v20 = vld [vmem:[#allocation2 + $0x30] sm:$0xf] }
  0x33   : > { %v531_v33 = vrot.slane %v529_v25, 7  ;;  %v539_v36 = vrot.slane %v537_v27, 7  ;;  %v563_v37 = vshrl.u32 %v4435_v21, 16  ;;  %v566_v38 = vshll.u32 %v4435_v21, 16 }
  0x34   : > { %v548_v41 = vrot.slane %v546_v29, 7  ;;  %v556_v43 = vrot.slane %v554_v31, 7  ;;  %v571_v44 = vshrl.u32 %v4436_v22, 16  ;;  %v574_v45 = vshll.u32 %v4436_v22, 16 }
  0x35   : > { %v534_v46 = vor.u32 %v532_v26, %v531_v33  ;;  %v535_v47 = vrot.slane %v531_v33, 4  ;;  %v542_v48 = vor.u32 %v540_v28, %v539_v36  ;;  %v544_v49 = vrot.slane %v539_v36, 4  ;;  %v716_v26 = vld [vmem:[#allocation2 + $0x38] sm:$0x1] }
  0x36   : > { %v551_v53 = vor.u32 %v549_v30, %v548_v41  ;;  %v552_v54 = vrot.slane %v548_v41, 4  ;;  %v559_v55 = vor.u32 %v557_v32, %v556_v43  ;;  %v561_v56 = vrot.slane %v556_v43, 4 }
  0x37   : > { %v692_v57 = vsel %vm5517_vm7, %v534_v46, %v691_v35  ;;  %v543_v58 = vsel %vm5523_vm8, %v535_v47, %v542_v48  ;;  %v696_v59 = vsel %vm5393_vm2, %v544_v49, %v695_v40  ;;  %v565_v60 = vrot.slane %v563_v37, 7 }
  0x38   : > { %693 = vst [vmem:[#allocation2 + $0xc] sm:$0xf] %v692_v57  ;;  %694 = vst [vmem:[#allocation2 + $0x10] sm:$0xf] %v543_v58  ;;  %v699_v61 = vsel %vm5517_vm7, %v551_v53, %v698_v50  ;;  %v560_v62 = vsel %vm5523_vm8, %v552_v54, %v559_v55  ;;  %v703_v63 = vsel %vm5393_vm2, %v561_v56, %v702_v52  ;;  %v573_v2 = vrot.slane %v571_v44, 7 }
  0x39   : > { %697 = vst [vmem:[#allocation2 + $0x14] sm:$0x1] %v696_v59  ;;  %700 = vst [vmem:[#allocation2 + $0x18] sm:$0xf] %v699_v61  ;;  %v568_v4 = vor.u32 %v566_v38, %v565_v60  ;;  %v569_v5 = vrot.slane %v565_v60, 4  ;;  %v580_v7 = vshrl.u32 %v5511_v23, 16  ;;  %v4487_v16 = vunpack.c.l.bf16 %v4552_v3 }
  0x3a   : > { %701 = vst [vmem:[#allocation2 + $0x1c] sm:$0xf] %v560_v62  ;;  %704 = vst [vmem:[#allocation2 + $0x20] sm:$0x1] %v703_v63  ;;  %v583_v8 = vshll.u32 %v5511_v23, 16  ;;  %v576_v10 = vor.u32 %v574_v45, %v573_v2  ;;  %v578_v11 = vrot.slane %v573_v2, 4  ;;  %v4488_v17 = vunpack.c.h.bf16 %v4552_v3 }
  0x3b   : > { %v588_v12 = vshrl.u32 %v5513_v24, 16  ;;  %v591_v13 = vshll.u32 %v5513_v24, 16  ;;  %v706_v14 = vsel %vm5517_vm7, %v568_v4, %v705_v0  ;;  %v582_v15 = vrot.slane %v580_v7, 7  ;;  %v4554_v23 = vld [vmem:[%s5460_s14 + $0x30] sm:$0xff]   ;;  %v4555_v38 = vld [vmem:[%s5460_s14 + $0x38] sm:$0xff]  }
  0x3c   : > { %707 = vst [vmem:[#allocation2 + $0x24] sm:$0xf] %v706_v14  ;;  %v577_v18 = vsel %vm5523_vm8, %v569_v5, %v576_v10  ;;  %v710_v19 = vsel %vm5393_vm2, %v578_v11, %v709_v6  ;;  %v4491_v22 = vunpack.c.l.bf16 %v4553_v9  ;;  %v431_v27 = vmul.f32 %v4487_v16, %v5465_v42 }
  0x3d   : > { %v590_v21 = vrot.slane %v588_v12, 7  ;;  %708 = vst [vmem:[#allocation2 + $0x28] sm:$0xf] %v577_v18  ;;  %711 = vst [vmem:[#allocation2 + $0x2c] sm:$0x1] %v710_v19  ;;  %v585_v24 = vor.u32 %v583_v8, %v582_v15  ;;  %v586_v25 = vrot.slane %v582_v15, 4  ;;  %v432_v28 = vmul.f32 %v4488_v17, %v5465_v42 }
  0x3e   : > { %v433_v31 = vmul.f32 %v4491_v22, %v5465_v42  ;;  %v4492_v32 = vunpack.c.h.bf16 %v4553_v9  ;;  %v454_v35 = vadd.f32 %v5483_v51, %v431_v27  ;;  %v4495_v37 = vunpack.c.l.bf16 %v4554_v23  ;;  %v719_v8 = vld [vmem:[#allocation2 + $0x3c] sm:$0xf]  ;;  %v723_v12 = vld [vmem:[#allocation2 + $0x44] sm:$0x1] }
  0x3f   : > { %v593_v29 = vor.u32 %v591_v13, %v590_v21  ;;  %v595_v30 = vrot.slane %v590_v21, 4  ;;  %v713_v33 = vsel %vm5517_vm7, %v585_v24, %v712_v20  ;;  %v455_v36 = vadd.f32 %v5483_v51, %v432_v28  ;;  %v726_v20 = vld [vmem:[#allocation2 + $0x48] sm:$0xf]  ;;  %v730_v28 = vld [vmem:[#allocation2 + $0x50] sm:$0x1] }
  0x40   : > { %714 = vst [vmem:[#allocation2 + $0x30] sm:$0xf] %v713_v33  ;;  %v456_v43 = vadd.f32 %v5483_v51, %v433_v31  ;;  %v434_v44 = vmul.f32 %v4492_v32, %v5465_v42  ;;  %v470_v45 = vmax.f32 %v454_v35, 0.0  ;;  %v435_v47 = vmul.f32 %v4495_v37, %v5465_v42  ;;  %v733_v35 = vld [vmem:[#allocation2 + $0x54] sm:$0xf] }
  0x41   : > { %v594_v40 = vsel %vm5523_vm8, %v586_v25, %v593_v29  ;;  %v717_v41 = vsel %vm5393_vm2, %v595_v30, %v716_v26  ;;  %v471_v46 = vmax.f32 %v455_v36, 0.0  ;;  %v4496_v48 = vunpack.c.h.bf16 %v4554_v23 }
  0x42   : > { %715 = vst [vmem:[#allocation2 + $0x34] sm:$0xf] %v594_v40  ;;  %718 = vst [vmem:[#allocation2 + $0x38] sm:$0x1] %v717_v41  ;;  %v472_v49 = vmax.f32 %v456_v43, 0.0  ;;  %v457_v50 = vadd.f32 %v5483_v51, %v434_v44  ;;  %v4499_v52 = vunpack.c.l.bf16 %v4555_v38  ;;  %v4500_v53 = vunpack.c.h.bf16 %v4555_v38 }
  0x43   : > { %v4439_v54 = vpack.c.bf16 %v470_v45, %v470_v45  ;;  %v4440_v55 = vpack.c.bf16 %v471_v46, %v471_v46  ;;  %v458_v56 = vadd.f32 %v5483_v51, %v435_v47  ;;  %v436_v57 = vmul.f32 %v4496_v48, %v5465_v42 }
  0x44   : > { %v4441_v58 = vpack.c.bf16 %v472_v49, %v472_v49  ;;  %v473_v59 = vmax.f32 %v457_v50, 0.0  ;;  %v437_v60 = vmul.f32 %v4499_v52, %v5465_v42  ;;  %v438_v61 = vmul.f32 %v4500_v53, %v5465_v42 }
  0x45   : > { %v597_v62 = vshrl.u32 %v4439_v54, 16  ;;  %v600_v63 = vshll.u32 %v4439_v54, 16  ;;  %v605_v0 = vshrl.u32 %v4440_v55, 16  ;;  %v608_v2 = vshll.u32 %v4440_v55, 16 }
  0x46   : > { %v614_v3 = vshrl.u32 %v4441_v58, 16  ;;  %v617_v4 = vshll.u32 %v4441_v58, 16  ;;  %v4442_v5 = vpack.c.bf16 %v473_v59, %v473_v59  ;;  %v474_v6 = vmax.f32 %v458_v56, 0.0  ;;  %v737_v56 = vld [vmem:[#allocation2 + $0x5c] sm:$0x1] }
  0x47   : > { %v599_v7 = vrot.slane %v597_v62, 7  ;;  %v607_v9 = vrot.slane %v605_v0, 7  ;;  %v459_v10 = vadd.f32 %v5483_v51, %v436_v57  ;;  %v460_v11 = vadd.f32 %v5483_v51, %v437_v60  ;;  %v740_v57 = vld [vmem:[#allocation2 + $0x60] sm:$0xf] }
  0x48   : > { %v616_v13 = vrot.slane %v614_v3, 7  ;;  %v622_v14 = vshrl.u32 %v4442_v5, 16  ;;  %v625_v15 = vshll.u32 %v4442_v5, 16  ;;  %v4443_v42 = vpack.c.bf16 %v474_v6, %v474_v6  ;;  %v744_v5 = vld [vmem:[#allocation2 + $0x68] sm:$0x1] }
  0x49   : > { %v602_v16 = vor.u32 %v600_v63, %v599_v7  ;;  %v603_v17 = vrot.slane %v599_v7, 4  ;;  %v610_v18 = vor.u32 %v608_v2, %v607_v9  ;;  %v612_v19 = vrot.slane %v607_v9, 4 }
  0x4a   : > { %v619_v21 = vor.u32 %v617_v4, %v616_v13  ;;  %v620_v22 = vrot.slane %v616_v13, 4  ;;  %v624_v23 = vrot.slane %v622_v14, 7  ;;  %v631_v24 = vshrl.u32 %v4443_v42, 16 }
  0x4b   : > { %v720_v25 = vsel %vm5517_vm7, %v602_v16, %v719_v8  ;;  %v611_v26 = vsel %vm5523_vm8, %v603_v17, %v610_v18  ;;  %v724_v27 = vsel %vm5393_vm2, %v612_v19, %v723_v12  ;;  %v634_v29 = vshll.u32 %v4443_v42, 16 }
  0x4c   : > { %721 = vst [vmem:[#allocation2 + $0x3c] sm:$0xf] %v720_v25  ;;  %722 = vst [vmem:[#allocation2 + $0x40] sm:$0xf] %v611_v26  ;;  %v727_v30 = vsel %vm5517_vm7, %v619_v21, %v726_v20  ;;  %v627_v31 = vor.u32 %v625_v15, %v624_v23  ;;  %v629_v32 = vrot.slane %v624_v23, 4  ;;  %v633_v33 = vrot.slane %v631_v24, 7 }
  0x4d   : > { %725 = vst [vmem:[#allocation2 + $0x44] sm:$0x1] %v724_v27  ;;  %728 = vst [vmem:[#allocation2 + $0x48] sm:$0xf] %v727_v30  ;;  %v475_v36 = vmax.f32 %v459_v10, 0.0  ;;  %v476_v37 = vmax.f32 %v460_v11, 0.0  ;;  %v461_v38 = vadd.f32 %v5483_v51, %v438_v61 }
  0x4e   : > { %v628_v40 = vsel %vm5523_vm8, %v620_v22, %v627_v31  ;;  %v731_v41 = vsel %vm5393_vm2, %v629_v32, %v730_v28  ;;  %v636_v43 = vor.u32 %v634_v29, %v633_v33  ;;  %v637_v53 = vrot.slane %v633_v33, 4 }
  0x4f   : > { %729 = vst [vmem:[#allocation2 + $0x4c] sm:$0xf] %v628_v40  ;;  %732 = vst [vmem:[#allocation2 + $0x50] sm:$0x1] %v731_v41  ;;  %v4444_v44 = vpack.c.bf16 %v475_v36, %v475_v36  ;;  %v4445_v45 = vpack.c.bf16 %v476_v37, %v476_v37  ;;  %v477_v46 = vmax.f32 %v461_v38, 0.0  ;;  %v5322_v10 = vmov (!%p4095_p8), 0  }
  0x50   : > { %v734_v47 = vsel %vm5517_vm7, %v636_v43, %v733_v35  ;;  %751 = vst [vmem:[#allocation2] sm:$0xf] (!%p4095_p8), %v5322_v10  ;;  %752 = vst [vmem:[#allocation2 + $0x4] sm:$0xf] (!%p4095_p8), %v5322_v10 }
  0x51   : > { %735 = vst [vmem:[#allocation2 + $0x54] sm:$0xf] %v734_v47  ;;  %v639_v48 = vshrl.u32 %v4444_v44, 16  ;;  %v642_v49 = vshll.u32 %v4444_v44, 16  ;;  %v648_v50 = vshrl.u32 %v4445_v45, 16  ;;  %v651_v51 = vshll.u32 %v4445_v45, 16 }
  0x52   : > { %v4446_v52 = vpack.c.bf16 %v477_v46, %v477_v46  ;;  %753 = vst [vmem:[#allocation2 + $0x8] sm:$0x1] (!%p4095_p8), %v5322_v10 }
  0x53   : > { %v641_v54 = vrot.slane %v639_v48, 7  ;;  %v650_v55 = vrot.slane %v648_v50, 7 }
  0x54   : > { %v656_v58 = vshrl.u32 %v4446_v52, 16  ;;  %v659_v59 = vshll.u32 %v4446_v52, 16 }
  0x55   : > { %v644_v60 = vor.u32 %v642_v49, %v641_v54  ;;  %v646_v61 = vrot.slane %v641_v54, 4  ;;  %v653_v62 = vor.u32 %v651_v51, %v650_v55  ;;  %v654_v63 = vrot.slane %v650_v55, 4  ;;  %750 = sbr.rel (%p4095_p8) target bundleno = 92 (0x5c), region = 40 }
  0x56   : > { %v658_v0 = vrot.slane %v656_v58, 7 }
  0x57   : > { %v645_v2 = vsel %vm5523_vm8, %v637_v53, %v644_v60  ;;  %v738_v3 = vsel %vm5393_vm2, %v646_v61, %v737_v56  ;;  %v741_v4 = vsel %vm5517_vm7, %v653_v62, %v740_v57 }
  0x58   : > { %736 = vst [vmem:[#allocation2 + $0x58] sm:$0xf] %v645_v2  ;;  %739 = vst [vmem:[#allocation2 + $0x5c] sm:$0x1] %v738_v3  ;;  %v661_v6 = vor.u32 %v659_v59, %v658_v0  ;;  %v663_v7 = vrot.slane %v658_v0, 4 }
  0x59   : > { %742 = vst [vmem:[#allocation2 + $0x60] sm:$0xf] %v741_v4 }
  0x5a   : > { %v662_v8 = vsel %vm5523_vm8, %v654_v63, %v661_v6  ;;  %v745_v9 = vsel %vm5393_vm2, %v663_v7, %v744_v5 }
  0x5b   : > { %743 = vst [vmem:[#allocation2 + $0x64] sm:$0xf] %v662_v8  ;;  %746 = vst [vmem:[#allocation2 + $0x68] sm:$0x1] %v745_v9 }
  0x5c PF: > { %p4096_p9 = scmp.le.s32.totalorder %s5304_s21, 0 }
  0x5d   : > { %s4097_s17 = sadd.s32 (!%p4096_p9), 4294967295, %s5414_s28  ;;  %v4100_v12 = vld [vmem:[%s6575_s2] ss:$0 sm:$0xff] (!%p4096_p9)  ;;  %v816_v30 = vld [vmem:[#allocation2 + $0x8] sm:$0x1] (!%p4096_p9) }
  0x5e   : > { %757 = sbr.rel (%p4096_p9) target bundleno = 116 (0x74), region = 44  ;;  %s4447_s18 = sshll.u32 (!%p4096_p9), %s4097_s17, 3  ;;  %v4101_v15 = vld [vmem:[%s6576_s3] ss:$0 sm:$0xff] (!%p4096_p9) }
  0x5f   : > { %s761_s19 = scalar_lea.vmem (!%p4096_p9), %s5453_s8, %s4447_s18  ;;  %v812_v29 = vld [vmem:[#allocation2] sm:$0xf] (!%p4096_p9) }
  0x60   : > { %v4502_v11 = vld [vmem:[%s761_s19] sm:$0xff] (!%p4096_p9)  }
  0x61   : > { %v4503_v13 = vunpack.c.l.bf16 (!%p4096_p9), %v4502_v11  ;;  %v4504_v14 = vunpack.c.h.bf16 (!%p4096_p9), %v4502_v11 }
  0x63   : > { %v773_v42 = vmul.f32 (!%p4096_p9), %v4503_v13, %v4100_v12  ;;  %v774_v16 = vmul.f32 (!%p4096_p9), %v4504_v14, %v4100_v12 }
  0x65   : > { %v782_v17 = vadd.f32 %v4101_v15, %v773_v42  ;;  %v783_v18 = vadd.f32 %v4101_v15, %v774_v16 }
  0x67   : > { %v784_v19 = vmax.f32 %v782_v17, 0.0  ;;  %v785_v20 = vmax.f32 %v783_v18, 0.0 }
  0x69   : > { %v4448_v21 = vpack.c.bf16 %v784_v19, %v784_v19  ;;  %v4449_v22 = vpack.c.bf16 %v785_v20, %v785_v20 }
  0x6b   : > { %v793_v23 = vshrl.u32 %v4448_v21, 16  ;;  %v796_v24 = vshll.u32 %v4448_v21, 16  ;;  %v801_v25 = vshrl.u32 %v4449_v22, 16  ;;  %v804_v26 = vshll.u32 %v4449_v22, 16 }
  0x6d   : > { %v795_v27 = vrot.slane %v793_v23, 7  ;;  %v803_v28 = vrot.slane %v801_v25, 7 }
  0x6f   : > { %v798_v31 = vor.u32 %v796_v24, %v795_v27  ;;  %v799_v32 = vrot.slane %v795_v27, 4  ;;  %v806_v33 = vor.u32 %v804_v26, %v803_v28  ;;  %v808_v35 = vrot.slane %v803_v28, 4 }
  0x71   : > { %v813_v36 = vsel %vm5517_vm7, %v798_v31, %v812_v29  ;;  %v807_v37 = vsel %vm5523_vm8, %v799_v32, %v806_v33  ;;  %v817_v38 = vsel %vm5393_vm2, %v808_v35, %v816_v30 }
  0x72   : > { %814 = vst [vmem:[#allocation2] sm:$0xf] %v813_v36  ;;  %815 = vst [vmem:[#allocation2 + $0x4] sm:$0xf] %v807_v37 }
  0x73   : > { %818 = vst [vmem:[#allocation2 + $0x8] sm:$0x1] %v817_v38 }
  0x74 PF: > { %p4104_p10 = scmp.ne.s32.totalorder %s5304_s21, 1 }
  0x75   : > { %v5323_v40 = vmov (!%p4104_p10), 0  }
  0x76   : > { %822 = sbr.rel (%p4104_p10) target bundleno = 125 (0x7d), region = 48  ;;  %824 = vst [vmem:[#allocation2 + $0x6c] sm:$0xf] (!%p4104_p10), %v5323_v40  ;;  %825 = vst [vmem:[#allocation2 + $0x70] sm:$0xf] (!%p4104_p10), %v5323_v40 }
  0x77   : > { %826 = vst [vmem:[#allocation2 + $0x74] sm:$0x1] (!%p4104_p10), %v5323_v40 }
  0x7d PF: > { %p4105_p11 = scmp.ge.s32.totalorder %s5304_s21, 1 }
  0x7e   : > { %v4556_v41 = vld [vmem:[%s5460_s14 + $0x40] sm:$0xff] (!%p4105_p11)   ;;  %v886_v61 = vld [vmem:[#allocation2 + $0x6c] sm:$0xf] (!%p4105_p11)  ;;  %v890_v62 = vld [vmem:[#allocation2 + $0x74] sm:$0x1] (!%p4105_p11) }
  0x7f   : > { %830 = sbr.rel (%p4105_p11) target bundleno = 146 (0x92), region = 52  ;;  %v4110_v43 = vld [vmem:[%s6575_s2] ss:$0 sm:$0xff] (!%p4105_p11)  ;;  %v4507_v44 = vunpack.c.l.bf16 (!%p4105_p11), %v4556_v41  ;;  %v4508_v45 = vunpack.c.h.bf16 (!%p4105_p11), %v4556_v41 }
  0x80   : > { %v4111_v46 = vld [vmem:[%s6576_s3] ss:$0 sm:$0xff] (!%p4105_p11) }
  0x81   : > { %v846_v47 = vmul.f32 (!%p4105_p11), %v4507_v44, %v4110_v43  ;;  %v847_v48 = vmul.f32 (!%p4105_p11), %v4508_v45, %v4110_v43 }
  0x83   : > { %v855_v49 = vadd.f32 (!%p4105_p11), %v4111_v46, %v846_v47  ;;  %v856_v50 = vadd.f32 (!%p4105_p11), %v4111_v46, %v847_v48 }
  0x85   : > { %v857_v51 = vmax.f32 (!%p4105_p11), %v855_v49, 0.0  ;;  %v858_v52 = vmax.f32 (!%p4105_p11), %v856_v50, 0.0 }
  0x87   : > { %v4451_v53 = vpack.c.bf16 %v857_v51, %v857_v51  ;;  %v4452_v54 = vpack.c.bf16 %v858_v52, %v858_v52 }
  0x89   : > { %v866_v55 = vshrl.u32 %v4451_v53, 16  ;;  %v869_v56 = vshll.u32 %v4451_v53, 16  ;;  %v874_v57 = vshrl.u32 %v4452_v54, 16  ;;  %v877_v58 = vshll.u32 %v4452_v54, 16 }
  0x8b   : > { %v868_v59 = vrot.slane %v866_v55, 7  ;;  %v876_v60 = vrot.slane %v874_v57, 7 }
  0x8d   : > { %v871_v63 = vor.u32 %v869_v56, %v868_v59  ;;  %v872_v0 = vrot.slane %v868_v59, 4  ;;  %v879_v2 = vor.u32 %v877_v58, %v876_v60  ;;  %v881_v3 = vrot.slane %v876_v60, 4 }
  0x8f   : > { %v887_v4 = vsel %vm5517_vm7, %v871_v63, %v886_v61  ;;  %v880_v5 = vsel %vm5523_vm8, %v872_v0, %v879_v2  ;;  %v891_v6 = vsel %vm5393_vm2, %v881_v3, %v890_v62 }
  0x90   : > { %888 = vst [vmem:[#allocation2 + $0x6c] sm:$0xf] %v887_v4  ;;  %889 = vst [vmem:[#allocation2 + $0x70] sm:$0xf] %v880_v5 }
  0x91   : > { %892 = vst [vmem:[#allocation2 + $0x74] sm:$0x1] %v891_v6 }
  0x92 PF: > { %v5182_v7 = vld [vmem:[%s6574_s1 + $0x40] sm:$0xff]   ;;  %v5184_v34 = vld [vmem:[%s6574_s1 + $0x48] sm:$0xff]   ;;  %v5186_v39 = vld [vmem:[%s6574_s1 + $0x50] sm:$0xff]   ;;  %vm933_vm9 = vsmask.f32 3328  ;;  %vm1539_vm12 = vcmask 1042432  }
  0x93   : > { %v5183_v8 = vld [vmem:[%s6574_s1 + $0x100] sm:$0xff]   ;;  %4708 = vmatprep.subr.bf16.mxu1 %v5182_v7  ;;  %v5185_v1 = vld [vmem:[%s6574_s1 + $0x108] sm:$0xff]   ;;  %v5187_v9 = vld [vmem:[%s6574_s1 + $0x110] sm:$0xff]   ;;  %vm934_vm10 = vsmask.f32 7440  ;;  %vm1540_vm13 = vcmask 1046532  }
  0x94   : > { %4836 = vmatprep.subr.bf16.mxu0 %v5183_v8  ;;  %4709 = vmatpush3.bf16.msra.mxu1 %v5182_v7  ;;  %v5188_v10 = vld [vmem:[%s6574_s1 + $0x58] sm:$0xff]   ;;  %v5190_v12 = vld [vmem:[%s6574_s1 + $0x60] sm:$0xff]   ;;  %v5192_v14 = vld [vmem:[%s6574_s1 + $0x68] sm:$0xff]  }
  0x95   : > { %4837 = vmatpush3.bf16.msra.mxu0 %v5183_v8  ;;  %4710 = vmatprep.subr.bf16.mxu1 %v5184_v34  ;;  %v5189_v11 = vld [vmem:[%s6574_s1 + $0x118] sm:$0xff]   ;;  %v5191_v13 = vld [vmem:[%s6574_s1 + $0x120] sm:$0xff]   ;;  %v5193_v15 = vld [vmem:[%s6574_s1 + $0x128] sm:$0xff]  }
  0x96   : > { %4838 = vmatprep.subr.bf16.mxu0 %v5185_v1  ;;  %v5666_v42 = vld [vmem:[#allocation2] sm:$0xf]  ;;  %v5668_v16 = vld [vmem:[#allocation2 + $0x4] sm:$0xf]  ;;  %v5670_v17 = vld [vmem:[#allocation2 + $0x8] sm:$0x1] }
  0x97   : > { %v937_v18 = vshrl.u32 %v5666_v42, 16  ;;  %v940_v19 = vshll.u32 %v5666_v42, 16  ;;  %v946_v20 = vshll.u32 %v5668_v16, 16  ;;  %v950_v21 = vshrl.u32 %v5668_v16, 16  ;;  %v2050_v23 = vld [vmem:[#allocation2 + $0xc] sm:$0xf]  ;;  %vm5696_vm11 = vmor %vm933_vm9, %vm934_vm10 }
  0x98   : > { %4711 = vmatpush3.bf16.msra.mxu1 %v5184_v34  ;;  %v956_v22 = vshll.u32 %v5670_v17, 16  ;;  %v5677_v26 = vld [vmem:[#allocation2 + $0x10] sm:$0xf]  ;;  %v5679_v27 = vld [vmem:[#allocation2 + $0x14] sm:$0x1]  ;;  %v2075_v31 = vshrl.u32 %v2050_v23, 16  ;;  %vm5951_vm14 = vmor %vm1539_vm12, %vm1540_vm13 }
  0x99   : > { %4839 = vmatpush3.bf16.msra.mxu0 %v5185_v1  ;;  %4712 = vmatprep.subr.bf16.mxu1 %v5186_v39  ;;  %v939_v24 = vrot.slane %v937_v18, 4  ;;  %v942_v25 = vrot.slane %v940_v19, 5  ;;  %v5194_v28 = vld [vmem:[%s6574_s1 + $0x70] sm:$0xff]   ;;  %v948_v29 = vrot.slane %v946_v20, 5  ;;  %v952_v30 = vrot.slane %v950_v21, 4  ;;  %v5196_v40 = vld [vmem:[%s6574_s1 + $0x78] sm:$0xff]  }
  0x9a   : > { %4840 = vmatprep.subr.bf16.mxu0 %v5187_v9  ;;  %v5195_v32 = vld [vmem:[%s6574_s1 + $0x130] sm:$0xff]   ;;  %v2078_v35 = vshll.u32 %v2050_v23, 16  ;;  %v2084_v36 = vshll.u32 %v5677_v26, 16  ;;  %v2088_v37 = vshrl.u32 %v5677_v26, 16  ;;  %v5689_v38 = vld [vmem:[#allocation2 + $0xc] sm:$0xf] }
  0x9b   : > { %v943_v33 = vor.u32 %v942_v25, %v939_v24  ;;  %v953_v43 = vor.u32 %v952_v30, %v948_v29  ;;  %v958_v44 = vrot.slane %v956_v22, 5  ;;  %v2077_v45 = vrot.slane %v2075_v31, 4  ;;  %v5701_v47 = vld [vmem:[#allocation2 + $0x10] sm:$0xf]  ;;  %v5197_v56 = vld [vmem:[%s6574_s1 + $0x138] sm:$0xff]   ;;  %v5198_v34 = vld [vmem:[%s6574_s1] sm:$0xff]  }
  0x9c   : > { %4713 = vmatpush3.bf16.msra.mxu1 %v5186_v39  ;;  %v2094_v46 = vshll.u32 %v5679_v27, 16  ;;  %v2080_v49 = vrot.slane %v2078_v35, 5  ;;  %v2086_v50 = vrot.slane %v2084_v36, 5  ;;  %v2090_v51 = vrot.slane %v2088_v37, 4  ;;  %v5710_v60 = vld [vmem:[#allocation2 + $0x14] sm:$0x1] }
  0x9d   : > { %4841 = vmatpush3.bf16.msra.mxu0 %v5187_v9  ;;  %4714 = vmatprep.subr.bf16.mxu1 %v5188_v10  ;;  %v944_v48 = vrot.slane %v943_v33, 4  ;;  %v954_v52 = vrot.slane %v953_v43, 4  ;;  %v961_v54 = vshrl.u32 %v5689_v38, 16  ;;  %v964_v55 = vshll.u32 %v5689_v38, 16  ;;  %v2053_v62 = vld [vmem:[#allocation2 + $0x18] sm:$0xf] }
  0x9e   : > { %4842 = vmatprep.subr.bf16.mxu0 %v5189_v11  ;;  %v2096_v53 = vrot.slane %v2094_v46, 5  ;;  %v2081_v58 = vor.u32 %v2080_v49, %v2077_v45  ;;  %v2091_v59 = vor.u32 %v2090_v51, %v2086_v50  ;;  %v970_v61 = vshll.u32 %v5701_v47, 16  ;;  %v5716_v4 = vld [vmem:[#allocation2 + $0x1c] sm:$0xf]  ;;  %v5724_v1 = vld [vmem:[%s6574_s1 + $0x140] sm:$0xff]  }
  0x9f   : > { %v949_v57 = vsel %vm5696_vm11, %v944_v48, %v948_v29  ;;  %v959_v63 = vsel %vm5696_vm11, %v954_v52, %v958_v44  ;;  %v963_v0 = vrot.slane %v961_v54, 4  ;;  %v966_v2 = vrot.slane %v964_v55, 5  ;;  %v5742_v37 = vld [vmem:[#allocation2 + $0x1c] sm:$0xf]  ;;  %v2056_v48 = vld [vmem:[#allocation2 + $0x24] sm:$0xf] }
  0xa0   : > { %4715 = vmatpush3.bf16.msra.mxu1 %v5188_v10  ;;  %v974_v3 = vshrl.u32 %v5701_v47, 16  ;;  %v4130_v5 = vcombine.low %v949_v57, %v959_v63  ;;  %v2082_v6 = vrot.slane %v2081_v58, 4  ;;  %v2092_v7 = vrot.slane %v2091_v59, 4  ;;  %v5200_v52 = vld [vmem:[%s6574_s1 + $0x8] sm:$0xff]  }
  0xa1   : > { %4843 = vmatpush3.bf16.msra.mxu0 %v5189_v11  ;;  %4716 = vmatprep.subr.bf16.mxu1 %v5190_v12  ;;  %v972_v8 = vrot.slane %v970_v61, 5  ;;  %v967_v39 = vor.u32 %v966_v2, %v963_v0  ;;  %v980_v10 = vshll.u32 %v5710_v60, 16  ;;  %v5727_v11 = vld [vmem:[#allocation2 + $0x20] sm:$0x1]  ;;  %v2108_v24 = vshll.u32 %v5716_v4, 16  ;;  %v5202_v2 = vld [vmem:[%s6574_s1 + $0x10] sm:$0xff]  }
  0xa2   : > { %4844 = vmatprep.subr.bf16.mxu0 %v5191_v13  ;;  %v976_v9 = vrot.slane %v974_v3, 4  ;;  %4724 = vmatprep.mubr.bf16.mxu1 %v4130_v5  ;;  %v2112_v25 = vshrl.u32 %v5716_v4, 16  ;;  %v994_v55 = vshll.u32 %v5742_v37, 16  ;;  %v5754_v58 = vld [vmem:[#allocation2 + $0x28] sm:$0xf]  ;;  %v2123_v0 = vshrl.u32 %v2056_v48, 16 }
  0xa3   : > { %v968_v19 = vrot.slane %v967_v39, 4  ;;  %v982_v21 = vrot.slane %v980_v10, 5  ;;  %v2110_v35 = vrot.slane %v2108_v24, 5  ;;  %v5758_v63 = vld [vmem:[#allocation2 + $0x2c] sm:$0x1] }
  0xa4   : > { %4717 = vmatpush3.bf16.msra.mxu1 %v5190_v12  ;;  %v2087_v12 = vsel %vm5696_vm11, %v2082_v6, %v2086_v50  ;;  %v977_v20 = vor.u32 %v976_v9, %v972_v8  ;;  %v2114_v36 = vrot.slane %v2112_v25, 4  ;;  %v5201_v3 = vld [vmem:[%s6574_s1 + $0x148] sm:$0xff]   ;;  %v996_v5 = vrot.slane %v994_v55, 5  ;;  %v5766_v39 = vld [vmem:[#allocation2 + $0x24] sm:$0xf] }
  0xa5   : > { %4845 = vmatpush3.bf16.msra.mxu0 %v5191_v13  ;;  %4718 = vmatprep.subr.bf16.mxu1 %v5192_v14  ;;  %v2097_v13 = vsel %vm5696_vm11, %v2092_v7, %v2096_v53  ;;  %v973_v30 = vsel %vm5696_vm11, %v968_v19, %v972_v8  ;;  %v2126_v8 = vshll.u32 %v2056_v48, 16  ;;  %v5772_v19 = vld [vmem:[#allocation2 + $0x28] sm:$0xf]  ;;  %v1009_v24 = vshrl.u32 %v5766_v39, 16  ;;  %v2059_v25 = vld [vmem:[#allocation2 + $0x30] sm:$0xf] }
  0xa6   : > { %4846 = vmatprep.subr.bf16.mxu0 %v5193_v15  ;;  %v4250_v18 = vcombine.low %v2087_v12, %v2097_v13  ;;  %v978_v31 = vrot.slane %v977_v20, 4  ;;  %v2115_v51 = vor.u32 %v2114_v36, %v2110_v35  ;;  %v2125_v12 = vrot.slane %v2123_v0, 4  ;;  %v5774_v20 = vld [vmem:[#allocation2 + $0x2c] sm:$0x1]  ;;  %v5203_v36 = vld [vmem:[%s6574_s1 + $0x150] sm:$0xff]   ;;  %v5204_v48 = vld [vmem:[%s6574_s1 + $0x18] sm:$0xff]  }
  0xa7   : > { %v2132_v13 = vshll.u32 %v5754_v58, 16  ;;  %v1028_v55 = vshll.u32 %v5774_v20, 16  ;;  %v5205_v0 = vld [vmem:[%s6574_s1 + $0x158] sm:$0xff]  }
  0xa8   : > { %4719 = vmatpush3.bf16.msra.mxu1 %v5192_v14  ;;  %v2099_v14 = vshrl.u32 %v2053_v62, 16  ;;  %4852 = vmatprep.mubr.bf16.mxu0 %v4250_v18  ;;  %v983_v43 = vsel %vm5696_vm11, %v978_v31, %v982_v21  ;;  %v2116_v61 = vrot.slane %v2115_v51, 4  ;;  %v2136_v18 = vshrl.u32 %v5754_v58, 16 }
  0xa9   : > { %4847 = vmatpush3.bf16.msra.mxu0 %v5193_v15  ;;  %4720 = vmatprep.subr.bf16.mxu1 %v5194_v28  ;;  %v2102_v15 = vshll.u32 %v2053_v62, 16  ;;  %v4131_v49 = vcombine.low %v973_v30, %v983_v43 }
  0xaa   : > { %4848 = vmatprep.subr.bf16.mxu0 %v5195_v32  ;;  %v2101_v22 = vrot.slane %v2099_v14, 4 }
  0xab   : > { %v2104_v23 = vrot.slane %v2102_v15, 5  ;;  %v2128_v15 = vrot.slane %v2126_v8, 5 }
  0xac   : > { %4721 = vmatpush3.bf16.msra.mxu1 %v5194_v28  ;;  %v5735_v28 = vld [vmem:[#allocation2 + $0x18] sm:$0xf] }
  0xad   : > { %4849 = vmatpush3.bf16.msra.mxu0 %v5195_v32  ;;  %4722 = vmatprep.subr.bf16.mxu1 %v5196_v40  ;;  %v2118_v32 = vshll.u32 %v5727_v11, 16  ;;  %v2105_v33 = vor.u32 %v2104_v23, %v2101_v22  ;;  %v985_v46 = vshrl.u32 %v5735_v28, 16  ;;  %v988_v53 = vshll.u32 %v5735_v28, 16 }
  0xae   : > { %4850 = vmatprep.subr.bf16.mxu0 %v5197_v56  ;;  %v2134_v22 = vrot.slane %v2132_v13, 5  ;;  %v2142_v23 = vshll.u32 %v5758_v63, 16  ;;  %v2129_v31 = vor.u32 %v2128_v15, %v2125_v12 }
  0xaf   : > { %v2120_v44 = vrot.slane %v2118_v32, 5  ;;  %v2106_v50 = vrot.slane %v2105_v33, 4  ;;  %v987_v54 = vrot.slane %v985_v46, 4  ;;  %v990_v62 = vrot.slane %v988_v53, 5 }
  0xb0   : > { %4723 = vmatpush3.bf16.msra.mxu1 %v5196_v40  ;;  %v927_v40 = vld [vmem:[#allocation2 + $0x20] sm:$0x1]  ;;  %v2138_v32 = vrot.slane %v2136_v18, 4  ;;  %v1012_v33 = vshll.u32 %v5766_v39, 16  ;;  %v2144_v43 = vrot.slane %v2142_v23, 5  ;;  %v1018_v46 = vshll.u32 %v5772_v19, 16 }
  0xb1   : > { %4851 = vmatpush3.bf16.msra.mxu0 %v5197_v56  ;;  %4740 = vmatprep.subr.bf16.mxu1 %v5198_v34  ;;  %v998_v56 = vshrl.u32 %v5742_v37, 16  ;;  %v1004_v57 = vshll.u32 %v927_v40, 16  ;;  %v2111_v59 = vsel %vm5696_vm11, %v2106_v50, %v2110_v35  ;;  %v2121_v9 = vsel %vm5696_vm11, %v2116_v61, %v2120_v44  ;;  %v5779_v35 = vld [vmem:[#allocation2 + $0x34] sm:$0xf]  ;;  %v5797_v61 = vld [vmem:[#allocation2 + $0x38] sm:$0x1] }
  0xb2   : > { %4868 = vmatprep.subr.bf16.mxu0 %v5724_v1  ;;  %v991_v10 = vor.u32 %v990_v62, %v987_v54  ;;  %v4251_v14 = vcombine.low %v2111_v59, %v2121_v9  ;;  %v1011_v44 = vrot.slane %v1009_v24, 4  ;;  %v2130_v50 = vrot.slane %v2129_v31, 4  ;;  %v5803_v9 = vld [vmem:[#allocation2 + $0x30] sm:$0xf] }
  0xb3   : > { %4725 = vmatmul.mubr.bf16.vlgmr.msra.gmra.mrb[0].mxu1 %v4131_v49  ;;  %v1000_v6 = vrot.slane %v998_v56, 4  ;;  %v1006_v7 = vrot.slane %v1004_v57, 5  ;;  %v2139_v51 = vor.u32 %v2138_v32, %v2134_v22  ;;  %v1020_v53 = vrot.slane %v1018_v46, 5  ;;  %v5817_v32 = vld [vmem:[#allocation2 + $0x38] sm:$0x1] }
  0xb4   : > { %4741 = vmatpush3.bf16.msra.mxu1 %v5198_v34  ;;  %v992_v21 = vrot.slane %v991_v10, 4  ;;  %4853 = vmatmul.mubr.bf16.vlgmr.msra.gmra.mrb[0].mxu0 %v4251_v14  ;;  %v1022_v54 = vshrl.u32 %v5772_v19, 16  ;;  %v2135_v56 = vsel %vm5696_vm11, %v2130_v50, %v2134_v22  ;;  %v2147_v62 = vshrl.u32 %v2059_v25, 16  ;;  %v5808_v14 = vld [vmem:[#allocation2 + $0x34] sm:$0xf] }
  0xb5   : > { %4742 = vmatprep.subr.bf16.mxu1 %v5200_v52  ;;  %v1001_v34 = vor.u32 %v1000_v6, %v996_v5  ;;  %4869 = vmatpush3.bf16.msra.mxu0 %v5724_v1  ;;  %v2140_v57 = vrot.slane %v2139_v51, 4  ;;  %v1030_v6 = vrot.slane %v1028_v55, 5  ;;  %v2156_v8 = vshll.u32 %v5779_v35, 16  ;;  %v2062_v50 = vld [vmem:[#allocation2 + $0x3c] sm:$0xf] }
  0xb6   : > { %v997_v40 = vsel %vm5696_vm11, %v992_v21, %v996_v5  ;;  %4870 = vmatprep.subr.bf16.mxu0 %v5201_v3  ;;  %v1024_v5 = vrot.slane %v1022_v54, 4  ;;  %v2149_v13 = vrot.slane %v2147_v62, 4  ;;  %v2166_v24 = vshll.u32 %v5797_v61, 16  ;;  %v5830_v54 = vld [vmem:[#allocation2 + $0x40] sm:$0xf]  ;;  %v5210_v62 = vld [vmem:[%s6574_s1 + $0x30] sm:$0xff]  }
  0xb7   : > { %v1002_v30 = vrot.slane %v1001_v34, 4  ;;  %v2145_v10 = vsel %vm5696_vm11, %v2140_v57, %v2144_v43  ;;  %v2158_v21 = vrot.slane %v2156_v8, 5  ;;  %v5208_v43 = vld [vmem:[%s6574_s1 + $0x28] sm:$0xff]   ;;  %v2171_v8 = vshrl.u32 %v2062_v50, 16 }
  0xb8   : > { %4743 = vmatpush3.bf16.msra.mxu1 %v5200_v52  ;;  %v1014_v52 = vrot.slane %v1012_v33, 5  ;;  %v4252_v34 = vcombine.low %v2135_v56, %v2145_v10  ;;  %v1025_v15 = vor.u32 %v1024_v5, %v1020_v53  ;;  %v1036_v33 = vshll.u32 %v5803_v9, 16 }
  0xb9   : > { %4744 = vmatprep.subr.bf16.mxu1 %v5202_v2  ;;  %v1007_v49 = vsel %vm5696_vm11, %v1002_v30, %v1006_v7  ;;  %4871 = vmatpush3.bf16.msra.mxu0 %v5201_v3  ;;  %v2150_v7 = vshll.u32 %v2059_v25, 16  ;;  %v5206_v3 = vld [vmem:[%s6574_s1 + $0x20] sm:$0xff]   ;;  %v1033_v25 = vshrl.u32 %v5803_v9, 16  ;;  %v2168_v46 = vrot.slane %v2166_v24, 5 }
  0xba   : > { %v4132_v1 = vcombine.low %v997_v40, %v1007_v49  ;;  %v1015_v59 = vor.u32 %v1014_v52, %v1011_v44  ;;  %4872 = vmatprep.subr.bf16.mxu0 %v5203_v36  ;;  %4856 = vmatprep.mubr.bf16.mxu0 %v4252_v34  ;;  %v1026_v30 = vrot.slane %v1025_v15, 4  ;;  %v1042_v40 = vshll.u32 %v5808_v14, 16  ;;  %v5846_v15 = vld [vmem:[#allocation2 + $0x3c] sm:$0xf]  ;;  %v5850_v24 = vld [vmem:[#allocation2 + $0x44] sm:$0x1] }
  0xbb   : > { %v2152_v18 = vrot.slane %v2150_v7, 5  ;;  %v1046_v49 = vshrl.u32 %v5808_v14, 16  ;;  %v5838_v7 = vld [vmem:[#allocation2 + $0x44] sm:$0x1]  ;;  %v2174_v10 = vshll.u32 %v2062_v50, 16  ;;  %v2180_v34 = vshll.u32 %v5830_v54, 16 }
  0xbc   : > { %4745 = vmatpush3.bf16.msra.mxu1 %v5202_v2  ;;  %4728 = vmatprep.mubr.bf16.mxu1 %v4132_v1  ;;  %v1016_v12 = vrot.slane %v1015_v59, 4  ;;  %v2160_v2 = vshrl.u32 %v5779_v35, 16  ;;  %v1031_v51 = vsel %vm5696_vm11, %v1026_v30, %v1030_v6  ;;  %v1038_v1 = vrot.slane %v1036_v33, 5  ;;  %6592 = vst [vmem:[#allocation3_spill] sm:$0xff] %v5850_v24 }
  0xbd   : > { %4746 = vmatprep.subr.bf16.mxu1 %v5204_v48  ;;  %v2153_v31 = vor.u32 %v2152_v18, %v2149_v13  ;;  %4873 = vmatpush3.bf16.msra.mxu0 %v5203_v36  ;;  %v5207_v36 = vld [vmem:[%s6574_s1 + $0x160] sm:$0xff]   ;;  %v1048_v57 = vrot.slane %v1046_v49, 4  ;;  %v1052_v59 = vshll.u32 %v5817_v32, 16  ;;  %v2184_v33 = vshrl.u32 %v5830_v54, 16 }
  0xbe   : > { %v1021_v22 = vsel %vm5696_vm11, %v1016_v12, %v1020_v53  ;;  %v2162_v23 = vrot.slane %v2160_v2, 4  ;;  %4874 = vmatprep.subr.bf16.mxu0 %v5205_v0  ;;  %v1044_v53 = vrot.slane %v1042_v40, 5  ;;  %v5209_v12 = vld [vmem:[%s6574_s1 + $0x168] sm:$0xff]   ;;  %v2190_v40 = vshll.u32 %v5838_v7, 16 }
  0xbf   : > { %v2154_v52 = vrot.slane %v2153_v31, 4  ;;  %v4133_v55 = vcombine.low %v1021_v22, %v1031_v51  ;;  %v2173_v22 = vrot.slane %v2171_v8, 4  ;;  %v2182_v31 = vrot.slane %v2180_v34, 5  ;;  %v5861_v51 = vld [vmem:[#allocation2 + $0x4c] sm:$0xf] }
  0xc0   : > { %4747 = vmatpush3.bf16.msra.mxu1 %v5204_v48  ;;  %v2163_v44 = vor.u32 %v2162_v23, %v2158_v21  ;;  %v1035_v48 = vrot.slane %v1033_v25, 4  ;;  %v1049_v2 = vor.u32 %v1048_v57, %v1044_v53  ;;  %v2176_v23 = vrot.slane %v2174_v10, 5  ;;  %v5212_v25 = vld [vmem:[%s6574_s1 + $0x38] sm:$0xff]  }
  0xc1   : > { %4748 = vmatprep.subr.bf16.mxu1 %v5206_v3  ;;  %v2159_v5 = vsel %vm5696_vm11, %v2154_v52, %v2158_v21  ;;  %4875 = vmatpush3.bf16.msra.mxu0 %v5205_v0  ;;  %v5848_v0 = vld [vmem:[#allocation2 + $0x40] sm:$0xf]  ;;  %v1057_v49 = vshrl.u32 %v5846_v15, 16  ;;  %v1060_v50 = vshll.u32 %v5846_v15, 16 }
  0xc2   : > { %v2164_v56 = vrot.slane %v2163_v44, 4  ;;  %v1039_v6 = vor.u32 %v1038_v1, %v1035_v48  ;;  %4729 = vmatmul.mubr.bf16.gmra.mrb[4].mxu1 %v4133_v55  ;;  %4876 = vmatprep.subr.bf16.mxu0 %v5207_v36  ;;  %v1050_v30 = vrot.slane %v1049_v2, 4  ;;  %v2065_v44 = vld [vmem:[#allocation2 + $0x48] sm:$0xf]  ;;  %v2177_v48 = vor.u32 %v2176_v23, %v2173_v22 }
  0xc3   : > { %v2186_v1 = vrot.slane %v2184_v33, 4  ;;  %v2192_v55 = vrot.slane %v2190_v40, 5  ;;  %v1070_v10 = vshrl.u32 %v5848_v0, 16  ;;  %v2195_v34 = vshrl.u32 %v2065_v44, 16 }
  0xc4   : > { %4749 = vmatpush3.bf16.msra.mxu1 %v5206_v3  ;;  %v2169_v13 = vsel %vm5696_vm11, %v2164_v56, %v2168_v46  ;;  %v1054_v3 = vrot.slane %v1052_v59, 5  ;;  %v1040_v21 = vrot.slane %v1039_v6, 4  ;;  %v1066_v56 = vshll.u32 %v5848_v0, 16 }
  0xc5   : > { %4750 = vmatprep.subr.bf16.mxu1 %v5208_v43  ;;  %v4253_v18 = vcombine.low %v2159_v5, %v2169_v13  ;;  %4877 = vmatpush3.bf16.msra.mxu0 %v5207_v36  ;;  %v2178_v57 = vrot.slane %v2177_v48, 4  ;;  %v1059_v59 = vrot.slane %v1057_v49, 4  ;;  %v5211_v5 = vld [vmem:[%s6574_s1 + $0x170] sm:$0xff]   ;;  %v2187_v6 = vor.u32 %v2186_v1, %v2182_v31  ;;  %v5885_v48 = vld [vmem:[#allocation2 + $0x48] sm:$0xf] }
  0xc6   : > { %v1045_v46 = vsel %vm5696_vm11, %v1040_v21, %v1044_v53  ;;  %v1055_v52 = vsel %vm5696_vm11, %v1050_v30, %v1054_v3  ;;  %v1062_v53 = vrot.slane %v1060_v50, 5  ;;  %4878 = vmatprep.subr.bf16.mxu0 %v5209_v12  ;;  %v1068_v8 = vrot.slane %v1066_v56, 5  ;;  %v5873_v3 = vld [vmem:[#allocation2 + $0x50] sm:$0x1]  ;;  %v5878_v21 = vld [vmem:[%s6574_s1 + $0x80] sm:$0xff]  }
  0xc7   : > { %4857 = vmatmul.mubr.bf16.gmra.mrb[4].mxu0 %v4253_v18  ;;  %v1076_v13 = vshll.u32 %v5850_v24, 16  ;;  %v2183_v36 = vsel %vm5696_vm11, %v2178_v57, %v2182_v31  ;;  %v2198_v18 = vshll.u32 %v2065_v44, 16  ;;  %v2188_v22 = vrot.slane %v2187_v6, 4  ;;  %v5213_v31 = vld [vmem:[%s6574_s1 + $0x178] sm:$0xff]   ;;  %v2068_v6 = vld [vmem:[#allocation2 + $0x54] sm:$0xf] }
  0xc8   : > { %4751 = vmatpush3.bf16.msra.mxu1 %v5208_v43  ;;  %v4134_v43 = vcombine.low %v1045_v46, %v1055_v52  ;;  %v1063_v2 = vor.u32 %v1062_v53, %v1059_v59  ;;  %v1072_v23 = vrot.slane %v1070_v10, 4  ;;  %v2197_v40 = vrot.slane %v2195_v34, 4  ;;  %v5894_v53 = vld [vmem:[#allocation2 + $0x50] sm:$0x1] }
  0xc9   : > { %4752 = vmatprep.subr.bf16.mxu1 %v5210_v62  ;;  %v1078_v30 = vrot.slane %v1076_v13, 5  ;;  %4879 = vmatpush3.bf16.msra.mxu0 %v5209_v12  ;;  %v2200_v46 = vrot.slane %v2198_v18, 5  ;;  %v2208_v44 = vshrl.u32 %v5861_v51, 16  ;;  %v2193_v49 = vsel %vm5696_vm11, %v2188_v22, %v2192_v55  ;;  %v5890_v12 = vld [vmem:[#allocation2 + $0x4c] sm:$0xf]  ;;  %6593 = vst [vmem:[#allocation4_spill] sm:$0xff] %v5894_v53 }
  0xca   : > { %4732 = vmatprep.mubr.bf16.mxu1 %v4134_v43  ;;  %v1064_v33 = vrot.slane %v1063_v2, 4  ;;  %4880 = vmatprep.subr.bf16.mxu0 %v5211_v5  ;;  %v1073_v50 = vor.u32 %v1072_v23, %v1068_v8  ;;  %v2214_v1 = vshll.u32 %v5873_v3, 16  ;;  %v4254_v56 = vcombine.low %v2183_v36, %v2193_v49  ;;  %v5904_v18 = vld [vmem:[%s6574_s1 + $0x180] sm:$0xff]  }
  0xcb   : > { %v2201_v57 = vor.u32 %v2200_v46, %v2197_v40  ;;  %v2210_v59 = vrot.slane %v2208_v44, 4  ;;  %v1081_v13 = vshrl.u32 %v5885_v48, 16  ;;  %v1084_v2 = vshll.u32 %v5885_v48, 16 }
  0xcc   : > { %4753 = vmatpush3.bf16.msra.mxu1 %v5210_v62  ;;  %v2204_v62 = vshll.u32 %v5861_v51, 16  ;;  %v1069_v43 = vsel %vm5696_vm11, %v1064_v33, %v1068_v8  ;;  %v1074_v10 = vrot.slane %v1073_v50, 4  ;;  %v2216_v55 = vrot.slane %v2214_v1, 5  ;;  %4860 = vmatprep.mubr.bf16.mxu0 %v4254_v56  ;;  %v5909_v33 = vld [vmem:[#allocation2 + $0x58] sm:$0xf] }
  0xcd   : > { %4754 = vmatprep.subr.bf16.mxu1 %v5212_v25  ;;  %4881 = vmatpush3.bf16.msra.mxu0 %v5211_v5  ;;  %v1090_v34 = vshll.u32 %v5890_v12, 16  ;;  %v1094_v8 = vshrl.u32 %v5890_v12, 16  ;;  %v1083_v23 = vrot.slane %v1081_v13, 4  ;;  %v1100_v5 = vshll.u32 %v5894_v53, 16  ;;  %v5913_v50 = vld [vmem:[#allocation2 + $0x5c] sm:$0x1] }
  0xce   : > { %v2206_v52 = vrot.slane %v2204_v62, 5  ;;  %4882 = vmatprep.subr.bf16.mxu0 %v5213_v31  ;;  %v1079_v22 = vsel %vm5696_vm11, %v1074_v10, %v1078_v30  ;;  %v1086_v62 = vrot.slane %v1084_v2, 5  ;;  %v5915_v1 = vld [vmem:[#allocation2 + $0x54] sm:$0xf]  ;;  %v2219_v30 = vshrl.u32 %v2068_v6, 16 }
  0xcf   : > { %v4135_v40 = vcombine.low %v1069_v43, %v1079_v22  ;;  %v1092_v49 = vrot.slane %v1090_v34, 5  ;;  %v5917_v10 = vld [vmem:[#allocation2 + $0x58] sm:$0xf]  ;;  %v2222_v13 = vshll.u32 %v2068_v6, 16  ;;  %v2232_v2 = vshrl.u32 %v5909_v33, 16 }
  0xd0   : > { %4755 = vmatpush3.bf16.msra.mxu1 %v5212_v25  ;;  %v2202_v25 = vrot.slane %v2201_v57, 4  ;;  %v2211_v36 = vor.u32 %v2210_v59, %v2206_v52  ;;  %v1087_v56 = vor.u32 %v1086_v62, %v1083_v23  ;;  %v1096_v57 = vrot.slane %v1094_v8, 4  ;;  %v2071_v6 = vld [vmem:[#allocation2 + $0x60] sm:$0xf]  ;;  %v5937_v53 = vld [vmem:[#allocation2 + $0x68] sm:$0x1] }
  0xd1   : > { %4772 = vmatprep.subr.bf16.mxu1 %v5878_v21  ;;  %v1102_v59 = vrot.slane %v1100_v5, 5  ;;  %4883 = vmatpush3.bf16.msra.mxu0 %v5213_v31  ;;  %v2221_v8 = vrot.slane %v2219_v30, 4  ;;  %v2224_v22 = vrot.slane %v2222_v13, 5  ;;  %v2234_v31 = vrot.slane %v2232_v2, 4  ;;  %v5925_v5 = vld [vmem:[#allocation2 + $0x5c] sm:$0x1] }
  0xd2   : > { %v2207_v46 = vsel %vm5696_vm11, %v2202_v25, %v2206_v52  ;;  %v2212_v44 = vrot.slane %v2211_v36, 4  ;;  %4733 = vmatmul.mubr.bf16.gmra.mrb[8].mxu1 %v4135_v40  ;;  %v2228_v52 = vshll.u32 %v5909_v33, 16  ;;  %4900 = vmatprep.subr.bf16.mxu0 %v5904_v18  ;;  %v1088_v36 = vrot.slane %v1087_v56, 4  ;;  %v5932_v13 = vld [vmem:[#allocation2 + $0x64] sm:$0xf] }
  0xd3   : > { %v1097_v34 = vor.u32 %v1096_v57, %v1092_v49  ;;  %v2238_v62 = vshll.u32 %v5913_v50, 16  ;;  %v2225_v56 = vor.u32 %v2224_v22, %v2221_v8  ;;  %v1118_v29 = vshrl.u32 %v5917_v10, 16  ;;  %v2476_v8 = vld [vmem:[#allocation2 + $0xc] sm:$0xe] }
  0xd4   : > { %v2217_v43 = vsel %vm5696_vm11, %v2212_v44, %v2216_v55  ;;  %v2230_v23 = vrot.slane %v2228_v52, 5  ;;  %v1093_v55 = vsel %vm5696_vm11, %v1088_v36, %v1092_v49  ;;  %v1108_v44 = vshll.u32 %v5915_v1, 16 }
  0xd5   : > { %v4255_v25 = vcombine.low %v2207_v46, %v2217_v43  ;;  %v1098_v40 = vrot.slane %v1097_v34, 4  ;;  %v1105_v46 = vshrl.u32 %v5915_v1, 16  ;;  %v2240_v30 = vrot.slane %v2238_v62, 5 }
  0xd6   : > { %v2235_v57 = vor.u32 %v2234_v31, %v2230_v23  ;;  %v1114_v43 = vshll.u32 %v5917_v10, 16  ;;  %v2226_v36 = vrot.slane %v2225_v56, 4  ;;  %v1120_v31 = vrot.slane %v1118_v29, 4 }
  0xd7   : > { %4861 = vmatmul.mubr.bf16.gmra.mrb[8].mxu0 %v4255_v25  ;;  %v1103_v52 = vsel %vm5696_vm11, %v1098_v40, %v1102_v59  ;;  %v1107_v2 = vrot.slane %v1105_v46, 4  ;;  %v1110_v25 = vrot.slane %v1108_v44, 5  ;;  %v1124_v62 = vshll.u32 %v5925_v5, 16 }
  0xd8   : > { %v4136_v49 = vcombine.low %v1093_v55, %v1103_v52  ;;  %v2236_v34 = vrot.slane %v2235_v57, 4  ;;  %v1116_v45 = vrot.slane %v1114_v43, 5  ;;  %v2243_v24 = vshrl.u32 %v2071_v6, 16 }
  0xd9   : > { %v1111_v22 = vor.u32 %v1110_v25, %v1107_v2  ;;  %v2231_v59 = vsel %vm5696_vm11, %v2226_v36, %v2230_v23  ;;  %v2246_v46 = vshll.u32 %v2071_v6, 16  ;;  %v2252_v55 = vshll.u32 %v5932_v13, 16 }
  0xda   : > { %4736 = vmatprep.mubr.bf16.mxu1 %v4136_v49  ;;  %v2241_v40 = vsel %vm5696_vm11, %v2236_v34, %v2240_v30  ;;  %v1121_v57 = vor.u32 %v1120_v31, %v1116_v45  ;;  %v1126_v43 = vrot.slane %v1124_v62, 5  ;;  %v2245_v52 = vrot.slane %v2243_v24, 4  ;;  %v2477_v62 = vld [vmem:[#allocation2 + $0x18] sm:$0xe] }
  0xdb   : > { %v4256_v44 = vcombine.low %v2231_v59, %v2241_v40  ;;  %v1112_v56 = vrot.slane %v1111_v22, 4  ;;  %v2248_v2 = vrot.slane %v2246_v46, 5  ;;  %v2254_v29 = vrot.slane %v2252_v55, 5  ;;  %v2478_v59 = vld [vmem:[#allocation2 + $0x24] sm:$0xe] }
  0xdc   : > { %v2256_v25 = vshrl.u32 %v5932_v13, 16  ;;  %v1122_v23 = vrot.slane %v1121_v57, 4  ;;  %v2262_v36 = vshll.u32 %v5937_v53, 16  ;;  %v4266_v30 = vrot.slane %v2476_v8, 9 }
  0xdd   : > { %4864 = vmatprep.mubr.bf16.mxu0 %v4256_v44  ;;  %v1117_v49 = vsel %vm5696_vm11, %v1112_v56, %v1116_v45  ;;  %v2249_v6 = vor.u32 %v2248_v2, %v2245_v52  ;;  %v2510_v24 = vrot.slane %v5677_v26, 5  ;;  %v4146_v45 = vcombine.low %v5666_v42, %v5668_v16 }
  0xde   : > { %v2258_v34 = vrot.slane %v2256_v25, 4  ;;  %v1127_v31 = vsel %vm5696_vm11, %v1122_v23, %v1126_v43  ;;  %v2264_v55 = vrot.slane %v2262_v36, 5  ;;  %v2524_v43 = vrot.slane %v5754_v58, 5 }
  0xdf   : > { %v4137_v40 = vcombine.low %v1117_v49, %v1127_v31  ;;  %v2250_v8 = vrot.slane %v2249_v6, 4  ;;  %v2511_v44 = vsel %vm5951_vm14, %v4266_v30, %v2510_v24  ;;  %v2512_v56 = vrot.slane %v2510_v24, 4  ;;  %v2479_v30 = vld [vmem:[#allocation2 + $0x30] sm:$0xe] }
  0xe0   : > { %v2259_v46 = vor.u32 %v2258_v34, %v2254_v29  ;;  %v6596_v52 = vrot.slane %v5716_v4, 5  ;;  %v2520_v16 = vrot.slane %v5727_v11, 5  ;;  %v6597_v2 = vrot.slane %v5679_v27, 5 }
  0xe1   : > { %4737 = vmatmul.mubr.bf16.gmra.mrb[12].mxu1 %v4137_v40  ;;  %v2255_v26 = vsel %vm5696_vm11, %v2250_v8, %v2254_v29  ;;  %v4267_v36 = vrot.slane %v2477_v62, 9  ;;  %v4268_v29 = vrot.slane %v2478_v59, 9  ;;  %v2526_v58 = vrot.slane %v2524_v43, 4  ;;  %v2480_v62 = vld [vmem:[#allocation2 + $0x3c] sm:$0xe]  ;;  %v5218_v40 = vld [vmem:[%s6574_s1 + $0x88] sm:$0xff]  }
  0xe2   : > { %v2260_v57 = vrot.slane %v2259_v46, 4  ;;  %v2519_v42 = vrot.slane %v6596_v52, 4  ;;  %4756 = vmatprep.mubr.bf16.mxu1 %v4146_v45  ;;  %v2514_v25 = vsel %vm5951_vm14, %v2512_v56, %v6597_v2  ;;  %v2527_v34 = vrot.slane %v5758_v63, 5 }
  0xe3   : > { %v4290_v23 = vcombine.low %v2511_v44, %v2514_v25  ;;  %v1547_v24 = vrot.slane %v5670_v17, 5  ;;  %v1554_v11 = vrot.slane %v5710_v60, 5  ;;  %v4147_v27 = vcombine.low %v5689_v38, %v5701_v47  ;;  %v5224_v25 = vld [vmem:[%s6574_s1 + $0x98] sm:$0xff]  }
  0xe4   : > { %v2265_v49 = vsel %vm5696_vm11, %v2260_v57, %v2264_v55  ;;  %v2521_v31 = vsel %vm5951_vm14, %v2519_v42, %v2520_v16  ;;  %v4148_v45 = vcombine.low %v5735_v28, %v5742_v37  ;;  %v6598_v59 = vmov %v6596_v52  ;;  %v5996_v37 = vld [vmem:[#allocation2 + $0x48] sm:$0xe] }
  0xe5   : > { %v4257_v6 = vcombine.low %v2255_v26, %v2265_v49  ;;  %v2518_v63 = vsel %vm5951_vm14, %v4267_v36, %v6598_v59  ;;  %v4269_v8 = vrot.slane %v2479_v30, 9  ;;  %v2531_v38 = vrot.slane %v5779_v35, 5  ;;  %v5219_v35 = vld [vmem:[%s6574_s1 + $0x188] sm:$0xff]  }
  0xe6   : > { %v2538_v47 = vrot.slane %v5830_v54, 5  ;;  %v2525_v46 = vsel %vm5951_vm14, %v4268_v29, %v2524_v43  ;;  %v2528_v28 = vsel %vm5951_vm14, %v2526_v58, %v2527_v34  ;;  %v2534_v4 = vrot.slane %v5797_v61, 5  ;;  %v6005_v54 = vld [vmem:[#allocation2 + $0x54] sm:$0xe]  ;;  %v6007_v61 = vld [vmem:[#allocation2 + $0x60] sm:$0xe] }
  0xe7   : > { %4865 = vmatmul.mubr.bf16.gmra.mrb[12].mxu0 %v4257_v6  ;;  %v4270_v55 = vrot.slane %v2480_v62, 9  ;;  %v2541_v44 = vrot.slane %v5838_v7, 5  ;;  %v2545_v56 = vrot.slane %v5861_v51, 5  ;;  %v4291_v26 = vcombine.low %v2518_v63, %v2521_v31  ;;  %v6033_v58 = vld [vmem:[#allocation2 + $0x4] sm:$0xf] }
  0xe8   : > { %4884 = vmatprep.mubr.bf16.mxu0 %v4290_v23  ;;  %v4292_v57 = vcombine.low %v2525_v46, %v2528_v28  ;;  %v2533_v43 = vrot.slane %v2531_v38, 4  ;;  %v2540_v52 = vrot.slane %v2538_v47, 4  ;;  %v4149_v7 = vcombine.low %v5766_v39, %v5772_v19  ;;  %v5228_v62 = vld [vmem:[%s6574_s1 + $0xa0] sm:$0xff]  }
  0xe9   : > { %4757 = vmatmul.mubr.bf16.vlgmr.msra.gmra.mrb[0].mxu1 %v4147_v27  ;;  %v2532_v42 = vsel %vm5951_vm14, %v4269_v8, %v2531_v38  ;;  %v4150_v16 = vcombine.low %v5803_v9, %v5808_v14  ;;  %v4271_v2 = vrot.slane %v5996_v37, 9  ;;  %v2547_v49 = vrot.slane %v2545_v56, 4  ;;  %v5223_v9 = vld [vmem:[%s6574_s1 + $0x190] sm:$0xff]   ;;  %v1515_v27 = vld [vmem:[#allocation2] sm:$0xe] }
  0xea   : > { %4773 = vmatpush3.bf16.msra.mxu1 %v5878_v21  ;;  %4760 = vmatprep.mubr.bf16.mxu1 %v4148_v45  ;;  %v5222_v21 = vld [vmem:[%s6574_s1 + $0x90] sm:$0xff]   ;;  %v2548_v39 = vrot.slane %v5873_v3, 5  ;;  %v4272_v23 = vrot.slane %v6005_v54, 9  ;;  %v2552_v36 = vrot.slane %v5909_v33, 5  ;;  %v2555_v29 = vrot.slane %v5913_v50, 5 }
  0xeb   : > { %4774 = vmatprep.subr.bf16.mxu1 %v5218_v40  ;;  %v4273_v30 = vrot.slane %v6007_v61, 9  ;;  %v2559_v6 = vrot.slane %v5932_v13, 5  ;;  %v1544_v3 = vrot.slane %v6033_v58, 5  ;;  %v2535_v33 = vsel %vm5951_vm14, %v2533_v43, %v2534_v4  ;;  %v6054_v38 = vld [vmem:[#allocation2 + $0x10] sm:$0xf] }
  0xec   : > { %v2539_v34 = vsel %vm5951_vm14, %v4270_v55, %v2538_v47  ;;  %v2542_v50 = vsel %vm5951_vm14, %v2540_v52, %v2541_v44  ;;  %v4293_v31 = vcombine.low %v2532_v42, %v2535_v33  ;;  %v2554_v59 = vrot.slane %v2552_v36, 4  ;;  %v1518_v37 = vld [vmem:[#allocation2 + $0x24] sm:$0xe]  ;;  %v5230_v44 = vld [vmem:[%s6574_s1 + $0xa8] sm:$0xff]   ;;  %v6083_v52 = vld [vmem:[#allocation2 + $0x18] sm:$0xe] }
  0xed   : > { %v4294_v45 = vcombine.low %v2539_v34, %v2542_v50  ;;  %v2562_v63 = vrot.slane %v5937_v53, 5  ;;  %v4162_v8 = vrot.slane %v1515_v27, 9  ;;  %v1551_v47 = vrot.slane %v6054_v38, 5  ;;  %v5280_v33 = vld [vmem:[#allocation2 + $0x1c] sm:$0xf]  ;;  %v5235_v53 = vld [vmem:[%s6574_s1 + $0x1b0] sm:$0xff]  }
  0xee   : > { %4775 = vmatpush3.bf16.msra.mxu1 %v5218_v40  ;;  %v6052_v40 = vrot.slane %v2559_v6, 4  ;;  %v1565_v46 = vrot.slane %v5772_v19, 5  ;;  %v1546_v28 = vrot.slane %v1544_v3, 4  ;;  %v1568_v4 = vrot.slane %v5774_v20, 5  ;;  %v1520_v50 = vld [vmem:[#allocation2 + $0x3c] sm:$0xe] }
  0xef   : > { %4885 = vmatmul.mubr.bf16.vlgmr.msra.gmra.mrb[0].mxu0 %v4291_v26  ;;  %4776 = vmatprep.subr.bf16.mxu1 %v5222_v21  ;;  %v4151_v55 = vcombine.low %v5846_v15, %v5848_v0  ;;  %v4152_v26 = vcombine.low %v5885_v48, %v5890_v12  ;;  %v4165_v19 = vrot.slane %v1518_v37, 9  ;;  %v2546_v20 = vsel %vm5951_vm14, %v4271_v2, %v2545_v56  ;;  %v6599_v27 = vld [vmem:[#allocation3_spill] sm:$0xff]  ;;  %v1522_v38 = vld [vmem:[#allocation2 + $0x54] sm:$0xe] }
  0xf0   : > { %4901 = vmatpush3.bf16.msra.mxu0 %v5904_v18  ;;  %4888 = vmatprep.mubr.bf16.mxu0 %v4292_v57  ;;  %v5225_v18 = vld [vmem:[%s6574_s1 + $0x198] sm:$0xff]   ;;  %v1567_v54 = vrot.slane %v1565_v46, 4  ;;  %v2549_v15 = vsel %vm5951_vm14, %v2547_v49, %v2548_v39  ;;  %v5229_v57 = vld [vmem:[%s6574_s1 + $0x1a0] sm:$0xff]   ;;  %v2553_v48 = vsel %vm5951_vm14, %v4272_v23, %v2552_v36  ;;  %v2556_v43 = vsel %vm5951_vm14, %v2554_v59, %v2555_v29  ;;  %v1519_v49 = vld [vmem:[#allocation2 + $0x30] sm:$0xe] }
  0xf1   : > { %4902 = vmatprep.subr.bf16.mxu0 %v5219_v35  ;;  %4761 = vmatmul.mubr.bf16.gmra.mrb[4].mxu1 %v4149_v7  ;;  %v6087_v51 = vsel %vm5951_vm14, %v4165_v19, %v1565_v46  ;;  %v1572_v42 = vrot.slane %v5808_v14, 5  ;;  %v4153_v2 = vcombine.low %v5915_v1, %v5917_v10  ;;  %v1575_v39 = vrot.slane %v5817_v32, 5  ;;  %v5231_v23 = vld [vmem:[%s6574_s1 + $0x1a8] sm:$0xff]   ;;  %v5234_v32 = vld [vmem:[%s6574_s1 + $0xb0] sm:$0xff]   ;;  %v5237_v19 = vld [vmem:[%s6574_s1 + $0x1b8] sm:$0xff]  }
  0xf2   : > { %4777 = vmatpush3.bf16.msra.mxu1 %v5222_v21  ;;  %4764 = vmatprep.mubr.bf16.mxu1 %v4150_v16  ;;  %v6091_v56 = vsel %vm5951_vm14, %v1567_v54, %v1568_v4  ;;  %v4295_v16 = vcombine.low %v2546_v20, %v2549_v15  ;;  %v4296_v36 = vcombine.low %v2553_v48, %v2556_v43  ;;  %v1558_v34 = vrot.slane %v5280_v33, 5  ;;  %v6600_v4 = vld [vmem:[#allocation4_spill] sm:$0xff] }
  0xf3   : > { %4778 = vmatprep.subr.bf16.mxu1 %v5224_v25  ;;  %v4189_v21 = vcombine.low %v6087_v51, %v6091_v56  ;;  %v1545_v14 = vsel %vm5951_vm14, %v4162_v8, %v1544_v3  ;;  %v1574_v1 = vrot.slane %v1572_v42, 4  ;;  %v1548_v29 = vsel %vm5951_vm14, %v1546_v28, %v1547_v24  ;;  %v5236_v24 = vld [vmem:[%s6574_s1 + $0xb8] sm:$0xff]   ;;  %v5250_v51 = vld [vmem:[#allocation2 + $0x48] sm:$0xff]   ;;  %v5251_v56 = vld [vmem:[%s6574_s1 + $0xe0] sm:$0xff]  }
  0xf4   : > { %4903 = vmatpush3.bf16.msra.mxu0 %v5219_v35  ;;  %v6068_v35 = vld [vmem:[#allocation2 + $0xc] sm:$0xe]  ;;  %v1579_v58 = vrot.slane %v5848_v0, 5  ;;  %v1582_v3 = vrot.slane %v6599_v27, 5  ;;  %v2560_v0 = vsel %vm5951_vm14, %v4273_v30, %v2559_v6  ;;  %v2563_v13 = vsel %vm5951_vm14, %v6052_v40, %v2562_v63  ;;  %v1521_v40 = vld [vmem:[#allocation2 + $0x48] sm:$0xe] }
  0xf5   : > { %4904 = vmatprep.subr.bf16.mxu0 %v5223_v9  ;;  %v4163_v7 = vrot.slane %v6068_v35, 9  ;;  %v6125_v17 = vsel %vm5951_vm14, %v1574_v1, %v1575_v39  ;;  %v4186_v61 = vcombine.low %v1545_v14, %v1548_v29  ;;  %v1560_v6 = vrot.slane %v1558_v34, 4  ;;  %v5241_v39 = vld [vmem:[%s6574_s1 + $0x1c0] sm:$0xff]  }
  0xf6   : > { %4779 = vmatpush3.bf16.msra.mxu1 %v5224_v25  ;;  %v1553_v25 = vrot.slane %v1551_v47, 4  ;;  %v1581_v46 = vrot.slane %v1579_v58, 4  ;;  %v1586_v37 = vrot.slane %v5890_v12, 5  ;;  %v4168_v12 = vrot.slane %v1521_v40, 9  ;;  %v5240_v1 = vld [vmem:[#allocation2 + $0x24] sm:$0xff]   ;;  %v5246_v40 = vld [vmem:[#allocation2 + $0x3c] sm:$0xff]  }
  0xf7   : > { %4889 = vmatmul.mubr.bf16.gmra.mrb[4].mxu0 %v4293_v31  ;;  %4780 = vmatprep.subr.bf16.mxu1 %v5228_v62  ;;  %v4164_v31 = vrot.slane %v6083_v52, 9  ;;  %v1593_v15 = vrot.slane %v5917_v10, 5  ;;  %v4169_v43 = vrot.slane %v1522_v38, 9  ;;  %v5239_v10 = vld [vmem:[%s6574_s1 + $0xc0] sm:$0xff]  }
  0xf8   : > { %4905 = vmatpush3.bf16.msra.mxu0 %v5223_v9  ;;  %4892 = vmatprep.mubr.bf16.mxu0 %v4294_v45  ;;  %v4166_v9 = vrot.slane %v1519_v49, 9  ;;  %v4167_v45 = vrot.slane %v1520_v50, 9  ;;  %v6149_v28 = vsel %vm5951_vm14, %v1581_v46, %v1582_v3  ;;  %v1588_v35 = vrot.slane %v1586_v37, 4  ;;  %v6206_v29 = vld [vmem:[#allocation2 + $0x20] sm:$0x1]  ;;  %v5243_v50 = vld [vmem:[%s6574_s1 + $0x1c8] sm:$0xff]  }
  0xf9   : > { %4906 = vmatprep.subr.bf16.mxu0 %v5225_v18  ;;  %4765 = vmatmul.mubr.bf16.gmra.mrb[8].mxu1 %v4151_v55  ;;  %v1589_v55 = vrot.slane %v6600_v4, 5  ;;  %v1555_v54 = vsel %vm5951_vm14, %v1553_v25, %v1554_v11  ;;  %v1559_v20 = vsel %vm5951_vm14, %v4164_v31, %v1558_v34  ;;  %v6177_v60 = vsel %vm5951_vm14, %v4168_v12, %v1586_v37  ;;  %v5242_v25 = vld [vmem:[%s6574_s1 + $0xc8] sm:$0xff]   ;;  %v3020_v31 = vld [vmem:[#allocation2 + $0x24] sm:$0xf]  ;;  %v5249_v4 = vld [vmem:[%s6574_s1 + $0x1d8] sm:$0xff]  }
  0xfa   : > { %4781 = vmatpush3.bf16.msra.mxu1 %v5228_v62  ;;  %4768 = vmatprep.mubr.bf16.mxu1 %v4152_v26  ;;  %v5281_v62 = vld [vmem:[#allocation2 + $0x20] sm:$0x1]  ;;  %v6145_v30 = vsel %vm5951_vm14, %v4167_v45, %v1579_v58  ;;  %v1552_v26 = vsel %vm5951_vm14, %v4163_v7, %v1551_v47  ;;  %v1596_v47 = vrot.slane %v5925_v5, 5  ;;  %v1595_v52 = vrot.slane %v1593_v15, 4  ;;  %v5245_v58 = vld [vmem:[%s6574_s1 + $0xd0] sm:$0xff]  }
  0xfb   : > { %4782 = vmatprep.subr.bf16.mxu1 %v5230_v44  ;;  %v1561_v59 = vrot.slane %v5281_v62, 5  ;;  %v4191_v63 = vcombine.low %v6145_v30, %v6149_v28  ;;  %v6181_v11 = vsel %vm5951_vm14, %v1588_v35, %v1589_v55  ;;  %v4187_v7 = vcombine.low %v1552_v26, %v1555_v54  ;;  %v5247_v45 = vld [vmem:[%s6574_s1 + $0x1d0] sm:$0xff]   ;;  %v6225_v46 = vld [vmem:[#allocation2 + $0x28] sm:$0xf] }
  0xfc   : > { %4907 = vmatpush3.bf16.msra.mxu0 %v5225_v18  ;;  %v6121_v18 = vsel %vm5951_vm14, %v4166_v9, %v1572_v42  ;;  %v4192_v5 = vcombine.low %v6177_v60, %v6181_v11  ;;  %v6190_v42 = vsel %vm5951_vm14, %v4169_v43, %v1593_v15  ;;  %v3075_v55 = vshll.u32 %v6225_v46, 16  ;;  %v6240_v26 = vld [vmem:[#allocation2 + $0x34] sm:$0xf]  ;;  %v6261_v43 = vld [vmem:[#allocation2 + $0x38] sm:$0x1] }
  0xfd   : > { %4908 = vmatprep.subr.bf16.mxu0 %v5229_v57  ;;  %v4190_v8 = vcombine.low %v6121_v18, %v6125_v17  ;;  %v1562_v48 = vsel %vm5951_vm14, %v1560_v6, %v1561_v59  ;;  %v3069_v6 = vshll.u32 %v3020_v31, 16  ;;  %v3099_v38 = vshll.u32 %v6240_v26, 16  ;;  %v5257_v60 = vld [vmem:[%s6574_s1 + $0xf0] sm:$0xff]  }
  0xfe   : > { %4783 = vmatpush3.bf16.msra.mxu1 %v5230_v44  ;;  %v4297_v44 = vcombine.low %v2560_v0, %v2563_v13  ;;  %v5248_v0 = vld [vmem:[%s6574_s1 + $0xd8] sm:$0xff]   ;;  %v6227_v13 = vld [vmem:[#allocation2 + $0x2c] sm:$0x1]  ;;  %v3103_v15 = vshrl.u32 %v6240_v26, 16  ;;  %v3491_v41 = vrot.slane %v6240_v26, 5 }
  0xff   : > { %4893 = vmatmul.mubr.bf16.gmra.mrb[8].mxu0 %v4295_v16  ;;  %4784 = vmatprep.subr.bf16.mxu1 %v5234_v32  ;;  %v4188_v16 = vcombine.low %v1559_v20, %v1562_v48  ;;  %v3071_v17 = vrot.slane %v3069_v6, 5  ;;  %v5262_v6 = vld [vmem:[#allocation2 + $0xc] sm:$0xff]   ;;  %v3487_v26 = vrot.slane %v6227_v13, 5 }
 0x100   : > { %4909 = vmatpush3.bf16.msra.mxu0 %v5229_v57  ;;  %4896 = vmatprep.mubr.bf16.mxu0 %v4296_v36  ;;  %v5238_v57 = vld [vmem:[#allocation2 + $0x18] sm:$0xff]  }
 0x101   : > { %4910 = vmatprep.subr.bf16.mxu0 %v5231_v23  ;;  %4769 = vmatmul.mubr.bf16.gmra.mrb[12].mxu1 %v4153_v2  ;;  %v6194_v2 = vsel %vm5951_vm14, %v1595_v52, %v1596_v47  ;;  %v6204_v36 = vld [vmem:[#allocation2 + $0x1c] sm:$0xf]  ;;  %v5253_v47 = vld [vmem:[%s6574_s1 + $0x1e0] sm:$0xff]  }
 0x102   : > { %4785 = vmatpush3.bf16.msra.mxu1 %v5234_v32  ;;  %4788 = vmatprep.mubr.bf16.mxu1 %v4186_v61  ;;  %v4193_v49 = vcombine.low %v6190_v42, %v6194_v2  ;;  %v5244_v32 = vld [vmem:[#allocation2 + $0x30] sm:$0xff]   ;;  %v3051_v33 = vshll.u32 %v6204_v36, 16  ;;  %v3055_v34 = vshrl.u32 %v6204_v36, 16  ;;  %v3066_v61 = vshrl.u32 %v3020_v31, 16 }
 0x103   : > { %4786 = vmatprep.subr.bf16.mxu1 %v5236_v24 }
 0x104   : > { %4911 = vmatpush3.bf16.msra.mxu0 %v5231_v23  ;;  %v3017_v23 = vld [vmem:[#allocation2 + $0x18] sm:$0xf]  ;;  %v6223_v62 = vrot.slane %v3051_v33, 5  ;;  %v3057_v59 = vrot.slane %v3055_v34, 4  ;;  %v3068_v18 = vrot.slane %v3066_v61, 4 }
 0x105   : > { %4912 = vmatprep.subr.bf16.mxu0 %v5235_v53  ;;  %v3042_v14 = vshrl.u32 %v3017_v23, 16  ;;  %v3045_v9 = vshll.u32 %v3017_v23, 16  ;;  %v5256_v23 = vld [vmem:[#allocation2 + $0x60] sm:$0xff]   ;;  %v5260_v61 = vld [vmem:[%s6574_s1 + $0xf8] sm:$0xff]  }
 0x106   : > { %4787 = vmatpush3.bf16.msra.mxu1 %v5236_v24  ;;  %v3061_v24 = vshll.u32 %v6206_v29, 16 }
 0x107   : > { %4897 = vmatmul.mubr.bf16.gmra.mrb[12].mxu0 %v4297_v44  ;;  %4804 = vmatprep.subr.bf16.mxu1 %v5239_v10  ;;  %v3044_v27 = vrot.slane %v3042_v14, 4  ;;  %v3047_v3 = vrot.slane %v3045_v9, 5  ;;  %v3079_v44 = vshrl.u32 %v6225_v46, 16  ;;  %v6272_v9 = vrot.slane %v3099_v38, 5 }
 0x108   : > { %4913 = vmatpush3.bf16.msra.mxu0 %v5235_v53  ;;  %4916 = vmatprep.mubr.bf16.mxu0 %v5238_v57  ;;  %v3023_v53 = vld [vmem:[#allocation2 + $0x30] sm:$0xf]  ;;  %v6246_v35 = vrot.slane %v3061_v24, 5  ;;  %v6259_v57 = vrot.slane %v3075_v55, 5  ;;  %v6315_v55 = vld [vmem:[#allocation2 + $0x44] sm:$0x1] }
 0x109   : > { %4914 = vmatprep.subr.bf16.mxu0 %v5237_v19  ;;  %4789 = vmatmul.mubr.bf16.vlgmr.msra.gmra.mrb[0].mxu1 %v4187_v7  ;;  %v3048_v37 = vor.u32 %v3047_v3, %v3044_v27  ;;  %v3090_v12 = vshrl.u32 %v3023_v53, 16  ;;  %v3093_v20 = vshll.u32 %v3023_v53, 16  ;;  %v3081_v48 = vrot.slane %v3079_v44, 4  ;;  %v3026_v7 = vld [vmem:[#allocation2 + $0x3c] sm:$0xf]  ;;  %v5255_v27 = vld [vmem:[%s6574_s1 + $0x1e8] sm:$0xff]  }
 0x10a   : > { %4805 = vmatpush3.bf16.msra.mxu1 %v5239_v10  ;;  %4792 = vmatprep.mubr.bf16.mxu1 %v4188_v16  ;;  %v3072_v16 = vor.u32 %v3071_v17, %v3068_v18  ;;  %v3114_v34 = vshrl.u32 %v3026_v7, 16 }
 0x10b   : > { %4806 = vmatprep.subr.bf16.mxu1 %v5242_v25  ;;  %v6252_v54 = vrot.slane %v3048_v37, 4  ;;  %v6265_v52 = vrot.slane %v3090_v12, 4  ;;  %v3095_v14 = vrot.slane %v3093_v20, 5  ;;  %v3082_v33 = vor.u32 %v3081_v48, %v6259_v57  ;;  %v5258_v12 = vld [vmem:[#allocation2 + $0x6c] sm:$0xff]  }
 0x10c   : > { %4915 = vmatpush3.bf16.msra.mxu0 %v5237_v19  ;;  %v5254_v19 = vld [vmem:[%s6574_s1 + $0xe8] sm:$0xff]   ;;  %v6297_v3 = vrot.slane %v3072_v16, 4  ;;  %v3116_v44 = vrot.slane %v3114_v34, 4  ;;  %v6346_v34 = vld [vmem:[#allocation2 + $0x64] sm:$0xf] }
 0x10d   : > { %4932 = vmatprep.subr.bf16.mxu0 %v5241_v39  ;;  %v3054_v11 = vsel %vm5696_vm11, %v6252_v54, %v6223_v62  ;;  %v6309_v37 = vrot.slane %v3082_v33, 4  ;;  %v3096_v53 = vor.u32 %v3095_v14, %v6265_v52  ;;  %v5261_v54 = vld [vmem:[%s6574_s1 + $0x1f8] sm:$0xff]   ;;  %v3035_v33 = vld [vmem:[#allocation2 + $0x60] sm:$0xf] }
 0x10e   : > { %4807 = vmatpush3.bf16.msra.mxu1 %v5242_v25  ;;  %v6267_v25 = vld [vmem:[#allocation2 + $0x40] sm:$0xf]  ;;  %v5263_v52 = vld [vmem:[#allocation2 + $0x18] sm:$0xff]  }
 0x10f   : > { %4917 = vmatmul.mubr.bf16.vlgmr.msra.gmra.mrb[0].mxu0 %v5240_v1  ;;  %4808 = vmatprep.subr.bf16.mxu1 %v5245_v58  ;;  %v3105_v1 = vrot.slane %v3103_v15, 4  ;;  %v3123_v30 = vshll.u32 %v6267_v25, 16  ;;  %v3127_v28 = vshrl.u32 %v6267_v25, 16  ;;  %v3097_v38 = vrot.slane %v3096_v53, 4  ;;  %v6372_v53 = vld [vmem:[#allocation2 + $0x5c] sm:$0x1] }
 0x110   : > { %4933 = vmatpush3.bf16.msra.mxu0 %v5241_v39  ;;  %4920 = vmatprep.mubr.bf16.mxu0 %v5244_v32  ;;  %v5252_v39 = vld [vmem:[#allocation2 + $0x54] sm:$0xff]   ;;  %v3109_v32 = vshll.u32 %v6261_v43, 16  ;;  %v3133_v15 = vshll.u32 %v6315_v55, 16 }
 0x111   : > { %4934 = vmatprep.subr.bf16.mxu0 %v5243_v50  ;;  %4793 = vmatmul.mubr.bf16.gmra.mrb[4].mxu1 %v4189_v21  ;;  %v3058_v21 = vor.u32 %v3057_v59, %v6223_v62  ;;  %v5259_v62 = vld [vmem:[%s6574_s1 + $0x1f0] sm:$0xff]  }
 0x112   : > { %4809 = vmatpush3.bf16.msra.mxu1 %v5245_v58  ;;  %4796 = vmatprep.mubr.bf16.mxu1 %v4190_v8  ;;  %v3085_v8 = vshll.u32 %v6227_v13, 16  ;;  %v6281_v58 = vld [vmem:[#allocation2 + $0x4c] sm:$0xf] }
 0x113   : > { %4810 = vmatprep.subr.bf16.mxu1 %v5248_v0  ;;  %v6263_v10 = vrot.slane %v3058_v21, 4  ;;  %v3147_v24 = vshll.u32 %v6281_v58, 16  ;;  %v3151_v59 = vshrl.u32 %v6281_v58, 16  ;;  %v3129_v21 = vrot.slane %v3127_v28, 4 }
 0x114   : > { %4935 = vmatpush3.bf16.msra.mxu0 %v5243_v50  ;;  %v3117_v50 = vshll.u32 %v3026_v7, 16  ;;  %v6299_v31 = vrot.slane %v3085_v8, 5  ;;  %v3078_v7 = vsel %vm5696_vm11, %v6297_v3, %v6259_v57  ;;  %v5266_v57 = vld [vmem:[#allocation2 + $0x24] sm:$0xff]   ;;  %v3186_v3 = vshrl.u32 %v3035_v33, 16 }
 0x115   : > { %4936 = vmatprep.subr.bf16.mxu0 %v5247_v45  ;;  %v6324_v8 = vrot.slane %v3147_v24, 5 }
 0x116   : > { %4811 = vmatpush3.bf16.msra.mxu1 %v5248_v0  ;;  %v3088_v16 = vsel %vm5696_vm11, %v6309_v37, %v6299_v31  ;;  %v3189_v31 = vshll.u32 %v3035_v33, 16  ;;  %v6370_v37 = vld [vmem:[%s6574_s1 + $0x210] sm:$0xff]  }
 0x117   : > { %4921 = vmatmul.mubr.bf16.gmra.mrb[4].mxu0 %v5246_v40  ;;  %4812 = vmatprep.subr.bf16.mxu1 %v5251_v56  ;;  %v3106_v40 = vor.u32 %v3105_v1, %v6272_v9 }
 0x118   : > { %4937 = vmatpush3.bf16.msra.mxu0 %v5247_v45  ;;  %4924 = vmatprep.mubr.bf16.mxu0 %v5250_v51  ;;  %v3119_v51 = vrot.slane %v3117_v50, 5  ;;  %v3102_v50 = vsel %vm5696_vm11, %v3097_v38, %v6272_v9 }
 0x119   : > { %4938 = vmatprep.subr.bf16.mxu0 %v5249_v4  ;;  %4797 = vmatmul.mubr.bf16.gmra.mrb[8].mxu1 %v4191_v63  ;;  %v3029_v63 = vld [vmem:[#allocation2 + $0x48] sm:$0xf]  ;;  %v3107_v42 = vrot.slane %v3106_v40, 4 }
 0x11a   : > { %4813 = vmatpush3.bf16.msra.mxu1 %v5251_v56  ;;  %4800 = vmatprep.mubr.bf16.mxu1 %v4192_v5  ;;  %v3064_v5 = vsel %vm5696_vm11, %v6263_v10, %v6246_v35  ;;  %v3138_v45 = vshrl.u32 %v3029_v63, 16  ;;  %v3141_v0 = vshll.u32 %v3029_v63, 16  ;;  %v6317_v56 = vrot.slane %v3123_v30, 5  ;;  %v6319_v35 = vld [vmem:[#allocation2 + $0x50] sm:$0x1] }
 0x11b   : > { %4814 = vmatprep.subr.bf16.mxu1 %v5254_v19  ;;  %v4354_v20 = vcombine.low %v3054_v11, %v3064_v5  ;;  %v3120_v2 = vor.u32 %v3119_v51, %v3116_v44  ;;  %v3157_v48 = vshll.u32 %v6319_v35, 16  ;;  %v6332_v10 = vld [vmem:[#allocation2 + $0x58] sm:$0xf]  ;;  %v6351_v30 = vrot.slane %v3133_v15, 5  ;;  %v3038_v51 = vld [vmem:[#allocation2 + $0x6c] sm:$0xf] }
 0x11c   : > { %4939 = vmatpush3.bf16.msra.mxu0 %v5249_v4  ;;  %v6313_v4 = vrot.slane %v3109_v32, 5  ;;  %v3140_v18 = vrot.slane %v3138_v45, 4  ;;  %v3143_v17 = vrot.slane %v3141_v0, 5  ;;  %v3171_v28 = vshll.u32 %v6332_v10, 16 }
 0x11d   : > { %4940 = vmatprep.subr.bf16.mxu0 %v5253_v47  ;;  %v3175_v63 = vshrl.u32 %v6332_v10, 16  ;;  %v3121_v11 = vrot.slane %v3120_v2, 4  ;;  %v6363_v9 = vrot.slane %v3157_v48, 5  ;;  %v3195_v45 = vshll.u32 %v6346_v34, 16 }
 0x11e   : > { %4815 = vmatpush3.bf16.msra.mxu1 %v5254_v19  ;;  %v3153_v19 = vrot.slane %v3151_v59, 4  ;;  %v3199_v0 = vshrl.u32 %v6346_v34, 16  ;;  %v6374_v40 = vrot.slane %v3171_v28, 5  ;;  %v3210_v2 = vshrl.u32 %v3038_v51, 16 }
 0x11f   : > { %4925 = vmatmul.mubr.bf16.gmra.mrb[8].mxu0 %v5252_v39  ;;  %4816 = vmatprep.subr.bf16.mxu1 %v5257_v60  ;;  %v5264_v39 = vld [vmem:[%s6574_s1 + $0x200] sm:$0xff]   ;;  %v3126_v38 = vsel %vm5696_vm11, %v3121_v11, %v6317_v56 }
 0x120   : > { %4941 = vmatpush3.bf16.msra.mxu0 %v5253_v47  ;;  %4928 = vmatprep.mubr.bf16.mxu0 %v5256_v23  ;;  %v3032_v47 = vld [vmem:[#allocation2 + $0x54] sm:$0xf]  ;;  %v3144_v23 = vor.u32 %v3143_v17, %v3140_v18  ;;  %v3154_v14 = vor.u32 %v3153_v19, %v6324_v8  ;;  %v3191_v18 = vrot.slane %v3189_v31, 5  ;;  %v6379_v17 = vrot.slane %v3195_v45, 5 }
 0x121   : > { %4942 = vmatprep.subr.bf16.mxu0 %v5255_v27  ;;  %4801 = vmatmul.mubr.bf16.gmra.mrb[12].mxu1 %v4193_v49  ;;  %v3130_v49 = vor.u32 %v3129_v21, %v6317_v56  ;;  %v3162_v1 = vshrl.u32 %v3032_v47, 16  ;;  %v3165_v32 = vshll.u32 %v3032_v47, 16  ;;  %v6377_v21 = vld [vmem:[#allocation2 + $0x70] sm:$0xf]  ;;  %v3201_v19 = vrot.slane %v3199_v0, 4  ;;  %v6395_v56 = vld [vmem:[%s6574_s1 + $0x218] sm:$0xff]  }
 0x122   : > { %4817 = vmatpush3.bf16.msra.mxu1 %v5257_v60  ;;  %4820 = vmatprep.mubr.bf16.mxu1 %v5262_v6  ;;  %v3112_v60 = vsel %vm5696_vm11, %v3107_v42, %v6313_v4  ;;  %v3145_v24 = vrot.slane %v3144_v23, 4  ;;  %v3155_v59 = vrot.slane %v3154_v14, 4  ;;  %v4355_v6 = vcombine.low %v3078_v7, %v3088_v16  ;;  %v6387_v47 = vld [vmem:[#allocation2 + $0x68] sm:$0x1]  ;;  %v5270_v42 = vld [vmem:[#allocation2 + $0x3c] sm:$0xff]  }
 0x123   : > { %4818 = vmatprep.subr.bf16.mxu1 %v5260_v61  ;;  %v3131_v5 = vrot.slane %v3130_v49, 4  ;;  %v3177_v4 = vrot.slane %v3175_v63, 4  ;;  %v4356_v44 = vcombine.low %v3102_v50, %v3112_v60  ;;  %v3213_v49 = vshll.u32 %v3038_v51, 16  ;;  %v5273_v51 = vld [vmem:[%s6574_s1 + $0x228] sm:$0xff]  }
 0x124   : > { %4943 = vmatpush3.bf16.msra.mxu0 %v5255_v27  ;;  %v6358_v27 = vld [vmem:[%s6574_s1 + $0x208] sm:$0xff]   ;;  %v3219_v48 = vshll.u32 %v6377_v21, 16  ;;  %v3150_v7 = vsel %vm5696_vm11, %v3145_v24, %v6324_v8  ;;  %v3181_v23 = vshll.u32 %v6372_v53, 16 }
 0x125   : > { %4944 = vmatprep.subr.bf16.mxu0 %v5259_v62  ;;  %v3178_v16 = vor.u32 %v3177_v4, %v6374_v40  ;;  %v3215_v50 = vrot.slane %v3213_v49, 5  ;;  %v3447_v24 = vld [vmem:[#allocation2 + $0x48] sm:$0xe] }
 0x126   : > { %4819 = vmatpush3.bf16.msra.mxu1 %v5260_v61  ;;  %v3167_v61 = vrot.slane %v3165_v32, 5  ;;  %v3205_v32 = vshll.u32 %v6387_v47, 16  ;;  %v3183_v11 = vrot.slane %v3181_v23, 5 }
 0x127   : > { %4929 = vmatmul.mubr.bf16.gmra.mrb[12].mxu0 %v5258_v12  ;;  %4996 = vmatprep.subr.bf16.mxu1 %v5264_v39  ;;  %v3188_v12 = vrot.slane %v3186_v3, 4  ;;  %v3179_v60 = vrot.slane %v3178_v16, 4  ;;  %v5272_v3 = vld [vmem:[%s6574_s1 + $0x220] sm:$0xff]  }
 0x128   : > { %4945 = vmatpush3.bf16.msra.mxu0 %v5259_v62  ;;  %4948 = vmatprep.mubr.bf16.mxu0 %v4354_v20  ;;  %v3164_v62 = vrot.slane %v3162_v1, 4  ;;  %v5267_v20 = vld [vmem:[#allocation2 + $0x30] sm:$0xff]   ;;  %v3202_v1 = vor.u32 %v3201_v19, %v6379_v17  ;;  %v3207_v0 = vrot.slane %v3205_v32, 5  ;;  %v3449_v16 = vld [vmem:[#allocation2 + $0x60] sm:$0xe] }
 0x129   : > { %4946 = vmatprep.subr.bf16.mxu0 %v5261_v54  ;;  %4821 = vmatmul.mubr.bf16.vlgmr.msra.gmra.mrb[0].mxu1 %v5263_v52  ;;  %v3223_v52 = vshrl.u32 %v6377_v21, 16  ;;  %v3192_v14 = vor.u32 %v3191_v18, %v3188_v12  ;;  %v4374_v12 = vrot.slane %v3447_v24, 9 }
 0x12a   : > { %5004 = vmatpush3.bf16.msra.mxu1 %v5264_v39  ;;  %4824 = vmatprep.mubr.bf16.mxu1 %v5266_v57  ;;  %v3168_v15 = vor.u32 %v3167_v61, %v3164_v62  ;;  %v3212_v57 = vrot.slane %v3210_v2, 4  ;;  %v3203_v45 = vrot.slane %v3202_v1, 4  ;;  %v5274_v62 = vld [vmem:[#allocation2 + $0x54] sm:$0xff]  }
 0x12b   : > { %4997 = vmatprep.subr.bf16.mxu1 %v6358_v27  ;;  %v3225_v28 = vrot.slane %v3223_v52, 4  ;;  %v3193_v31 = vrot.slane %v3192_v14, 4  ;;  %v3448_v52 = vld [vmem:[#allocation2 + $0x54] sm:$0xe] }
 0x12c   : > { %4947 = vmatpush3.bf16.msra.mxu0 %v5261_v54  ;;  %v3136_v54 = vsel %vm5696_vm11, %v3131_v5, %v6351_v30  ;;  %v3169_v8 = vrot.slane %v3168_v15, 4  ;;  %v6410_v30 = vrot.slane %v3219_v48, 5  ;;  %v6414_v5 = vld [vmem:[#allocation2 + $0x74] sm:$0x1]  ;;  %v3216_v61 = vor.u32 %v3215_v50, %v3212_v57 }
 0x12d   : > { %4964 = vmatprep.subr.bf16.mxu0 %v5264_v39  ;;  %v4357_v33 = vcombine.low %v3126_v38, %v3136_v54  ;;  %v3229_v4 = vshll.u32 %v6414_v5, 16  ;;  %v3198_v19 = vsel %vm5696_vm11, %v3193_v31, %v6379_v17  ;;  %v3480_v15 = vrot.slane %v6206_v29, 5  ;;  %v5276_v29 = vld [vmem:[%s6574_s1 + $0x230] sm:$0xff]  }
 0x12e   : > { %5005 = vmatpush3.bf16.msra.mxu1 %v6358_v27  ;;  %v4375_v57 = vrot.slane %v3448_v52, 9  ;;  %v3484_v50 = vrot.slane %v6225_v46, 5  ;;  %v3529_v13 = vrot.slane %v6414_v5, 5 }
 0x12f   : > { %4949 = vmatmul.mubr.bf16.vlgmr.msra.gmra.mrb[0].mxu0 %v4355_v6  ;;  %4998 = vmatprep.subr.bf16.mxu1 %v6370_v37  ;;  %v3226_v6 = vor.u32 %v3225_v28, %v6410_v30  ;;  %v3231_v49 = vrot.slane %v3229_v4, 5  ;;  %v4376_v28 = vrot.slane %v3449_v16, 9 }
 0x130   : > { %4965 = vmatpush3.bf16.msra.mxu0 %v5264_v39  ;;  %4952 = vmatprep.mubr.bf16.mxu0 %v4356_v44  ;;  %v3160_v39 = vsel %vm5696_vm11, %v3155_v59, %v6363_v9  ;;  %v3505_v9 = vrot.slane %v6281_v58, 5  ;;  %v3477_v59 = vrot.slane %v6204_v36, 5  ;;  %v3174_v58 = vsel %vm5696_vm11, %v3169_v8, %v6374_v40  ;;  %v3443_v44 = vld [vmem:[#allocation2 + $0x18] sm:$0xe]  ;;  %v3444_v8 = vld [vmem:[#allocation2 + $0x24] sm:$0xe] }
 0x131   : > { %4966 = vmatprep.subr.bf16.mxu0 %v6358_v27  ;;  %4825 = vmatmul.mubr.bf16.gmra.mrb[4].mxu1 %v5267_v20  ;;  %v4358_v63 = vcombine.low %v3150_v7, %v3160_v39  ;;  %v3184_v36 = vsel %vm5696_vm11, %v3179_v60, %v3183_v11  ;;  %v3508_v40 = vrot.slane %v6319_v35, 5  ;;  %v3512_v20 = vrot.slane %v6332_v10, 5  ;;  %v5275_v39 = vld [vmem:[#allocation2 + $0x60] sm:$0xff]  }
 0x132   : > { %5006 = vmatpush3.bf16.msra.mxu1 %v6370_v37  ;;  %4828 = vmatprep.mubr.bf16.mxu1 %v5270_v42  ;;  %v3507_v18 = vrot.slane %v3505_v9, 4  ;;  %v4370_v38 = vrot.slane %v3443_v44, 9  ;;  %v3479_v54 = vrot.slane %v3477_v59, 4  ;;  %v4359_v42 = vcombine.low %v3174_v58, %v3184_v36 }
 0x133   : > { %4999 = vmatprep.subr.bf16.mxu1 %v6395_v56  ;;  %v3217_v35 = vrot.slane %v3216_v61, 4  ;;  %v3227_v2 = vrot.slane %v3226_v6, 4  ;;  %v3506_v48 = vsel %vm5951_vm14, %v4374_v12, %v3505_v9  ;;  %v3519_v7 = vrot.slane %v6346_v34, 5  ;;  %v3445_v9 = vld [vmem:[#allocation2 + $0x30] sm:$0xe] }
 0x134   : > { %4967 = vmatpush3.bf16.msra.mxu0 %v6358_v27  ;;  %v5271_v27 = vld [vmem:[#allocation2 + $0x48] sm:$0xff]   ;;  %v3509_v10 = vsel %vm5951_vm14, %v3507_v18, %v3508_v40  ;;  %v3514_v23 = vrot.slane %v3512_v20, 4  ;;  %v3478_v14 = vsel %vm5951_vm14, %v4370_v38, %v3477_v59  ;;  %v3481_v1 = vsel %vm5951_vm14, %v3479_v54, %v3480_v15  ;;  %v3446_v18 = vld [vmem:[#allocation2 + $0x3c] sm:$0xe] }
 0x135   : > { %4968 = vmatprep.subr.bf16.mxu0 %v6370_v37  ;;  %v3222_v34 = vsel %vm5696_vm11, %v3217_v35, %v6410_v30  ;;  %v3232_v32 = vsel %vm5696_vm11, %v3227_v2, %v3231_v49  ;;  %v3522_v60 = vrot.slane %v6387_v47, 5  ;;  %v4371_v30 = vrot.slane %v3444_v8, 9 }
 0x136   : > { %5007 = vmatpush3.bf16.msra.mxu1 %v6395_v56  ;;  %v4394_v31 = vcombine.low %v3478_v14, %v3481_v1  ;;  %v3513_v46 = vsel %vm5951_vm14, %v4375_v57, %v3512_v20  ;;  %v3486_v47 = vrot.slane %v3484_v50, 4  ;;  %v4372_v59 = vrot.slane %v3445_v9, 9 }
 0x137   : > { %4953 = vmatmul.mubr.bf16.gmra.mrb[4].mxu0 %v4357_v33  ;;  %5000 = vmatprep.subr.bf16.mxu1 %v5272_v3  ;;  %v4398_v33 = vcombine.low %v3506_v48, %v3509_v10  ;;  %v3493_v58 = vrot.slane %v3491_v41, 4  ;;  %v3485_v44 = vsel %vm5951_vm14, %v4371_v30, %v3484_v50  ;;  %v3501_v38 = vrot.slane %v6315_v55, 5 }
 0x138   : > { %4969 = vmatpush3.bf16.msra.mxu0 %v6370_v37  ;;  %4956 = vmatprep.mubr.bf16.mxu0 %v4358_v63  ;;  %v3208_v37 = vsel %vm5696_vm11, %v3203_v45, %v3207_v0  ;;  %v3521_v63 = vrot.slane %v3519_v7, 4  ;;  %v3526_v45 = vrot.slane %v6377_v21, 5  ;;  %v3520_v0 = vsel %vm5951_vm14, %v4376_v28, %v3519_v7 }
 0x139   : > { %4970 = vmatprep.subr.bf16.mxu0 %v6395_v56  ;;  %4829 = vmatmul.mubr.bf16.gmra.mrb[8].mxu1 %v5271_v27  ;;  %v4360_v17 = vcombine.low %v3198_v19, %v3208_v37  ;;  %v3450_v27 = vld [vmem:[#allocation2 + $0x6c] sm:$0xe]  ;;  %v3488_v36 = vsel %vm5951_vm14, %v3486_v47, %v3487_v26 }
 0x13a   : > { %5008 = vmatpush3.bf16.msra.mxu1 %v5272_v3  ;;  %4832 = vmatprep.mubr.bf16.mxu1 %v5274_v62  ;;  %v3523_v24 = vsel %vm5951_vm14, %v3521_v63, %v3522_v60  ;;  %v3494_v62 = vrot.slane %v6261_v43, 5  ;;  %v4377_v6 = vrot.slane %v3450_v27, 9  ;;  %v3528_v4 = vrot.slane %v3526_v45, 4 }
 0x13b   : > { %5001 = vmatprep.subr.bf16.mxu1 %v5273_v51  ;;  %v4400_v21 = vcombine.low %v3520_v0, %v3523_v24  ;;  %v3492_v43 = vsel %vm5951_vm14, %v4372_v59, %v3491_v41  ;;  %v4395_v5 = vcombine.low %v3485_v44, %v3488_v36 }
 0x13c   : > { %4971 = vmatpush3.bf16.msra.mxu0 %v6395_v56  ;;  %v3515_v56 = vrot.slane %v6372_v53, 5  ;;  %v5277_v53 = vld [vmem:[%s6574_s1 + $0x238] sm:$0xff]   ;;  %v3495_v12 = vsel %vm5951_vm14, %v3493_v58, %v3494_v62  ;;  %v3527_v40 = vsel %vm5951_vm14, %v4377_v6, %v3526_v45  ;;  %v3530_v19 = vsel %vm5951_vm14, %v3528_v4, %v3529_v13 }
 0x13d   : > { %4972 = vmatprep.subr.bf16.mxu0 %v5272_v3  ;;  %v4396_v37 = vcombine.low %v3492_v43, %v3495_v12  ;;  %v4401_v54 = vcombine.low %v3527_v40, %v3530_v19 }
 0x13e   : > { %5009 = vmatpush3.bf16.msra.mxu1 %v5273_v51  ;;  %v3516_v11 = vsel %vm5951_vm14, %v3514_v23, %v3515_v56 }
 0x13f   : > { %4957 = vmatmul.mubr.bf16.gmra.mrb[8].mxu0 %v4359_v42  ;;  %5002 = vmatprep.subr.bf16.mxu1 %v5276_v29  ;;  %v4399_v61 = vcombine.low %v3513_v46, %v3516_v11 }
 0x140   : > { %4973 = vmatpush3.bf16.msra.mxu0 %v5272_v3  ;;  %4960 = vmatprep.mubr.bf16.mxu0 %v4360_v17  ;;  %v4361_v3 = vcombine.low %v3222_v34, %v3232_v32 }
 0x141   : > { %4974 = vmatprep.subr.bf16.mxu0 %v5273_v51  ;;  %4833 = vmatmul.mubr.bf16.gmra.mrb[12].mxu1 %v5275_v39 }
 0x142   : > { %5010 = vmatpush3.bf16.msra.mxu1 %v5276_v29  ;;  %4988 = vmatprep.mubr.bf16.mxu1 %v4398_v33 }
 0x143   : > { %5003 = vmatprep.subr.bf16.mxu1 %v5277_v53 }
 0x144   : > { %4975 = vmatpush3.bf16.msra.mxu0 %v5273_v51  ;;  %v3498_v51 = vrot.slane %v6267_v25, 5  ;;  %v4373_v25 = vrot.slane %v3446_v18, 9 }
 0x145   : > { %4976 = vmatprep.subr.bf16.mxu0 %v5276_v29 }
 0x146   : > { %5011 = vmatpush3.bf16.msra.mxu1 %v5277_v53  ;;  %v3500_v20 = vrot.slane %v3498_v51, 4  ;;  %v3499_v15 = vsel %vm5951_vm14, %v4373_v25, %v3498_v51 }
 0x147   : > { %4961 = vmatmul.mubr.bf16.gmra.mrb[12].mxu0 %v4361_v3 }
 0x148   : > { %4977 = vmatpush3.bf16.msra.mxu0 %v5276_v29  ;;  %4980 = vmatprep.mubr.bf16.mxu0 %v4394_v31  ;;  %v3502_v42 = vsel %vm5951_vm14, %v3500_v20, %v3501_v38 }
 0x149   : > { %4978 = vmatprep.subr.bf16.mxu0 %v5277_v53  ;;  %4989 = vmatmul.mubr.bf16.vlgmr.msra.gmra.mrb[16].mxu1 %v4399_v61  ;;  %v4397_v35 = vcombine.low %v3499_v15, %v3502_v42 }
 0x14a   : > { %4992 = vmatprep.mubr.bf16.mxu1 %v4400_v21 }
 0x14c   : > { %4979 = vmatpush3.bf16.msra.mxu0 %v5277_v53 }
 0x14f   : > { %4981 = vmatmul.mubr.bf16.vlgmr.msra.gmra.mrb[0].mxu0 %v4395_v5 }
 0x150   : > { %4984 = vmatprep.mubr.bf16.mxu0 %v4396_v37 }
 0x151   : > { %4993 = vmatmul.mubr.bf16.gmra.mrb[20].mxu1 %v4401_v54 }
 0x157   : > { %4985 = vmatmul.mubr.bf16.gmra.mrb[4].mxu0 %v4397_v35 }
 0x1fc   : > { %v4822_v2 = vpop.f32.mrb[0].mxu1 }
 0x1fd   : > { %v1971_v49 = vpop.f32.mrb[1].mxu1 }
 0x1fe   : > { %v4823_v17 = vpop.f32.mrb[2].mxu1 }
 0x1ff   : > { %v1974_v48 = vpop.f32.mrb[3].mxu1 }
 0x204   : > { %v6498_v10 = vpop.f32.mrb[4].mxu1 }
 0x205   : > { %v6500_v52 = vpop.f32.mrb[5].mxu1 }
 0x206   : > { %v6502_v55 = vpop.f32.mrb[6].mxu1 }
 0x207   : > { %v6504_v7 = vpop.f32.mrb[7].mxu1 }
 0x20c   : > { %v4830_v29 = vpop.f32.mrb[8].mxu1 }
 0x20d   : > { %v2003_v16 = vpop.f32.mrb[9].mxu1 }
 0x20e   : > { %v4831_v23 = vpop.f32.mrb[10].mxu1 }
 0x20f   : > { %v2006_v22 = vpop.f32.mrb[11].mxu1 }
 0x212   : > { %v4958_v56 = vpop.f32.mrb[8].mxu0 }
 0x213   : > { %v5020_v39 = vadd.f32 %v4958_v56, %v4830_v29  ;;  %v3396_v14 = vpop.f32.mrb[9].mxu0 }
 0x214   : > { %v5022_v1 = vadd.f32 %v3396_v14, %v2003_v16  ;;  %v4959_v34 = vpop.f32.mrb[10].mxu0  ;;  %v4834_v8 = vpop.f32.mrb[12].mxu1 }
 0x215   : > { %v5024_v32 = vadd.f32 %v4959_v34, %v4831_v23  ;;  %v3399_v33 = vpop.f32.mrb[11].mxu0  ;;  %v2019_v53 = vpop.f32.mrb[13].mxu1 }
 0x216   : > { %v5026_v57 = vadd.f32 %v3399_v33, %v2006_v22  ;;  %v4835_v50 = vpop.f32.mrb[14].mxu1 }
 0x217   : > { %v2022_v28 = vpop.f32.mrb[15].mxu1 }
 0x21a   : > { %v4962_v63 = vpop.f32.mrb[12].mxu0 }
 0x21b   : > { %v5028_v60 = vadd.f32 %v4962_v63, %v4834_v8  ;;  %v3412_v41 = vpop.f32.mrb[13].mxu0 }
 0x21c   : > { %v5030_v30 = vadd.f32 %v3412_v41, %v2019_v53  ;;  %v4963_v11 = vpop.f32.mrb[14].mxu0  ;;  %v4990_v31 = vpop.f32.mrb[16].mxu1 }
 0x21d   : > { %v5032_v9 = vadd.f32 %v4963_v11, %v4835_v50  ;;  %v3415_v3 = vpop.f32.mrb[15].mxu0  ;;  %v6506_v45 = vadd.f32 %v5020_v39, %v4990_v31  ;;  %v3694_v47 = vpop.f32.mrb[17].mxu1 }
 0x21e   : > { %v5034_v46 = vadd.f32 %v3415_v3, %v2022_v28  ;;  %v6508_v26 = vadd.f32 %v5022_v1, %v3694_v47  ;;  %v4991_v0 = vpop.f32.mrb[18].mxu1 }
 0x21f   : > { %v6510_v24 = vadd.f32 %v5024_v32, %v4991_v0  ;;  %v3697_v27 = vpop.f32.mrb[19].mxu1 }
 0x220   : > { %v6512_v59 = vadd.f32 %v5026_v57, %v3697_v27  ;;  %v3851_v3 = vmul.f32 %v6508_v26, %v6508_v26  ;;  %v3853_v27 = vmul.f32 %v6506_v45, %v6506_v45 }
 0x221   : > { %v4537_v62 = vpack.c.bf16 %v6510_v24, %v6506_v45 }
 0x222   : > { %v4982_v58 = vpop.f32.mrb[0].mxu0  ;;  %v4532_v6 = vpack.c.bf16 %v6512_v59, %v6508_v26 }
 0x223   : > { %v5012_v61 = vadd.f32 %v4982_v58, %v4822_v2  ;;  %v3662_v21 = vpop.f32.mrb[1].mxu0  ;;  %4561 = vst [vmem:[%s5473_s20 + $0x28] sm:$0xff] %v4537_v62  }
 0x224   : > { %v5013_v4 = vadd.f32 %v3662_v21, %v1971_v49  ;;  %v4983_v13 = vpop.f32.mrb[2].mxu0  ;;  %4560 = vst [vmem:[%s5473_s20 + $0x20] sm:$0xff] %v4532_v6   ;;  %v4994_v51 = vpop.f32.mrb[20].mxu1 }
 0x225   : > { %v5014_v44 = vadd.f32 %v4983_v13, %v4823_v17  ;;  %v3665_v36 = vpop.f32.mrb[3].mxu0  ;;  %v6520_v12 = vadd.f32 %v5028_v60, %v4994_v51  ;;  %v3710_v18 = vpop.f32.mrb[21].mxu1  ;;  %v3845_v35 = vmul.f32 %v5012_v61, %v5012_v61 }
 0x226   : > { %v5015_v43 = vadd.f32 %v3665_v36, %v1974_v48  ;;  %v5031_v40 = vadd.f32 %v5030_v30, %v3710_v18  ;;  %v4995_v19 = vpop.f32.mrb[22].mxu1  ;;  %v3843_v37 = vmul.f32 %v5013_v4, %v5013_v4 }
 0x227   : > { %v4517_v5 = vpack.c.bf16 %v5014_v44, %v5012_v61  ;;  %v3713_v54 = vpop.f32.mrb[23].mxu1  ;;  %v5033_v15 = vadd.f32 %v5032_v9, %v4995_v19  ;;  %v3846_v22 = vmul.f32 %v5014_v44, %v5014_v44 }
 0x228   : > { %v4512_v25 = vpack.c.bf16 %v5015_v43, %v5013_v4  ;;  %v3821_v20 = vadd.f32 %v5015_v43, %v5013_v4  ;;  %v3844_v38 = vmul.f32 %v5015_v43, %v5015_v43  ;;  %v5035_v42 = vadd.f32 %v5034_v46, %v3713_v54 }
 0x229   : > { %4557 = vst [vmem:[%s5473_s20 + $0x8] sm:$0xff] %v4517_v5   ;;  %v4547_v16 = vpack.c.bf16 %v5033_v15, %v6520_v12 }
 0x22a   : > { %4513 = vst [vmem:[%s5473_s20] sm:$0xff] %v4512_v25   ;;  %v3822_v2 = vadd.f32 %v5012_v61, %v3821_v20  ;;  %v3859_v49 = vadd.f32 %v3844_v38, %v3843_v37  ;;  %v4986_v17 = vpop.f32.mrb[4].mxu0  ;;  %v4542_v23 = vpack.c.bf16 %v5035_v42, %v5031_v40  ;;  %v3854_v61 = vmul.f32 %v6510_v24, %v6510_v24 }
 0x22b   : > { %v5016_v48 = vadd.f32 %v4986_v17, %v6498_v10  ;;  %v3678_v29 = vpop.f32.mrb[5].mxu0  ;;  %4563 = vst [vmem:[%s5473_s20 + $0x38] sm:$0xff] %v4547_v16   ;;  %v3856_v36 = vmul.f32 %v5035_v42, %v5035_v42 }
 0x22c   : > { %v3860_v56 = vadd.f32 %v3859_v49, %v3845_v35  ;;  %v5017_v39 = vadd.f32 %v3678_v29, %v6500_v52  ;;  %v3823_v14 = vadd.f32 %v5014_v44, %v3822_v2  ;;  %v4987_v1 = vpop.f32.mrb[6].mxu0  ;;  %4562 = vst [vmem:[%s5473_s20 + $0x30] sm:$0xff] %v4542_v23  }
 0x22d   : > { %v5018_v34 = vadd.f32 %v4987_v1, %v6502_v55  ;;  %v3681_v32 = vpop.f32.mrb[7].mxu0  ;;  %v3849_v52 = vmul.f32 %v5016_v48, %v5016_v48 }
 0x22e   : > { %v3824_v33 = vadd.f32 %v5017_v39, %v3823_v14  ;;  %v3847_v8 = vmul.f32 %v5017_v39, %v5017_v39  ;;  %v3861_v10 = vadd.f32 %v3860_v56, %v3846_v22  ;;  %v5019_v57 = vadd.f32 %v3681_v32, %v6504_v7 }
 0x22f   : > { %v4527_v53 = vpack.c.bf16 %v5018_v34, %v5016_v48  ;;  %v3850_v11 = vmul.f32 %v5018_v34, %v5018_v34  ;;  %v3852_v7 = vmul.f32 %v6512_v59, %v6512_v59 }
 0x230   : > { %v3862_v50 = vadd.f32 %v3861_v10, %v3847_v8  ;;  %v4522_v28 = vpack.c.bf16 %v5019_v57, %v5017_v39  ;;  %v3825_v63 = vadd.f32 %v5019_v57, %v3824_v33  ;;  %v3848_v60 = vmul.f32 %v5019_v57, %v5019_v57 }
 0x231   : > { %4559 = vst [vmem:[%s5473_s20 + $0x18] sm:$0xff] %v4527_v53  }
 0x232   : > { %4558 = vst [vmem:[%s5473_s20 + $0x10] sm:$0xff] %v4522_v28   ;;  %v3826_v41 = vadd.f32 %v5016_v48, %v3825_v63  ;;  %v3863_v30 = vadd.f32 %v3862_v50, %v3848_v60 }
 0x234   : > { %v3827_v55 = vadd.f32 %v5018_v34, %v3826_v41  ;;  %v3864_v9 = vadd.f32 %v3863_v30, %v3849_v52 }
 0x236   : > { %v3828_v31 = vadd.f32 %v6508_v26, %v3827_v55  ;;  %v3865_v46 = vadd.f32 %v3864_v9, %v3850_v11  ;;  %v3855_v26 = vmul.f32 %v5031_v40, %v5031_v40 }
 0x238   : > { %v3866_v47 = vadd.f32 %v3865_v46, %v3851_v3  ;;  %v3829_v0 = vadd.f32 %v6512_v59, %v3828_v31  ;;  %v3857_v59 = vmul.f32 %v6520_v12, %v6520_v12 }
 0x23a   : > { %v3830_v58 = vadd.f32 %v6506_v45, %v3829_v0  ;;  %v3867_v62 = vadd.f32 %v3866_v47, %v3852_v7  ;;  %v3858_v45 = vmul.f32 %v5033_v15, %v5033_v15 }
 0x23c   : > { %v3831_v21 = vadd.f32 %v6510_v24, %v3830_v58  ;;  %v3868_v6 = vadd.f32 %v3867_v62, %v3853_v27 }
 0x23e   : > { %v3832_v4 = vadd.f32 %v5031_v40, %v3831_v21  ;;  %v3869_v13 = vadd.f32 %v3868_v6, %v3854_v61 }
 0x240   : > { %v3833_v44 = vadd.f32 %v5035_v42, %v3832_v4  ;;  %v3870_v51 = vadd.f32 %v3869_v13, %v3855_v26 }
 0x242   : > { %v3834_v43 = vadd.f32 %v6520_v12, %v3833_v44  ;;  %v3871_v18 = vadd.f32 %v3870_v51, %v3856_v36 }
 0x244   : > { %v3835_v5 = vadd.f32 %v5033_v15, %v3834_v43  ;;  %v3872_v19 = vadd.f32 %v3871_v18, %v3857_v59 }
 0x246   : > { %v3836_v37 = vrot.slane %v3835_v5, 4  ;;  %v3873_v24 = vadd.f32 %v3872_v19, %v3858_v45 }
 0x248   : > { %v3837_v25 = vadd.f32 %v3836_v37, %v3835_v5  ;;  %v3874_v20 = vrot.slane %v3873_v24, 4 }
 0x24a   : > { %v3838_v40 = vrot.slane %v3837_v25, 2  ;;  %v3875_v38 = vadd.f32 %v3874_v20, %v3873_v24 }
 0x24c   : > { %v3839_v54 = vadd.f32 %v3838_v40, %v3837_v25  ;;  %v3876_v42 = vrot.slane %v3875_v38, 2 }
 0x24e   : > { %v3840_v35 = vrot.slane %v3839_v54, 1  ;;  %v3877_v2 = vadd.f32 %v3876_v42, %v3875_v38 }
 0x250   : > { %v3841_v49 = vadd.f32 %v3840_v35, %v3839_v54  ;;  %v3878_v17 = vrot.slane %v3877_v2, 1 }
 0x252   : > { %3842 = vst [vmem:[%s306_s12] sm:$0x1] %v3841_v49  ;;  %v3879_v12 = vadd.f32 %v3878_v17, %v3877_v2 }
 0x254   : > { %3880 = vst [vmem:[%s313_s16] sm:$0x1] %v3879_v12 }
 0x255 PF: > { %s17_s25 = sadd.s32 1, %s5320_s25   ;;  %s6601_s21 = smov %s5312_s23 }
 0x256   : > { %p14_p12 = scmp.ge.s32.totalorder %s17_s25, 6   ;;  %s6602_s22 = smov %s5316_s24 }
 0x257   : > { %s6603_s23 = smov %s6606_s26  ;;  %s6604_s24 = smov %s6610_s27 }
 0x258   :  { %16 = sbr.rel (!%p14_p12) target bundleno = 3 (0x3), region = 121 }

// kernel: basic_block_forward.3
= control target key start
LH: loop header
LB: loop body
LE: loop exit
PB: predicated region body
PF: predicated region fallthrough
CT: control target
= control target key end

     0   :  { %s4333_s15 = smov 0   ;;  %s4335_s16 = smov 0   ;;  %s5339_s0 = inlined_call_operand.vmem [shape: f32[2,16,16,8], index: 0, kind: input, shape index: {}]   ;;  %s5340_s1 = inlined_call_operand.vmem [shape: bf16[9,8,128], index: 1, kind: input, shape index: {}]   ;;  %s5341_s2 = inlined_call_operand.vmem [shape: bf16[2,16,16,128], index: 2, kind: output, shape index: {0}]   ;;  %s5342_s3 = inlined_call_operand.vmem [shape: f32[2,2,1,128], index: 3, kind: output, shape index: {1}]   ;;  %s5343_s4 = inlined_call_operand.vmem [shape: f32[2,2,1,128], index: 4, kind: output, shape index: {2}]  }
   0x1   :  { %s4337_s17 = smov 0   ;;  %s4339_s18 = smov 0  }
   0x2   :  { %s4341_s19 = smov 0  }
   0x3 LB: > { %s24_s20 = sadd.s32 1, %s4296_s17  ;;  %s27_s21 = sadd.s32 1, %s4300_s18  ;;  %s4304_s19 = sphi %s4341_s19, %s15_s19   ;;  %s4300_s18 = sphi %s4339_s18, %s5376_s18   ;;  %s4296_s17 = sphi %s4337_s17, %s5375_s17   ;;  %s4292_s16 = sphi %s4335_s16, %s5374_s16   ;;  %s4288_s15 = sphi %s4333_s15, %s5373_s15  }
   0x4   : > { %p25_p0 = scmp.ge.s32.totalorder %s24_s20, 2  ;;  %p3495_p1 = scmp.ge.s32.totalorder %s4304_s19, 1 }
   0x5   : > { %p185_p2 = scmp.lt.s32.totalorder %s4304_s19, 5 }
   0x6   : > { %s5378_s20 = smov (%p25_p0, %s24_s20), 0  ;;  %s5380_s21 = smov (!%p25_p0, %s27_s21), %s4300_s18 }
   0x7   : > { %p186_p3 = pnand %p3495_p1, %p185_p2  ;;  %p29_p4 = scmp.ge.s32.totalorder %s5380_s21, 2 }
   0x9   : > { %s5382_s21 = smov (%p29_p4, %s5380_s21), 0  ;;  %189 = sbr.rel (%p186_p3) target bundleno = 529 (0x211), region = 28 }
  0x10   : > { %vm262_vm0 = vcmask 57344   ;;  %vm263_vm1 = vsmask.f32 256  ;;  %v268_v0 = vld [vmem:[#allocation2 + $0xc] sm:$0x1]  ;;  %p230_p5 = scmp.lt.s32.totalorder %s4292_s16, 1 }
  0x11   : > { %vm4367_vm2 = vmand %vm262_vm0, %vm263_vm1  ;;  %v271_v2 = vld [vmem:[#allocation2 + $0x18] sm:$0x1]  ;;  %v274_v3 = vld [vmem:[#allocation2 + $0x24] sm:$0x1]  ;;  %vm295_vm3 = vsmask.f32 7938 }
  0x12   : > { %v269_v4 = vsel %vm4367_vm2, 0, %v268_v0  ;;  %v272_v5 = vsel %vm4367_vm2, 0, %v271_v2  ;;  %v275_v6 = vsel %vm4367_vm2, 0, %v274_v3  ;;  %v277_v7 = vld [vmem:[#allocation2 + $0x30] sm:$0x1]  ;;  %s5384_s16 = smov (!%p230_p5, %s4292_s16), 1  ;;  %vm4383_vm4 = vmand %vm262_vm0, %vm295_vm3 }
  0x13   : > { %270 = vst [vmem:[#allocation2 + $0xc] sm:$0x1] %v269_v4  ;;  %273 = vst [vmem:[#allocation2 + $0x18] sm:$0x1] %v272_v5  ;;  %v278_v8 = vsel %vm4367_vm2, 0, %v277_v7  ;;  %s4388_s22 = sshll.u32 %s4288_s15, 3 }
  0x14   : > { %276 = vst [vmem:[#allocation2 + $0x24] sm:$0x1] %v275_v6  ;;  %v280_v9 = vld [vmem:[#allocation2 + $0x3c] sm:$0x1]  ;;  %v283_v10 = vld [vmem:[#allocation2 + $0x48] sm:$0x1] }
  0x15   : > { %279 = vst [vmem:[#allocation2 + $0x30] sm:$0x1] %v278_v8  ;;  %v281_v12 = vsel %vm4367_vm2, 0, %v280_v9  ;;  %v284_v13 = vsel %vm4367_vm2, 0, %v283_v10  ;;  %v286_v14 = vld [vmem:[#allocation2 + $0x54] sm:$0x1] }
  0x16   : > { %v289_v15 = vld [vmem:[#allocation2 + $0x60] sm:$0x1]  ;;  %282 = vst [vmem:[#allocation2 + $0x3c] sm:$0x1] %v281_v12  ;;  %285 = vst [vmem:[#allocation2 + $0x48] sm:$0x1] %v284_v13 }
  0x17   : > { %v287_v16 = vsel %vm4367_vm2, 0, %v286_v14  ;;  %v290_v17 = vsel %vm4367_vm2, 0, %v289_v15  ;;  %v300_v18 = vld [vmem:[#allocation2 + $0x14] sm:$0x1]  ;;  %v303_v19 = vld [vmem:[#allocation2 + $0x20] sm:$0x1] }
  0x18   : > { %288 = vst [vmem:[#allocation2 + $0x54] sm:$0x1] %v287_v16  ;;  %291 = vst [vmem:[#allocation2 + $0x60] sm:$0x1] %v290_v17  ;;  %v301_v20 = vsel %vm4383_vm4, 0, %v300_v18  ;;  %v304_v21 = vsel %vm4383_vm4, 0, %v303_v19 }
  0x19   : > { %v306_v22 = vld [vmem:[#allocation2 + $0x2c] sm:$0x1]  ;;  %v309_v23 = vld [vmem:[#allocation2 + $0x38] sm:$0x1]  ;;  %302 = vst [vmem:[#allocation2 + $0x14] sm:$0x1] %v301_v20 }
  0x1a   : > { %305 = vst [vmem:[#allocation2 + $0x20] sm:$0x1] %v304_v21  ;;  %v307_v24 = vsel %vm4383_vm4, 0, %v306_v22  ;;  %v310_v25 = vsel %vm4383_vm4, 0, %v309_v23  ;;  %v312_v26 = vld [vmem:[#allocation2 + $0x44] sm:$0x1] }
  0x1b   : > { %v315_v27 = vld [vmem:[#allocation2 + $0x50] sm:$0x1]  ;;  %308 = vst [vmem:[#allocation2 + $0x2c] sm:$0x1] %v307_v24  ;;  %311 = vst [vmem:[#allocation2 + $0x38] sm:$0x1] %v310_v25 }
  0x1c   : > { %v313_v28 = vsel %vm4383_vm4, 0, %v312_v26  ;;  %v316_v29 = vsel %vm4383_vm4, 0, %v315_v27  ;;  %v318_v30 = vld [vmem:[#allocation2 + $0x5c] sm:$0x1]  ;;  %v321_v31 = vld [vmem:[#allocation2 + $0x68] sm:$0x1] }
  0x1d   : > { %314 = vst [vmem:[#allocation2 + $0x44] sm:$0x1] %v313_v28  ;;  %317 = vst [vmem:[#allocation2 + $0x50] sm:$0x1] %v316_v29  ;;  %v319_v32 = vsel %vm4383_vm4, 0, %v318_v30  ;;  %v322_v33 = vsel %vm4383_vm4, 0, %v321_v31 }
  0x1e   : > { %v265_v34 = vld [vmem:[#allocation2] sm:$0x1]  ;;  %v292_v35 = vld [vmem:[#allocation2 + $0x6c] sm:$0x1]  ;;  %320 = vst [vmem:[#allocation2 + $0x5c] sm:$0x1] %v319_v32 }
  0x1f   : > { %323 = vst [vmem:[#allocation2 + $0x68] sm:$0x1] %v322_v33  ;;  %v266_v36 = vsel %vm4367_vm2, 0, %v265_v34  ;;  %v293_v37 = vsel %vm4367_vm2, 0, %v292_v35  ;;  %v297_v38 = vld [vmem:[#allocation2 + $0x8] sm:$0x1] }
  0x20   : > { %v324_v39 = vld [vmem:[#allocation2 + $0x74] sm:$0x1]  ;;  %267 = vst [vmem:[#allocation2] sm:$0x1] %v266_v36  ;;  %294 = vst [vmem:[#allocation2 + $0x6c] sm:$0x1] %v293_v37 }
  0x21   : > { %v298_v40 = vsel %vm4383_vm4, 0, %v297_v38  ;;  %v325_v41 = vsel %vm4383_vm4, 0, %v324_v39  ;;  %s3730_s23 = sshll.u32 %s5384_s16, 8  ;;  %p238_p6 = scmp.lt.s32.totalorder %s4388_s22, 15  ;;  %vm556_vm5 = vcmask 60416  }
  0x22   : > { %299 = vst [vmem:[#allocation2 + $0x8] sm:$0x1] %v298_v40  ;;  %326 = vst [vmem:[#allocation2 + $0x74] sm:$0x1] %v325_v41  ;;  %s4427_s26 = scalar_lea.vmem %s5339_s0, %s3730_s23  ;;  %s3500_s27 = sshll.u32 %s5384_s16, 5 }
  0x23   : > { %s239_s28 = scalar_select %p238_p6, %s4388_s22, 15  ;;  %vm393_vm6 = vsmask.f32 4368  ;;  %vm4463_vm7 = vmand %vm556_vm5, %vm295_vm3  ;;  %v558_v0 = vld [vmem:[#allocation2 + $0xc] sm:$0xf] }
  0x24   : > { %p248_p7 = scmp.lt.s32.totalorder %s4288_s15, 1  ;;  %s3731_s30 = sshll.u32 %s4288_s15, 7  ;;  %vm4469_vm8 = vmor %vm263_vm1, %vm393_vm6  ;;  %v563_v6 = vld [vmem:[#allocation2 + $0x14] sm:$0x1]  ;;  %v566_v15 = vld [vmem:[#allocation2 + $0x18] sm:$0xf] }
  0x25   : > { %s3499_s29 = sshll.u32 %s239_s28, 1  ;;  %s4434_s6 = scalar_lea.vmem %s4427_s26, %s3731_s30  ;;  %v570_v16 = vld [vmem:[#allocation2 + $0x20] sm:$0x1]  ;;  %v573_v32 = vld [vmem:[#allocation2 + $0x24] sm:$0xf] }
  0x26   : > { %s242_s5 = sadd.s32 %s3500_s27, %s3499_s29  ;;  %v329_v42 = vld [vmem:[%s4434_s6] sm:$0xff]  ;;  %v330_v43 = vld [vmem:[%s4434_s6 + $0x8] sm:$0xff]  ;;  %v331_v44 = vld [vmem:[%s4434_s6 + $0x10] sm:$0xff]  ;;  %s3502_s11 = sshll.u32 %s5384_s16, 1 }
  0x27   : > { %s3501_s7 = sshll.u32 %s242_s5, 2  ;;  %v3732_v45 = vpack.c.bf16 %v329_v42, %v329_v42  ;;  %v3733_v46 = vpack.c.bf16 %v330_v43, %v330_v43  ;;  %v3734_v47 = vpack.c.bf16 %v331_v44, %v331_v44  ;;  %v332_v48 = vld [vmem:[%s4434_s6 + $0x18] sm:$0xff]  ;;  %v333_v49 = vld [vmem:[%s4434_s6 + $0x20] sm:$0xff]  ;;  %v334_v50 = vld [vmem:[%s4434_s6 + $0x28] sm:$0xff]  ;;  %p3522_p8 = scmp.ne.s32.totalorder %s4288_s15, 0 }
  0x28   : > { %s4442_s10 = scalar_lea.vmem %s5341_s2, %s3501_s7  ;;  %v3735_v51 = vpack.c.bf16 %v332_v48, %v332_v48  ;;  %v3736_v52 = vpack.c.bf16 %v333_v49, %v333_v49  ;;  %v3737_v53 = vpack.c.bf16 %v334_v50, %v334_v50  ;;  %v335_v21 = vld [vmem:[%s4434_s6 + $0x30] sm:$0xff]  ;;  %v336_v22 = vld [vmem:[%s4434_s6 + $0x38] sm:$0xff]  ;;  %v337_v27 = vld [vmem:[%s4434_s6 + $0x40] sm:$0xff] }
  0x29   : > { %s249_s12 = scalar_select %p248_p7, %s4288_s15, 1  ;;  %v396_v54 = vshrl.u32 %v3732_v45, 16  ;;  %v399_v55 = vshll.u32 %v3732_v45, 16  ;;  %v404_v56 = vshrl.u32 %v3733_v46, 16  ;;  %v407_v57 = vshll.u32 %v3733_v46, 16  ;;  %v338_v28 = vld [vmem:[%s4434_s6 + $0x48] sm:$0xff] }
  0x2a   : > { %v413_v58 = vshrl.u32 %v3734_v47, 16  ;;  %v416_v59 = vshll.u32 %v3734_v47, 16  ;;  %v421_v60 = vshrl.u32 %v3735_v51, 16  ;;  %v424_v61 = vshll.u32 %v3735_v51, 16  ;;  %v577_v36 = vld [vmem:[#allocation2 + $0x2c] sm:$0x1] }
  0x2b   : > { %s4451_s13 = sadd.s32 %s3502_s11, %s249_s12  ;;  %v398_v62 = vrot.slane %v396_v54, 7  ;;  %v406_v2 = vrot.slane %v404_v56, 7  ;;  %v430_v3 = vshrl.u32 %v3736_v52, 16  ;;  %v433_v4 = vshll.u32 %v3736_v52, 16  ;;  %v339_v47 = vld [vmem:[%s4434_s6 + $0x50] sm:$0xff]  ;;  %v340_v48 = vld [vmem:[%s4434_s6 + $0x58] sm:$0xff] }
  0x2c   : > { %s252_s23 = scalar_lea.vmem %s5342_s3, %s4451_s13  ;;  %s259_s27 = scalar_lea.vmem %s5343_s4, %s4451_s13  ;;  %v415_v7 = vrot.slane %v413_v58, 7  ;;  %v423_v8 = vrot.slane %v421_v60, 7  ;;  %v438_v9 = vshrl.u32 %v3737_v53, 16  ;;  %v441_v10 = vshll.u32 %v3737_v53, 16  ;;  %v584_v58 = vld [vmem:[#allocation2 + $0x38] sm:$0x1] }
  0x2d   : > { %v401_v11 = vor.u32 %v399_v55, %v398_v62  ;;  %v402_v12 = vrot.slane %v398_v62, 4  ;;  %v409_v13 = vor.u32 %v407_v57, %v406_v2  ;;  %v411_v14 = vrot.slane %v406_v2, 4  ;;  %v580_v57 = vld [vmem:[#allocation2 + $0x30] sm:$0xf] }
  0x2e   : > { %v418_v17 = vor.u32 %v416_v59, %v415_v7  ;;  %v419_v18 = vrot.slane %v415_v7, 4  ;;  %v426_v19 = vor.u32 %v424_v61, %v423_v8  ;;  %v428_v20 = vrot.slane %v423_v8, 4 }
  0x2f   : > { %v559_v23 = vsel %vm4463_vm7, %v401_v11, %v558_v0  ;;  %v410_v24 = vsel %vm4469_vm8, %v402_v12, %v409_v13  ;;  %v564_v25 = vsel %vm4367_vm2, %v411_v14, %v563_v6  ;;  %v432_v26 = vrot.slane %v430_v3, 7  ;;  %v587_v6 = vld [vmem:[#allocation2 + $0x3c] sm:$0xf]  ;;  %v341_v11 = vld [vmem:[%s4434_s6 + $0x60] sm:$0xff]  ;;  %v342_v12 = vld [vmem:[%s4434_s6 + $0x68] sm:$0xff] }
  0x30   : > { %560 = vst [vmem:[#allocation2 + $0xc] sm:$0xf] %v559_v23  ;;  %562 = vst.msk [vmem:[#allocation2 + $0x10] sm:$0xf] %vm556_vm5, %v410_v24  ;;  %v567_v29 = vsel %vm4463_vm7, %v418_v17, %v566_v15  ;;  %v427_v30 = vsel %vm4469_vm8, %v419_v18, %v426_v19  ;;  %v571_v31 = vsel %vm4367_vm2, %v428_v20, %v570_v16  ;;  %v440_v33 = vrot.slane %v438_v9, 7 }
  0x31   : > { %565 = vst [vmem:[#allocation2 + $0x14] sm:$0x1] %v564_v25  ;;  %568 = vst [vmem:[#allocation2 + $0x18] sm:$0xf] %v567_v29  ;;  %v435_v34 = vor.u32 %v433_v4, %v432_v26  ;;  %v436_v35 = vrot.slane %v432_v26, 4  ;;  %v3738_v37 = vpack.c.bf16 %v335_v21, %v335_v21  ;;  %v3739_v38 = vpack.c.bf16 %v336_v22, %v336_v22 }
  0x32   : > { %569 = vst.msk [vmem:[#allocation2 + $0x1c] sm:$0xf] %vm556_vm5, %v427_v30  ;;  %572 = vst [vmem:[#allocation2 + $0x20] sm:$0x1] %v571_v31  ;;  %v443_v39 = vor.u32 %v441_v10, %v440_v33  ;;  %v445_v40 = vrot.slane %v440_v33, 4  ;;  %v3740_v41 = vpack.c.bf16 %v337_v27, %v337_v27  ;;  %v3741_v42 = vpack.c.bf16 %v338_v28, %v338_v28  ;;  %v343_v27 = vld [vmem:[%s4434_s6 + $0x70] sm:$0xff] }
  0x33   : > { %v574_v43 = vsel %vm4463_vm7, %v435_v34, %v573_v32  ;;  %v447_v44 = vshrl.u32 %v3738_v37, 16  ;;  %v450_v45 = vshll.u32 %v3738_v37, 16  ;;  %v455_v46 = vshrl.u32 %v3739_v38, 16  ;;  %v591_v16 = vld [vmem:[#allocation2 + $0x44] sm:$0x1]  ;;  %v344_v28 = vld [vmem:[%s4434_s6 + $0x78] sm:$0xff] }
  0x34   : > { %575 = vst [vmem:[#allocation2 + $0x24] sm:$0xf] %v574_v43  ;;  %v444_v49 = vsel %vm4469_vm8, %v436_v35, %v443_v39  ;;  %v578_v50 = vsel %vm4367_vm2, %v445_v40, %v577_v36  ;;  %v458_v51 = vshll.u32 %v3739_v38, 16  ;;  %v464_v52 = vshrl.u32 %v3740_v41, 16  ;;  %v594_v22 = vld [vmem:[#allocation2 + $0x48] sm:$0xf] }
  0x35   : > { %576 = vst.msk [vmem:[#allocation2 + $0x28] sm:$0xf] %vm556_vm5, %v444_v49  ;;  %579 = vst [vmem:[#allocation2 + $0x2c] sm:$0x1] %v578_v50  ;;  %v449_v53 = vrot.slane %v447_v44, 7  ;;  %v457_v54 = vrot.slane %v455_v46, 7  ;;  %v3742_v61 = vpack.c.bf16 %v339_v47, %v339_v47  ;;  %v3743_v62 = vpack.c.bf16 %v340_v48, %v340_v48 }
  0x36   : > { %v467_v55 = vshll.u32 %v3740_v41, 16  ;;  %v472_v56 = vshrl.u32 %v3741_v42, 16  ;;  %v466_v59 = vrot.slane %v464_v52, 7  ;;  %v475_v60 = vshll.u32 %v3741_v42, 16  ;;  %v598_v38 = vld [vmem:[#allocation2 + $0x50] sm:$0x1] }
  0x37   : > { %v452_v0 = vor.u32 %v450_v45, %v449_v53  ;;  %v453_v2 = vrot.slane %v449_v53, 4  ;;  %v460_v3 = vor.u32 %v458_v51, %v457_v54  ;;  %v462_v4 = vrot.slane %v457_v54, 4  ;;  %v601_v46 = vld [vmem:[#allocation2 + $0x54] sm:$0xf] }
  0x38   : > { %v469_v7 = vor.u32 %v467_v55, %v466_v59  ;;  %v470_v8 = vrot.slane %v466_v59, 4  ;;  %v474_v9 = vrot.slane %v472_v56, 7  ;;  %v481_v10 = vshrl.u32 %v3742_v61, 16  ;;  %v605_v55 = vld [vmem:[#allocation2 + $0x5c] sm:$0x1] }
  0x39   : > { %v581_v13 = vsel %vm4463_vm7, %v452_v0, %v580_v57  ;;  %v461_v14 = vsel %vm4469_vm8, %v453_v2, %v460_v3  ;;  %v585_v15 = vsel %vm4367_vm2, %v462_v4, %v584_v58  ;;  %v484_v17 = vshll.u32 %v3742_v61, 16  ;;  %v608_v61 = vld [vmem:[#allocation2 + $0x60] sm:$0xf]  ;;  %v612_v4 = vld [vmem:[#allocation2 + $0x68] sm:$0x1] }
  0x3a   : > { %582 = vst [vmem:[#allocation2 + $0x30] sm:$0xf] %v581_v13  ;;  %583 = vst.msk [vmem:[#allocation2 + $0x34] sm:$0xf] %vm556_vm5, %v461_v14  ;;  %v588_v18 = vsel %vm4463_vm7, %v469_v7, %v587_v6  ;;  %v477_v19 = vor.u32 %v475_v60, %v474_v9  ;;  %v479_v20 = vrot.slane %v474_v9, 4  ;;  %v483_v21 = vrot.slane %v481_v10, 7 }
  0x3b   : > { %586 = vst [vmem:[#allocation2 + $0x38] sm:$0x1] %v585_v15  ;;  %589 = vst [vmem:[#allocation2 + $0x3c] sm:$0xf] %v588_v18  ;;  %v489_v23 = vshrl.u32 %v3743_v62, 16  ;;  %v492_v24 = vshll.u32 %v3743_v62, 16  ;;  %v3744_v25 = vpack.c.bf16 %v341_v11, %v341_v11  ;;  %v3745_v26 = vpack.c.bf16 %v342_v12, %v342_v12 }
  0x3c   : > { %v478_v29 = vsel %vm4469_vm8, %v470_v8, %v477_v19  ;;  %v592_v30 = vsel %vm4367_vm2, %v479_v20, %v591_v16  ;;  %v486_v31 = vor.u32 %v484_v17, %v483_v21  ;;  %v487_v32 = vrot.slane %v483_v21, 4 }
  0x3d   : > { %590 = vst.msk [vmem:[#allocation2 + $0x40] sm:$0xf] %vm556_vm5, %v478_v29  ;;  %593 = vst [vmem:[#allocation2 + $0x44] sm:$0x1] %v592_v30  ;;  %v491_v33 = vrot.slane %v489_v23, 7  ;;  %v498_v34 = vshrl.u32 %v3744_v25, 16  ;;  %v3746_v40 = vpack.c.bf16 %v343_v27, %v343_v27  ;;  %v3747_v41 = vpack.c.bf16 %v344_v28, %v344_v28 }
  0x3e   : > { %v501_v35 = vshll.u32 %v3744_v25, 16  ;;  %v506_v36 = vshrl.u32 %v3745_v26, 16  ;;  %v595_v37 = vsel %vm4463_vm7, %v486_v31, %v594_v22  ;;  %v509_v39 = vshll.u32 %v3745_v26, 16 }
  0x3f   : > { %596 = vst [vmem:[#allocation2 + $0x48] sm:$0xf] %v595_v37  ;;  %v494_v42 = vor.u32 %v492_v24, %v491_v33  ;;  %v496_v43 = vrot.slane %v491_v33, 4  ;;  %v500_v44 = vrot.slane %v498_v34, 7  ;;  %v515_v47 = vshrl.u32 %v3746_v40, 16 }
  0x40   : > { %v508_v45 = vrot.slane %v506_v36, 7  ;;  %v518_v48 = vshll.u32 %v3746_v40, 16  ;;  %v523_v49 = vshrl.u32 %v3747_v41, 16  ;;  %v526_v50 = vshll.u32 %v3747_v41, 16 }
  0x41   : > { %v495_v51 = vsel %vm4469_vm8, %v487_v32, %v494_v42  ;;  %v599_v52 = vsel %vm4367_vm2, %v496_v43, %v598_v38  ;;  %v503_v53 = vor.u32 %v501_v35, %v500_v44  ;;  %v504_v54 = vrot.slane %v500_v44, 4 }
  0x42   : > { %597 = vst.msk [vmem:[#allocation2 + $0x4c] sm:$0xf] %vm556_vm5, %v495_v51  ;;  %600 = vst [vmem:[#allocation2 + $0x50] sm:$0x1] %v599_v52  ;;  %v511_v56 = vor.u32 %v509_v39, %v508_v45  ;;  %v513_v57 = vrot.slane %v508_v45, 4  ;;  %v517_v58 = vrot.slane %v515_v47, 7 }
  0x43   : > { %v525_v59 = vrot.slane %v523_v49, 7  ;;  %v602_v60 = vsel %vm4463_vm7, %v503_v53, %v601_v46  ;;  %618 = sbr.rel (%p3522_p8) target bundleno = 74 (0x4a), region = 32  ;;  %v4306_v11 = vmov (!%p3522_p8), 0  }
  0x44   : > { %603 = vst [vmem:[#allocation2 + $0x54] sm:$0xf] %v602_v60  ;;  %v512_v62 = vsel %vm4469_vm8, %v504_v54, %v511_v56  ;;  %v606_v0 = vsel %vm4367_vm2, %v513_v57, %v605_v55  ;;  %v520_v2 = vor.u32 %v518_v48, %v517_v58  ;;  %v521_v3 = vrot.slane %v517_v58, 4  ;;  %619 = vst.msk [vmem:[#allocation2] sm:$0xf] (!%p3522_p8), %vm556_vm5, %v4306_v11 }
  0x45   : > { %604 = vst.msk [vmem:[#allocation2 + $0x58] sm:$0xf] %vm556_vm5, %v512_v62  ;;  %607 = vst [vmem:[#allocation2 + $0x5c] sm:$0x1] %v606_v0  ;;  %v528_v6 = vor.u32 %v526_v50, %v525_v59  ;;  %v530_v7 = vrot.slane %v525_v59, 4 }
  0x46   : > { %v609_v8 = vsel %vm4463_vm7, %v520_v2, %v608_v61  ;;  %620 = vst.msk [vmem:[#allocation2 + $0x4] sm:$0xf] (!%p3522_p8), %vm556_vm5, %v4306_v11 }
  0x47   : > { %610 = vst [vmem:[#allocation2 + $0x60] sm:$0xf] %v609_v8  ;;  %v529_v9 = vsel %vm4469_vm8, %v521_v3, %v528_v6  ;;  %v613_v10 = vsel %vm4367_vm2, %v530_v7, %v612_v4  ;;  %622 = vst.msk [vmem:[#allocation2 + $0x8] sm:$0x1] (!%p3522_p8), %vm262_vm0, %v4306_v11 }
  0x48   : > { %611 = vst.msk [vmem:[#allocation2 + $0x64] sm:$0xf] %vm556_vm5, %v529_v9  ;;  %614 = vst [vmem:[#allocation2 + $0x68] sm:$0x1] %v613_v10 }
  0x4a PF: > { %p3523_p9 = scmp.le.s32.totalorder %s4288_s15, 0 }
  0x4b   : > { %s3524_s28 = sadd.s32 (!%p3523_p9), 4294967295, %s4388_s22  ;;  %v658_v22 = vld [vmem:[#allocation2] sm:$0xf] (!%p3523_p9) }
  0x4c   : > { %626 = sbr.rel (%p3523_p9) target bundleno = 90 (0x5a), region = 36  ;;  %s3525_s29 = sshll.u32 (!%p3523_p9), %s3524_s28, 4 }
  0x4d   : > { %s629_s30 = scalar_lea.vmem (!%p3523_p9), %s4427_s26, %s3525_s29 }
  0x4e   : > { %v630_v12 = vld [vmem:[%s629_s30] sm:$0xff] (!%p3523_p9)  ;;  %v631_v13 = vld [vmem:[%s629_s30 + $0x8] sm:$0xff] (!%p3523_p9) }
  0x4f   : > { %v3748_v14 = vpack.c.bf16 (!%p3523_p9), %v630_v12, %v630_v12  ;;  %v3749_v15 = vpack.c.bf16 (!%p3523_p9), %v631_v13, %v631_v13  ;;  %v662_v23 = vld [vmem:[#allocation2 + $0x8] sm:$0x1] (!%p3523_p9) }
  0x51   : > { %v639_v16 = vshrl.u32 (!%p3523_p9), %v3748_v14, 16  ;;  %v642_v17 = vshll.u32 (!%p3523_p9), %v3748_v14, 16  ;;  %v647_v18 = vshrl.u32 (!%p3523_p9), %v3749_v15, 16  ;;  %v650_v19 = vshll.u32 (!%p3523_p9), %v3749_v15, 16 }
  0x53   : > { %v641_v20 = vrot.slane %v639_v16, 7  ;;  %v649_v21 = vrot.slane %v647_v18, 7 }
  0x55   : > { %v644_v24 = vor.u32 %v642_v17, %v641_v20  ;;  %v645_v25 = vrot.slane %v641_v20, 4  ;;  %v652_v26 = vor.u32 %v650_v19, %v649_v21  ;;  %v654_v27 = vrot.slane %v649_v21, 4 }
  0x57   : > { %v659_v28 = vsel %vm4463_vm7, %v644_v24, %v658_v22  ;;  %v653_v29 = vsel %vm4469_vm8, %v645_v25, %v652_v26  ;;  %v663_v30 = vsel %vm4367_vm2, %v654_v27, %v662_v23 }
  0x58   : > { %660 = vst [vmem:[#allocation2] sm:$0xf] %v659_v28  ;;  %661 = vst.msk [vmem:[#allocation2 + $0x4] sm:$0xf] %vm556_vm5, %v653_v29 }
  0x59   : > { %664 = vst [vmem:[#allocation2 + $0x8] sm:$0x1] %v663_v30 }
  0x5a PF: > { %p3528_p10 = scmp.ne.s32.totalorder %s4288_s15, 1 }
  0x5b   : > { %v4307_v31 = vmov (!%p3528_p10), 0  }
  0x5c   : > { %668 = sbr.rel (%p3528_p10) target bundleno = 99 (0x63), region = 40  ;;  %670 = vst.msk [vmem:[#allocation2 + $0x6c] sm:$0xf] (!%p3528_p10), %vm556_vm5, %v4307_v31  ;;  %671 = vst.msk [vmem:[#allocation2 + $0x70] sm:$0xf] (!%p3528_p10), %vm556_vm5, %v4307_v31 }
  0x5d   : > { %673 = vst.msk [vmem:[#allocation2 + $0x74] sm:$0x1] (!%p3528_p10), %vm262_vm0, %v4307_v31 }
  0x63 PF: > { %p3529_p11 = scmp.ge.s32.totalorder %s4288_s15, 1 }
  0x64   : > { %v3532_v32 = vld [vmem:[%s4434_s6 + $0x80] sm:$0xff] (!%p3529_p11)  ;;  %v3533_v33 = vld [vmem:[%s4434_s6 + $0x88] sm:$0xff] (!%p3529_p11)  ;;  %v714_v43 = vld [vmem:[#allocation2 + $0x74] sm:$0x1] (!%p3529_p11) }
  0x65   : > { %677 = sbr.rel (%p3529_p11) target bundleno = 112 (0x70), region = 44  ;;  %v3751_v34 = vpack.c.bf16 (!%p3529_p11), %v3532_v32, %v3532_v32  ;;  %v3752_v35 = vpack.c.bf16 (!%p3529_p11), %v3533_v33, %v3533_v33  ;;  %v710_v42 = vld [vmem:[#allocation2 + $0x6c] sm:$0xf] (!%p3529_p11) }
  0x67   : > { %v690_v36 = vshrl.u32 (!%p3529_p11), %v3751_v34, 16  ;;  %v693_v37 = vshll.u32 (!%p3529_p11), %v3751_v34, 16  ;;  %v698_v38 = vshrl.u32 (!%p3529_p11), %v3752_v35, 16  ;;  %v701_v39 = vshll.u32 (!%p3529_p11), %v3752_v35, 16 }
  0x69   : > { %v692_v40 = vrot.slane (!%p3529_p11), %v690_v36, 7  ;;  %v700_v41 = vrot.slane (!%p3529_p11), %v698_v38, 7 }
  0x6b   : > { %v695_v44 = vor.u32 (!%p3529_p11), %v693_v37, %v692_v40  ;;  %v696_v45 = vrot.slane (!%p3529_p11), %v692_v40, 4  ;;  %v703_v46 = vor.u32 (!%p3529_p11), %v701_v39, %v700_v41  ;;  %v705_v47 = vrot.slane (!%p3529_p11), %v700_v41, 4 }
  0x6d   : > { %v711_v48 = vsel %vm4463_vm7, %v695_v44, %v710_v42  ;;  %v704_v49 = vsel %vm4469_vm8, %v696_v45, %v703_v46  ;;  %v715_v50 = vsel %vm4367_vm2, %v705_v47, %v714_v43 }
  0x6e   : > { %712 = vst [vmem:[#allocation2 + $0x6c] sm:$0xf] %v711_v48  ;;  %713 = vst.msk [vmem:[#allocation2 + $0x70] sm:$0xf] %vm556_vm5, %v704_v49 }
  0x6f   : > { %716 = vst [vmem:[#allocation2 + $0x74] sm:$0x1] %v715_v50 }
  0x70 PF: > { %v3536_v51 = vld [vmem:[%s5340_s1 + $0x4] sm:$0xf]  ;;  %vm988_vm9 = vcmask 1043456   ;;  %v3611_v63 = vld [vmem:[%s5340_s1 + $0x10] sm:$0xf]  ;;  %vm963_vm13 = vcmask 64512  }
  0x71   : > { %4189 = vmatprep.subr.msk.bf16.mxu1 %vm988_vm9, %v3536_v51  ;;  %4193 = vmatprep.subr.msk.bf16.mxu0 %vm988_vm9, %v3611_v63  ;;  %v990_v1 = vsel %vm988_vm9, %v3536_v51, 0  ;;  %v4577_v5 = vsel %vm988_vm9, %v3611_v63, 0  ;;  %v4579_v52 = vld [vmem:[#allocation2] sm:$0xf]  ;;  %v4581_v53 = vld [vmem:[#allocation2 + $0x4] sm:$0xf] }
  0x72   : > { %3898 = vmatpush3.bf16.msra.mxu1 %v990_v1  ;;  %3970 = vmatpush3.bf16.msra.mxu0 %v4577_v5  ;;  %v4584_v54 = vld [vmem:[#allocation2 + $0x8] sm:$0x1]  ;;  %vm742_vm10 = vsmask.f32 3328  ;;  %vm743_vm11 = vsmask.f32 7440 }
  0x73   : > { %v746_v55 = vshrl.u32 %v4579_v52, 16  ;;  %v749_v56 = vshll.u32 %v4579_v52, 16  ;;  %v755_v57 = vshll.u32 %v4581_v53, 16  ;;  %v759_v58 = vshrl.u32 %v4581_v53, 16  ;;  %v733_v59 = vld [vmem:[%s5340_s1] sm:$0xf]  ;;  %vm4613_vm12 = vmor %vm742_vm10, %vm743_vm11 }
  0x74   : > { %v765_v60 = vshll.u32 %v4584_v54, 16  ;;  %4190 = vmatprep.subr.msk.bf16.mxu1 %vm988_vm9, %v733_v59  ;;  %v1700_v61 = vld [vmem:[#allocation2 + $0xc] sm:$0xf]  ;;  %v4595_v62 = vld [vmem:[#allocation2 + $0x10] sm:$0xf]  ;;  %v1154_v63 = vsel %vm988_vm9, %v733_v59, 0 }
  0x75   : > { %v748_v0 = vrot.slane %v746_v55, 4  ;;  %v751_v2 = vrot.slane %v749_v56, 5  ;;  %v757_v3 = vrot.slane %v755_v57, 5  ;;  %v761_v4 = vrot.slane %v759_v58, 4  ;;  %v4597_v6 = vld [vmem:[#allocation2 + $0x14] sm:$0x1] }
  0x76   : > { %v767_v7 = vrot.slane %v765_v60, 5  ;;  %v1725_v8 = vshrl.u32 %v1700_v61, 16  ;;  %v1728_v9 = vshll.u32 %v1700_v61, 16  ;;  %v1734_v10 = vshll.u32 %v4595_v62, 16  ;;  %v4603_v11 = vld [vmem:[%s5340_s1 + $0x14] sm:$0xf] }
  0x77   : > { %v752_v12 = vor.u32 %v751_v2, %v748_v0  ;;  %v762_v13 = vor.u32 %v761_v4, %v757_v3  ;;  %v1738_v14 = vshrl.u32 %v4595_v62, 16  ;;  %v1744_v15 = vshll.u32 %v4597_v6, 16  ;;  %4195 = vmatprep.subr.msk.bf16.mxu0 %vm988_vm9, %v4603_v11  ;;  %v4609_v16 = vld [vmem:[#allocation2 + $0xc] sm:$0xf]  ;;  %v4617_v21 = vld [vmem:[#allocation2 + $0x10] sm:$0xf] }
  0x78   : > { %v1727_v18 = vrot.slane %v1725_v8, 4  ;;  %v1730_v19 = vrot.slane %v1728_v9, 5  ;;  %v1736_v20 = vrot.slane %v1734_v10, 5  ;;  %v4619_v27 = vld [vmem:[#allocation2 + $0x14] sm:$0x1]  ;;  %v770_v28 = vshrl.u32 %v4609_v16, 16 }
  0x79   : > { %v753_v22 = vrot.slane %v752_v12, 4  ;;  %v763_v23 = vrot.slane %v762_v13, 4  ;;  %v1740_v24 = vrot.slane %v1738_v14, 4  ;;  %v1746_v26 = vrot.slane %v1744_v15, 5  ;;  %v1703_v42 = vld [vmem:[#allocation2 + $0x18] sm:$0xf] }
  0x7a   : > { %v1731_v25 = vor.u32 %v1730_v19, %v1727_v18  ;;  %v773_v29 = vshll.u32 %v4609_v16, 16  ;;  %v779_v33 = vshll.u32 %v4617_v21, 16  ;;  %v772_v36 = vrot.slane %v770_v28, 4  ;;  %v4635_v47 = vld [vmem:[#allocation2 + $0x1c] sm:$0xf] }
  0x7b   : > { %v758_v30 = vsel %vm4613_vm12, %v753_v22, %v757_v3  ;;  %v768_v31 = vsel %vm4613_vm12, %v763_v23, %v767_v7  ;;  %v1741_v32 = vor.u32 %v1740_v24, %v1736_v20  ;;  %v783_v40 = vshrl.u32 %v4617_v21, 16  ;;  %v4637_v48 = vld [vmem:[#allocation2 + $0x20] sm:$0x1]  ;;  %v4649_v7 = vld [vmem:[#allocation2 + $0x18] sm:$0xf] }
  0x7c   : > { %v3537_v34 = vcombine.low %v758_v30, %v768_v31  ;;  %v1732_v35 = vrot.slane %v1731_v25, 4  ;;  %v775_v37 = vrot.slane %v773_v29, 5  ;;  %v781_v39 = vrot.slane %v779_v33, 5  ;;  %v4651_v13 = vld [vmem:[#allocation2 + $0x1c] sm:$0xf] }
  0x7d   : > { %v1742_v38 = vrot.slane %v1741_v32, 4  ;;  %v789_v41 = vshll.u32 %v4619_v27, 16  ;;  %v2116_v44 = vrot.slane %v4595_v62, 5  ;;  %v2119_v45 = vrot.slane %v4597_v6, 5 }
  0x7e   : > { %3899 = vmatprep.mubr.msk.bf16.mxu1 %vm963_vm13, %v3537_v34  ;;  %v1737_v43 = vsel %vm4613_vm12, %v1732_v35, %v1736_v20  ;;  %v776_v46 = vor.u32 %v775_v37, %v772_v36  ;;  %v785_v50 = vrot.slane %v783_v40, 4  ;;  %v1749_v56 = vshrl.u32 %v1703_v42, 16  ;;  %v4660_v20 = vld [vmem:[#allocation2 + $0x20] sm:$0x1]  ;;  %v4669_v35 = vld [vmem:[#allocation2 + $0x28] sm:$0xf] }
  0x7f   : > { %v1747_v49 = vsel %vm4613_vm12, %v1742_v38, %v1746_v26  ;;  %v791_v51 = vrot.slane %v789_v41, 5  ;;  %v1752_v57 = vshll.u32 %v1703_v42, 16  ;;  %v1758_v60 = vshll.u32 %v4635_v47, 16  ;;  %v1706_v26 = vld [vmem:[#allocation2 + $0x24] sm:$0xf] }
  0x80   : > { %v3612_v1 = vcombine.low %v1737_v43, %v1747_v49  ;;  %v777_v55 = vrot.slane %v776_v46, 4  ;;  %v786_v58 = vor.u32 %v785_v50, %v781_v39  ;;  %v1762_v61 = vshrl.u32 %v4635_v47, 16  ;;  %v4678_v49 = vld [vmem:[#allocation2 + $0x24] sm:$0xf] }
  0x81   : > { %v1768_v0 = vshll.u32 %v4637_v48, 16  ;;  %v1751_v3 = vrot.slane %v1749_v56, 4  ;;  %v1754_v4 = vrot.slane %v1752_v57, 5  ;;  %v2123_v59 = vrot.slane %v4635_v47, 5  ;;  %v4681_v56 = vld [vmem:[#allocation2 + $0x28] sm:$0xf] }
  0x82   : > { %3971 = vmatprep.mubr.msk.bf16.mxu0 %vm963_vm13, %v3612_v1  ;;  %v782_v2 = vsel %vm4613_vm12, %v777_v55, %v781_v39  ;;  %v787_v8 = vrot.slane %v786_v58, 4  ;;  %v1760_v9 = vrot.slane %v1758_v60, 5  ;;  %v1764_v10 = vrot.slane %v1762_v61, 4  ;;  %v4674_v39 = vld [vmem:[#allocation2 + $0x2c] sm:$0x1] }
  0x83   : > { %v1770_v12 = vrot.slane %v1768_v0, 5  ;;  %v1755_v14 = vor.u32 %v1754_v4, %v1751_v3  ;;  %v4655_v15 = vrot.slane %v2123_v59, 4  ;;  %v2126_v18 = vrot.slane %v4637_v48, 5  ;;  %v4688_v61 = vld [vmem:[%s5340_s1 + $0x18] sm:$0xf] }
  0x84   : > { %v2221_v19 = vsel %vm988_vm9, %v4603_v11, 0  ;;  %v792_v22 = vsel %vm4613_vm12, %v787_v8, %v791_v51  ;;  %v1765_v23 = vor.u32 %v1764_v10, %v1760_v9  ;;  %v794_v24 = vshrl.u32 %v4649_v7, 16 }
  0x85   : > { %v797_v25 = vshll.u32 %v4649_v7, 16  ;;  %v3538_v28 = vcombine.low %v782_v2, %v792_v22  ;;  %v1756_v29 = vrot.slane %v1755_v14, 4  ;;  %v803_v30 = vshll.u32 %v4651_v13, 16  ;;  %v4695_v14 = vld [vmem:[#allocation2 + $0x2c] sm:$0x1] }
  0x86   : > { %v807_v31 = vshrl.u32 %v4651_v13, 16  ;;  %v1766_v32 = vrot.slane %v1765_v23, 4  ;;  %v796_v33 = vrot.slane %v794_v24, 4  ;;  %v813_v34 = vshll.u32 %v4660_v20, 16  ;;  %v1709_v22 = vld [vmem:[#allocation2 + $0x30] sm:$0xf] }
  0x87   : > { %v799_v11 = vrot.slane %v797_v25, 5  ;;  %3900 = vmatmul.mubr.msk.bf16.vlgmr.msra.gmra.mrb[0].mxu1 %vm963_vm13, %v3538_v28  ;;  %v1761_v36 = vsel %vm4613_vm12, %v1756_v29, %v1760_v9  ;;  %v805_v37 = vrot.slane %v803_v30, 5  ;;  %v1773_v40 = vshrl.u32 %v1706_v26, 16 }
  0x88   : > { %v809_v38 = vrot.slane %v807_v31, 4  ;;  %3916 = vmatpush3.bf16.msra.mxu1 %v1154_v63  ;;  %v1771_v41 = vsel %vm4613_vm12, %v1766_v32, %v1770_v12  ;;  %v815_v43 = vrot.slane %v813_v34, 5  ;;  %v1776_v46 = vshll.u32 %v1706_v26, 16  ;;  %v4703_v31 = vld [vmem:[#allocation2 + $0x34] sm:$0xf] }
  0x89   : > { %v800_v42 = vor.u32 %v799_v11, %v796_v33  ;;  %v3613_v50 = vcombine.low %v1761_v36, %v1771_v41  ;;  %v1775_v1 = vrot.slane %v1773_v40, 4  ;;  %v1782_v55 = vshll.u32 %v4669_v35, 16  ;;  %v4706_v34 = vld [vmem:[#allocation2 + $0x38] sm:$0x1] }
  0x8a   : > { %v810_v51 = vor.u32 %v809_v38, %v805_v37  ;;  %v1778_v58 = vrot.slane %v1776_v46, 5  ;;  %v1786_v60 = vshrl.u32 %v4669_v35, 16  ;;  %v1792_v63 = vshll.u32 %v4674_v39, 16 }
  0x8b   : > { %v801_v57 = vrot.slane %v800_v42, 4  ;;  %3972 = vmatmul.mubr.msk.bf16.vlgmr.msra.gmra.mrb[0].mxu0 %vm963_vm13, %v3613_v50  ;;  %v1784_v2 = vrot.slane %v1782_v55, 5  ;;  %v818_v3 = vshrl.u32 %v4678_v49, 16  ;;  %v821_v4 = vshll.u32 %v4678_v49, 16  ;;  %v4711_v42 = vld [vmem:[#allocation2 + $0x30] sm:$0xf] }
  0x8c   : > { %v811_v0 = vrot.slane %v810_v51, 4  ;;  %3988 = vmatpush3.bf16.msra.mxu0 %v2221_v19  ;;  %v1779_v9 = vor.u32 %v1778_v58, %v1775_v1  ;;  %v1788_v10 = vrot.slane %v1786_v60, 4  ;;  %v1794_v12 = vrot.slane %v1792_v63, 5  ;;  %v4717_v1 = vld [vmem:[%s5340_s1 + $0x8] sm:$0xf] }
  0x8d   : > { %v806_v8 = vsel %vm4613_vm12, %v801_v57, %v805_v37  ;;  %v820_v24 = vrot.slane %v818_v3, 4  ;;  %v823_v25 = vrot.slane %v821_v4, 5  ;;  %v827_v26 = vshll.u32 %v4681_v56, 16  ;;  %4196 = vmatprep.subr.msk.bf16.mxu0 %vm988_vm9, %v4688_v61  ;;  %v4722_v63 = vld [vmem:[#allocation2 + $0x34] sm:$0xf]  ;;  %4191 = vmatprep.subr.msk.bf16.mxu1 %vm988_vm9, %v4717_v1 }
  0x8e   : > { %v816_v23 = vsel %vm4613_vm12, %v811_v0, %v815_v43  ;;  %v1780_v28 = vrot.slane %v1779_v9, 4  ;;  %v1789_v29 = vor.u32 %v1788_v10, %v1784_v2  ;;  %v831_v30 = vshrl.u32 %v4681_v56, 16 }
  0x8f   : > { %v3539_v19 = vcombine.low %v806_v8, %v816_v23  ;;  %v824_v32 = vor.u32 %v823_v25, %v820_v24  ;;  %v829_v33 = vrot.slane %v827_v26, 5  ;;  %v837_v11 = vshll.u32 %v4695_v14, 16  ;;  %v4731_v23 = vld [vmem:[#allocation2 + $0x38] sm:$0x1] }
  0x90   : > { %v1797_v36 = vshrl.u32 %v1709_v22, 16  ;;  %v1785_v37 = vsel %vm4613_vm12, %v1780_v28, %v1784_v2  ;;  %v1790_v38 = vrot.slane %v1789_v29, 4  ;;  %v833_v40 = vrot.slane %v831_v30, 4 }
  0x91   : > { %3903 = vmatprep.mubr.msk.bf16.mxu1 %vm963_vm13, %v3539_v19  ;;  %v1800_v41 = vshll.u32 %v1709_v22, 16  ;;  %v825_v43 = vrot.slane %v824_v32, 4  ;;  %v839_v46 = vrot.slane %v837_v11, 5  ;;  %v1806_v51 = vshll.u32 %v4703_v31, 16  ;;  %v2082_v32 = vld [vmem:[#allocation2 + $0xc] sm:$0xe] }
  0x92   : > { %v1799_v50 = vrot.slane %v1797_v36, 4  ;;  %v1795_v55 = vsel %vm4613_vm12, %v1790_v38, %v1794_v12  ;;  %v834_v57 = vor.u32 %v833_v40, %v829_v33  ;;  %v1810_v60 = vshrl.u32 %v4703_v31, 16  ;;  %v4738_v38 = vld [vmem:[#allocation2 + $0x3c] sm:$0xf] }
  0x93   : > { %v1802_v58 = vrot.slane %v1800_v41, 5  ;;  %v3614_v0 = vcombine.low %v1785_v37, %v1795_v55  ;;  %v830_v2 = vsel %vm4613_vm12, %v825_v43, %v829_v33  ;;  %v1808_v3 = vrot.slane %v1806_v51, 5  ;;  %v4744_v55 = vld [vmem:[#allocation2 + $0x40] sm:$0xf] }
  0x94   : > { %v1816_v4 = vshll.u32 %v4706_v34, 16  ;;  %v835_v8 = vrot.slane %v834_v57, 4  ;;  %v1812_v10 = vrot.slane %v1810_v60, 4  ;;  %v842_v12 = vshrl.u32 %v4711_v42, 16  ;;  %v4746_v57 = vld [vmem:[#allocation2 + $0x44] sm:$0x1] }
  0x95   : > { %v1803_v9 = vor.u32 %v1802_v58, %v1799_v50  ;;  %3975 = vmatprep.mubr.msk.bf16.mxu0 %vm963_vm13, %v3614_v0  ;;  %v845_v24 = vshll.u32 %v4711_v42, 16  ;;  %v851_v25 = vshll.u32 %v4722_v63, 16  ;;  %v855_v26 = vshrl.u32 %v4722_v63, 16 }
  0x96   : > { %v1818_v22 = vrot.slane %v1816_v4, 5  ;;  %v840_v19 = vsel %vm4613_vm12, %v835_v8, %v839_v46  ;;  %v1813_v29 = vor.u32 %v1812_v10, %v1808_v3  ;;  %v844_v30 = vrot.slane %v842_v12, 4  ;;  %v2083_v4 = vld [vmem:[#allocation2 + $0x18] sm:$0xe] }
  0x97   : > { %v1804_v28 = vrot.slane %v1803_v9, 4  ;;  %v3540_v33 = vcombine.low %v830_v2, %v840_v19  ;;  %v847_v11 = vrot.slane %v845_v24, 5  ;;  %v853_v36 = vrot.slane %v851_v25, 5 }
  0x98   : > { %v857_v37 = vrot.slane %v855_v26, 4  ;;  %v1814_v41 = vrot.slane %v1813_v29, 4  ;;  %v861_v43 = vshll.u32 %v4731_v23, 16  ;;  %vm1277_vm14 = vcmask 1042432  }
  0x99   : > { %v1809_v40 = vsel %vm4613_vm12, %v1804_v28, %v1808_v3  ;;  %3904 = vmatmul.mubr.msk.bf16.gmra.mrb[4].mxu1 %vm963_vm13, %v3540_v33  ;;  %v848_v46 = vor.u32 %v847_v11, %v844_v30  ;;  %vm1278_vm15 = vcmask 1046532   ;;  %v3628_v51 = vrot.slane %v2082_v32, 9  ;;  %v4769_v28 = vld [vmem:[#allocation2 + $0x4c] sm:$0xf]  ;;  %v4778_v11 = vld [vmem:[#allocation2 + $0x50] sm:$0x1] }
  0x9a   : > { %v858_v50 = vor.u32 %v857_v37, %v853_v36  ;;  %v1819_v58 = vsel %vm4613_vm12, %v1814_v41, %v1818_v22  ;;  %v863_v60 = vrot.slane %v861_v43, 5  ;;  %vm4750_vm0 = vmor %vm1277_vm14, %vm1278_vm15  ;;  %v2118_v2 = vrot.slane %v2116_v44, 4  ;;  %v4761_v22 = vld [vmem:[#allocation2 + $0x48] sm:$0xf] }
  0x9b   : > { %v866_v3 = vshrl.u32 %v4738_v38, 16  ;;  %v3615_v8 = vcombine.low %v1809_v40, %v1819_v58  ;;  %v849_v9 = vrot.slane %v848_v46, 4  ;;  %v2117_v12 = vsel %vm4750_vm0, %v3628_v51, %v2116_v44 }
  0x9c   : > { %v859_v10 = vrot.slane %v858_v50, 4  ;;  %v2120_v24 = vsel %vm4750_vm0, %v2118_v2, %v2119_v45  ;;  %v869_v26 = vshll.u32 %v4738_v38, 16  ;;  %v875_v19 = vshll.u32 %v4744_v55, 16 }
  0x9d   : > { %v868_v25 = vrot.slane %v866_v3, 4  ;;  %3976 = vmatmul.mubr.msk.bf16.gmra.mrb[4].mxu0 %vm963_vm13, %v3615_v8  ;;  %v854_v62 = vsel %vm4613_vm12, %v849_v9, %v853_v36  ;;  %v3637_v29 = vcombine.low %v2117_v12, %v2120_v24  ;;  %v879_v6 = vshrl.u32 %v4744_v55, 16  ;;  %v4797_v8 = vld [vmem:[#allocation2 + $0x54] sm:$0xf]  ;;  %v4799_v9 = vld [vmem:[#allocation2 + $0x58] sm:$0xf] }
  0x9e   : > { %v864_v44 = vsel %vm4613_vm12, %v859_v10, %v863_v60  ;;  %v871_v45 = vrot.slane %v869_v26, 5  ;;  %v877_v32 = vrot.slane %v875_v19, 5  ;;  %v885_v33 = vshll.u32 %v4746_v57, 16 }
  0x9f   : > { %v3541_v30 = vcombine.low %v854_v62, %v864_v44  ;;  %3989 = vmatprep.mubr.msk.bf16.mxu0 %vm963_vm13, %v3637_v29  ;;  %v881_v37 = vrot.slane %v879_v6, 4  ;;  %v3629_v40 = vrot.slane %v2083_v4, 9  ;;  %v2127_v36 = vsel %vm4750_vm0, %v4655_v15, %v2126_v18  ;;  %v2084_v18 = vld [vmem:[#allocation2 + $0x24] sm:$0xe]  ;;  %v4808_v62 = vld [vmem:[%s5340_s1 + $0x1c] sm:$0xf] }
  0xa0   : > { %v2420_v41 = vsel %vm988_vm9, %v4688_v61, 0  ;;  %v872_v43 = vor.u32 %v871_v45, %v868_v25  ;;  %v887_v46 = vrot.slane %v885_v33, 5  ;;  %v890_v50 = vshrl.u32 %v4761_v22, 16  ;;  %v4814_v45 = vld [vmem:[#allocation2 + $0x5c] sm:$0x1] }
  0xa1   : > { %3907 = vmatprep.mubr.msk.bf16.mxu1 %vm963_vm13, %v3541_v30  ;;  %v893_v51 = vshll.u32 %v4761_v22, 16  ;;  %v882_v58 = vor.u32 %v881_v37, %v877_v32  ;;  %v2124_v48 = vsel %vm4750_vm0, %v3629_v40, %v2123_v59  ;;  %v899_v60 = vshll.u32 %v4769_v28, 16  ;;  %v2085_v40 = vld [vmem:[#allocation2 + $0x30] sm:$0xe] }
  0xa2   : > { %v903_v15 = vshrl.u32 %v4769_v28, 16  ;;  %v873_v61 = vrot.slane %v872_v43, 4  ;;  %v3638_v2 = vcombine.low %v2124_v48, %v2127_v36  ;;  %v892_v3 = vrot.slane %v890_v50, 4 }
  0xa3   : > { %v895_v4 = vrot.slane %v893_v51, 5  ;;  %v883_v10 = vrot.slane %v882_v58, 4  ;;  %v901_v12 = vrot.slane %v899_v60, 5  ;;  %v909_v47 = vshll.u32 %v4778_v11, 16  ;;  %v4821_v51 = vld [vmem:[#allocation2 + $0x40] sm:$0xf] }
  0xa4   : > { %v905_v24 = vrot.slane %v903_v15, 4  ;;  %v878_v59 = vsel %vm4613_vm12, %v873_v61, %v877_v32  ;;  %v3630_v26 = vrot.slane %v2084_v18, 9  ;;  %v2130_v19 = vrot.slane %v4669_v35, 5 }
  0xa5   : > { %v896_v25 = vor.u32 %v895_v4, %v892_v3  ;;  %v888_v44 = vsel %vm4613_vm12, %v883_v10, %v887_v46  ;;  %3990 = vmatmul.mubr.msk.bf16.vlgmr.msra.gmra.mrb[0].mxu0 %vm963_vm13, %v3638_v2  ;;  %v911_v6 = vrot.slane %v909_v47, 5  ;;  %v2133_v30 = vrot.slane %v4674_v39, 5  ;;  %v4834_v2 = vld [vmem:[#allocation2 + $0x44] sm:$0x1]  ;;  %v2086_v3 = vld [vmem:[#allocation2 + $0x3c] sm:$0xe] }
  0xa6   : > { %v906_v29 = vor.u32 %v905_v24, %v901_v12  ;;  %v3542_v32 = vcombine.low %v878_v59, %v888_v44  ;;  %4006 = vmatpush3.bf16.msra.mxu0 %v2420_v41  ;;  %v2131_v35 = vsel %vm4750_vm0, %v3630_v26, %v2130_v19  ;;  %v2132_v37 = vrot.slane %v2130_v19, 4 }
  0xa7   : > { %v897_v33 = vrot.slane %v896_v25, 4  ;;  %v914_v43 = vshrl.u32 %v4797_v8, 16  ;;  %v917_v46 = vshll.u32 %v4797_v8, 16  ;;  %v923_v50 = vshll.u32 %v4799_v9, 16  ;;  %4197 = vmatprep.subr.msk.bf16.mxu0 %vm988_vm9, %v4808_v62 }
  0xa8   : > { %v907_v36 = vrot.slane %v906_v29, 4  ;;  %3908 = vmatmul.mubr.msk.bf16.gmra.mrb[8].mxu1 %vm963_vm13, %v3542_v32  ;;  %v2134_v41 = vsel %vm4750_vm0, %v2132_v37, %v2133_v30  ;;  %v927_v58 = vshrl.u32 %v4799_v9, 16  ;;  %v933_v48 = vshll.u32 %v4814_v45, 16 }
  0xa9   : > { %v902_v39 = vsel %vm4613_vm12, %v897_v33, %v901_v12  ;;  %v3639_v15 = vcombine.low %v2131_v35, %v2134_v41  ;;  %v916_v18 = vrot.slane %v914_v43, 4  ;;  %v919_v61 = vrot.slane %v917_v46, 5  ;;  %v4852_v43 = vld [vmem:[#allocation2 + $0x50] sm:$0x1]  ;;  %v2087_v46 = vld [vmem:[#allocation2 + $0x48] sm:$0xe] }
  0xaa   : > { %v912_v60 = vsel %vm4613_vm12, %v907_v36, %v911_v6  ;;  %v925_v10 = vrot.slane %v923_v50, 5  ;;  %v929_v24 = vrot.slane %v927_v58, 4  ;;  %v935_v12 = vrot.slane %v933_v48, 5  ;;  %v4850_v36 = vld [vmem:[#allocation2 + $0x4c] sm:$0xf] }
  0xab   : > { %v3543_v4 = vcombine.low %v902_v39, %v912_v60  ;;  %3993 = vmatprep.mubr.msk.bf16.mxu0 %vm963_vm13, %v3639_v15  ;;  %v920_v47 = vor.u32 %v919_v61, %v916_v18  ;;  %v3631_v59 = vrot.slane %v2085_v40, 9  ;;  %v2137_v25 = vrot.slane %v4703_v31, 5  ;;  %v4860_v48 = vld [vmem:[#allocation2 + $0x58] sm:$0xf]  ;;  %v2088_v60 = vld [vmem:[#allocation2 + $0x54] sm:$0xe] }
  0xac   : > { %v2140_v26 = vrot.slane %v4706_v34, 5  ;;  %v930_v19 = vor.u32 %v929_v24, %v925_v10  ;;  %v3632_v44 = vrot.slane %v2086_v3, 9  ;;  %v2144_v29 = vrot.slane %v4821_v51, 5  ;;  %v4862_v61 = vld [vmem:[#allocation2 + $0x5c] sm:$0x1] }
  0xad   : > { %3911 = vmatprep.mubr.msk.bf16.mxu1 %vm963_vm13, %v3543_v4  ;;  %v2147_v6 = vrot.slane %v4834_v2, 5  ;;  %v921_v30 = vrot.slane %v920_v47, 4  ;;  %v2138_v32 = vsel %vm4750_vm0, %v3631_v59, %v2137_v25  ;;  %v2139_v33 = vrot.slane %v2137_v25, 4  ;;  %5360 = vst [vmem:[#allocation3_spill] sm:$0xff] %v4862_v61  ;;  %v4867_v24 = vld [vmem:[#allocation2 + $0x64] sm:$0xf] }
  0xae   : > { %v931_v35 = vrot.slane %v930_v19, 4  ;;  %v2145_v37 = vsel %vm4750_vm0, %v3632_v44, %v2144_v29  ;;  %v2146_v31 = vrot.slane %v2144_v29, 4  ;;  %v3553_v41 = vcombine.low %v4579_v52, %v4581_v53  ;;  %5361 = vst [vmem:[#allocation4_spill] sm:$0xff] %v4867_v24  ;;  %v4872_v47 = vld [vmem:[#allocation2 + $0x68] sm:$0x1] }
  0xaf   : > { %v926_v34 = vsel %vm4613_vm12, %v921_v30, %v925_v10  ;;  %v2141_v40 = vsel %vm4750_vm0, %v2139_v33, %v2140_v26  ;;  %v3633_v3 = vrot.slane %v2087_v46, 9  ;;  %v2151_v4 = vrot.slane %v4850_v36, 5  ;;  %5362 = vst [vmem:[#allocation5_spill] sm:$0xff] %v4872_v47  ;;  %v2089_v59 = vld [vmem:[#allocation2 + $0x60] sm:$0xe] }
  0xb0   : > { %v936_v50 = vsel %vm4613_vm12, %v931_v35, %v935_v12  ;;  %v3640_v39 = vcombine.low %v2138_v32, %v2141_v40  ;;  %v2148_v58 = vsel %vm4750_vm0, %v2146_v31, %v2147_v6  ;;  %v2154_v10 = vrot.slane %v4852_v43, 5  ;;  %v1254_v35 = vld [vmem:[#allocation2 + $0xc] sm:$0xe] }
  0xb1   : > { %v3544_v15 = vcombine.low %v926_v34, %v936_v50  ;;  %v3641_v18 = vcombine.low %v2145_v37, %v2148_v58  ;;  %v3634_v52 = vrot.slane %v2088_v60, 9  ;;  %v2158_v12 = vrot.slane %v4860_v48, 5  ;;  %v1255_v37 = vld [vmem:[#allocation2 + $0x18] sm:$0xe]  ;;  %v1256_v60 = vld [vmem:[#allocation2 + $0x24] sm:$0xe] }
  0xb2   : > { %3994 = vmatmul.mubr.msk.bf16.gmra.mrb[4].mxu0 %vm963_vm13, %v3640_v39  ;;  %v2152_v25 = vsel %vm4750_vm0, %v3633_v3, %v2151_v4  ;;  %v2153_v26 = vrot.slane %v2151_v4, 4  ;;  %v2161_v19 = vrot.slane %v4862_v61, 5  ;;  %v1289_v6 = vrot.slane %v4617_v21, 5  ;;  %v1257_v4 = vld [vmem:[#allocation2 + $0x30] sm:$0xe] }
  0xb3   : > { %3912 = vmatmul.mubr.msk.bf16.gmra.mrb[12].mxu1 %vm963_vm13, %v3544_v15  ;;  %3997 = vmatprep.mubr.msk.bf16.mxu0 %vm963_vm13, %v3641_v18  ;;  %v2159_v44 = vsel %vm4750_vm0, %v3634_v52, %v2158_v12  ;;  %v2160_v29 = vrot.slane %v2158_v12, 4  ;;  %v3554_v30 = vcombine.low %v4609_v16, %v4617_v21  ;;  %v2165_v33 = vrot.slane %v4867_v24, 5  ;;  %v4898_v15 = vld [vmem:[%s5340_s1 + $0xc] sm:$0xf]  ;;  %v5140_v61 = vld [vmem:[#allocation2 + $0x70] sm:$0xf] }
  0xb4   : > { %3917 = vmatprep.mubr.msk.bf16.mxu1 %vm963_vm13, %v3553_v41  ;;  %v2155_v32 = vsel %vm4750_vm0, %v2153_v26, %v2154_v10  ;;  %v3635_v40 = vrot.slane %v2089_v59, 9  ;;  %v2168_v46 = vrot.slane %v4872_v47, 5  ;;  %v1292_v50 = vrot.slane %v4619_v27, 5 }
  0xb5   : > { %v3642_v31 = vcombine.low %v2152_v25, %v2155_v32  ;;  %v2162_v34 = vsel %vm4750_vm0, %v2160_v29, %v2161_v19  ;;  %v3555_v39 = vcombine.low %v4649_v7, %v4651_v13  ;;  %v2167_v21 = vrot.slane %v2165_v33, 4 }
  0xb6   : > { %v3643_v16 = vcombine.low %v2159_v44, %v2162_v34  ;;  %v1387_v41 = vsel %vm988_vm9, %v4717_v1, 0  ;;  %v3570_v58 = vrot.slane %v1254_v35, 9  ;;  %v1291_v18 = vrot.slane %v1289_v6, 4  ;;  %v1258_v34 = vld [vmem:[#allocation2 + $0x3c] sm:$0xe] }
  0xb7   : > { %v3571_v3 = vrot.slane %v1255_v37, 9  ;;  %v2166_v27 = vsel %vm4750_vm0, %v3635_v40, %v2165_v33  ;;  %v2169_v7 = vsel %vm4750_vm0, %v2167_v21, %v2168_v46  ;;  %v1296_v52 = vrot.slane %v4651_v13, 5 }
  0xb8   : > { %v4908_v1 = vsel %vm4750_vm0, %v3570_v58, %v1289_v6  ;;  %v4913_v10 = vsel %vm4750_vm0, %v1291_v18, %v1292_v50  ;;  %v1299_v12 = vrot.slane %v4660_v20, 5  ;;  %v3572_v59 = vrot.slane %v1256_v60, 9  ;;  %v4248_v18 = vld [vmem:[#allocation2 + $0x24] sm:$0xff]  }
  0xb9   : > { %v3556_v25 = vcombine.low %v4678_v49, %v4681_v56  ;;  %v1303_v19 = vrot.slane %v4681_v56, 5  ;;  %v1306_v44 = vrot.slane %v4695_v14, 5  ;;  %v3644_v29 = vcombine.low %v2166_v27, %v2169_v7  ;;  %v1253_v14 = vld [vmem:[#allocation2] sm:$0xe] }
  0xba   : > { %3998 = vmatmul.mubr.msk.bf16.gmra.mrb[8].mxu0 %vm963_vm13, %v3642_v31  ;;  %v4927_v13 = vsel %vm4750_vm0, %v3571_v3, %v1296_v52  ;;  %v1298_v20 = vrot.slane %v1296_v52, 4  ;;  %v3573_v6 = vrot.slane %v1257_v4, 9  ;;  %v1310_v33 = vrot.slane %v4722_v63, 5  ;;  %v2535_v3 = vld [vmem:[#allocation2 + $0x18] sm:$0xf] }
  0xbb   : > { %3918 = vmatmul.mubr.msk.bf16.vlgmr.msra.gmra.mrb[0].mxu1 %vm963_vm13, %v3554_v30  ;;  %4001 = vmatprep.mubr.msk.bf16.mxu0 %vm963_vm13, %v3643_v16  ;;  %v4246_v30 = vld [vmem:[#allocation2 + $0x18] sm:$0xff]   ;;  %v4931_v49 = vsel %vm4750_vm0, %v3572_v59, %v1303_v19  ;;  %v1305_v32 = vrot.slane %v1303_v19, 4  ;;  %v1313_v35 = vrot.slane %v4731_v23, 5  ;;  %v3557_v56 = vcombine.low %v4711_v42, %v4722_v63 }
  0xbc   : > { %3934 = vmatpush3.bf16.msra.mxu1 %v1387_v41  ;;  %3921 = vmatprep.mubr.msk.bf16.mxu1 %vm963_vm13, %v3555_v39  ;;  %v1282_v37 = vrot.slane %v4581_v53, 5  ;;  %v4940_v31 = vsel %vm4750_vm0, %v1298_v20, %v1299_v12  ;;  %v4950_v23 = vsel %vm4750_vm0, %v3573_v6, %v1310_v33  ;;  %v1312_v42 = vrot.slane %v1310_v33, 4  ;;  %v4973_v52 = vld [vmem:[#allocation2 + $0x1c] sm:$0xf]  ;;  %v1259_v12 = vld [vmem:[#allocation2 + $0x48] sm:$0xe] }
  0xbd   : > { %4192 = vmatprep.subr.msk.bf16.mxu1 %vm988_vm9, %v4898_v15  ;;  %v4946_v46 = vsel %vm4750_vm0, %v1305_v32, %v1306_v44  ;;  %v3574_v50 = vrot.slane %v1258_v34, 9  ;;  %v3569_v39 = vrot.slane %v1253_v14, 9  ;;  %v1317_v21 = vrot.slane %v4744_v55, 5  ;;  %v4995_v20 = vld [vmem:[%s5340_s1 + $0x20] sm:$0xf] }
  0xbe   : > { %v4959_v63 = vsel %vm4750_vm0, %v1312_v42, %v1313_v35  ;;  %v1320_v41 = vrot.slane %v4746_v57, 5  ;;  %v1285_v58 = vrot.slane %v4584_v54, 5  ;;  %v1284_v60 = vrot.slane %v1282_v37, 4  ;;  %v4250_v57 = vld [vmem:[#allocation2 + $0x30] sm:$0xff]   ;;  %v2538_v33 = vld [vmem:[#allocation2 + $0x24] sm:$0xf] }
  0xbf   : > { %v4969_v27 = vsel %vm4750_vm0, %v3574_v50, %v1317_v21  ;;  %v1319_v7 = vrot.slane %v1317_v21, 4  ;;  %v3558_v4 = vcombine.low %v4738_v38, %v4744_v55  ;;  %v2802_v59 = vsel %vm988_vm9, %v4808_v62, 0  ;;  %v5002_v35 = vld [vmem:[#allocation2 + $0x28] sm:$0xf]  ;;  %v1260_v50 = vld [vmem:[#allocation2 + $0x54] sm:$0xe] }
  0xc0   : > { %v3559_v54 = vcombine.low %v4761_v22, %v4769_v28  ;;  %v1286_v38 = vsel %vm4750_vm0, %v1284_v60, %v1285_v58  ;;  %v2560_v55 = vshrl.u32 %v2535_v3, 16  ;;  %v2563_v44 = vshll.u32 %v2535_v3, 16  ;;  %v4253_v3 = vld [vmem:[#allocation2 + $0x48] sm:$0xff]  }
  0xc1   : > { %v4983_v19 = vsel %vm4750_vm0, %v1319_v7, %v1320_v41  ;;  %v2569_v22 = vshll.u32 %v4973_v52, 16  ;;  %v2573_v62 = vshrl.u32 %v4973_v52, 16  ;;  %v3575_v6 = vrot.slane %v1259_v12, 9 }
  0xc2   : > { %4002 = vmatmul.mubr.msk.bf16.gmra.mrb[12].mxu0 %vm963_vm13, %v3644_v29  ;;  %v1327_v32 = vrot.slane %v4778_v11, 5  ;;  %v2562_v42 = vrot.slane %v2560_v55, 4  ;;  %v2541_v11 = vld [vmem:[#allocation2 + $0x30] sm:$0xf]  ;;  %v2565_v21 = vrot.slane %v2563_v44, 5  ;;  %v2584_v7 = vshrl.u32 %v2538_v33, 16 }
  0xc3   : > { %3922 = vmatmul.mubr.msk.bf16.gmra.mrb[4].mxu1 %vm963_vm13, %v3556_v25  ;;  %4007 = vmatprep.mubr.msk.bf16.mxu0 %vm963_vm13, %v4246_v30  ;;  %v1283_v25 = vsel %vm4750_vm0, %v3569_v39, %v1282_v37  ;;  %v1324_v30 = vrot.slane %v4769_v28, 5  ;;  %v1854_v37 = vshll.u32 %v4850_v36, 16  ;;  %v3560_v28 = vcombine.low %v4797_v8, %v4799_v9  ;;  %v4252_v39 = vld [vmem:[#allocation2 + $0x3c] sm:$0xff]   ;;  %v2547_v29 = vld [vmem:[#allocation2 + $0x48] sm:$0xf] }
  0xc4   : > { %3925 = vmatprep.mubr.msk.bf16.mxu1 %vm963_vm13, %v3557_v56  ;;  %v3578_v34 = vcombine.low %v1283_v25, %v1286_v38  ;;  %v5013_v41 = vrot.slane %v2569_v22, 5  ;;  %v2575_v58 = vrot.slane %v2573_v62, 4  ;;  %v5021_v8 = vld [vmem:[#allocation2 + $0x20] sm:$0x1]  ;;  %v2593_v12 = vshll.u32 %v5002_v35, 16 }
  0xc5   : > { %v5006_v56 = vsel %vm4750_vm0, %v3575_v6, %v1324_v30  ;;  %v1326_v14 = vrot.slane %v1324_v30, 4  ;;  %v2611_v25 = vshll.u32 %v2541_v11, 16  ;;  %v3576_v38 = vrot.slane %v1260_v50, 9  ;;  %v5042_v50 = vld [vmem:[#allocation2 + $0x2c] sm:$0x1] }
  0xc6   : > { %v1331_v22 = vrot.slane %v4799_v9, 5  ;;  %v1334_v62 = vrot.slane %v4814_v45, 5  ;;  %v1858_v6 = vshrl.u32 %v4850_v36, 16  ;;  %v2566_v30 = vor.u32 %v2565_v21, %v2562_v42  ;;  %v4254_v36 = vld [vmem:[#allocation2 + $0x54] sm:$0xff]  }
  0xc7   : > { %v5017_v60 = vsel %vm4750_vm0, %v1326_v14, %v1327_v32  ;;  %v2576_v32 = vor.u32 %v2575_v58, %v5013_v41  ;;  %v2586_v14 = vrot.slane %v2584_v7, 4  ;;  %v5044_v42 = vrot.slane %v2593_v12, 5  ;;  %v5048_v7 = vld [vmem:[#allocation2 + $0x38] sm:$0x1] }
  0xc8   : > { %v5039_v9 = vsel %vm4750_vm0, %v3576_v38, %v1331_v22  ;;  %v1333_v45 = vrot.slane %v1331_v22, 4  ;;  %v2613_v58 = vrot.slane %v2611_v25, 5 }
  0xc9   : > { %v2577_v25 = vrot.slane %v2576_v32, 4 }
  0xca   : > { %4008 = vmatmul.mubr.msk.bf16.vlgmr.msra.gmra.mrb[0].mxu0 %vm963_vm13, %v4248_v18  ;;  %v5019_v18 = vld [vmem:[#allocation2 + $0x34] sm:$0xf]  ;;  %v5054_v22 = vsel %vm4750_vm0, %v1333_v45, %v1334_v62  ;;  %v5067_v45 = vld [vmem:[#allocation2 + $0x4c] sm:$0xf] }
  0xcb   : > { %3926 = vmatmul.mubr.msk.bf16.gmra.mrb[8].mxu1 %vm963_vm13, %v3558_v4  ;;  %4024 = vmatpush3.bf16.msra.mxu0 %v2802_v59  ;;  %v2587_v4 = vshll.u32 %v2538_v33, 16  ;;  %v2617_v55 = vshll.u32 %v5019_v18, 16  ;;  %v2621_v44 = vshrl.u32 %v5019_v18, 16  ;;  %v2579_v33 = vshll.u32 %v5021_v8, 16 }
  0xcc   : > { %3929 = vmatprep.mubr.msk.bf16.mxu1 %vm963_vm13, %v3559_v54  ;;  %4011 = vmatprep.mubr.msk.bf16.mxu0 %vm963_vm13, %v4250_v57  ;;  %v2597_v54 = vshrl.u32 %v5002_v35, 16  ;;  %v2608_v57 = vshrl.u32 %v2541_v11, 16  ;;  %v2567_v59 = vrot.slane %v2566_v30, 4  ;;  %v2627_v30 = vshll.u32 %v5048_v7, 16 }
  0xcd   : > { %4198 = vmatprep.subr.msk.bf16.mxu0 %vm988_vm9, %v4995_v20  ;;  %v2589_v11 = vrot.slane %v2587_v4, 5  ;;  %v5050_v4 = vrot.slane %v2617_v55, 5  ;;  %v2623_v38 = vrot.slane %v2621_v44, 4  ;;  %v2581_v55 = vrot.slane %v2579_v33, 5 }
  0xce   : > { %v2610_v21 = vrot.slane %v2608_v57, 4  ;;  %v5060_v57 = vld [vmem:[#allocation2 + $0x40] sm:$0xf]  ;;  %v2603_v44 = vshll.u32 %v5042_v50, 16  ;;  %v2656_v33 = vshrl.u32 %v2547_v29, 16 }
  0xcf   : > { %v2590_v16 = vor.u32 %v2589_v11, %v2586_v14  ;;  %v2624_v12 = vor.u32 %v2623_v38, %v5050_v4  ;;  %v2641_v26 = vshll.u32 %v5060_v57, 16  ;;  %v2645_v32 = vshrl.u32 %v5060_v57, 16 }
  0xd0   : > { %v2659_v14 = vshll.u32 %v2547_v29, 16  ;;  %v5363_v11 = vcombine.low %v4908_v1, %v4913_v10  ;;  %v5364_v29 = vcombine.low %v4927_v13, %v4940_v31  ;;  %v4256_v1 = vld [vmem:[#allocation2 + $0x6c] sm:$0xff]   ;;  %v5097_v13 = vld [vmem:[#allocation2 + $0x44] sm:$0x1] }
  0xd1   : > { %v2591_v10 = vrot.slane %v2590_v16, 4  ;;  %v2647_v31 = vrot.slane %v2645_v32, 4  ;;  %v2658_v16 = vrot.slane %v2656_v33, 4  ;;  %v2553_v33 = vld [vmem:[#allocation2 + $0x60] sm:$0xf] }
  0xd2   : > { %4012 = vmatmul.mubr.msk.bf16.gmra.mrb[4].mxu0 %vm963_vm13, %v4252_v39  ;;  %v2599_v39 = vrot.slane %v2597_v54, 4  ;;  %v2544_v54 = vld [vmem:[#allocation2 + $0x3c] sm:$0xf] }
  0xd3   : > { %3930 = vmatmul.mubr.msk.bf16.gmra.mrb[12].mxu1 %vm963_vm13, %v3560_v28  ;;  %4015 = vmatprep.mubr.msk.bf16.mxu0 %vm963_vm13, %v4253_v3  ;;  %v5046_v28 = vrot.slane %v1854_v37, 5  ;;  %v4255_v3 = vld [vmem:[#allocation2 + $0x60] sm:$0xff]   ;;  %v1585_v37 = vsel %vm988_vm9, %v4898_v15, 0  ;;  %v2632_v53 = vshrl.u32 %v2544_v54, 16  ;;  %v2635_v40 = vshll.u32 %v2544_v54, 16 }
  0xd4   : > { %3935 = vmatprep.mubr.msk.bf16.mxu1 %vm963_vm13, %v3578_v34  ;;  %v5056_v34 = vrot.slane %v1858_v6, 4  ;;  %v2600_v62 = vor.u32 %v2599_v39, %v5044_v42  ;;  %v2614_v6 = vor.u32 %v2613_v58, %v2610_v21  ;;  %v2572_v15 = vsel %vm4613_vm12, %v2567_v59, %v5013_v41  ;;  %v2550_v41 = vld [vmem:[#allocation2 + $0x54] sm:$0xf] }
  0xd5   : > { %v2582_v39 = vsel %vm4613_vm12, %v2577_v25, %v2581_v55  ;;  %v2605_v21 = vrot.slane %v2603_v44, 5  ;;  %v2669_v58 = vshrl.u32 %v5067_v45, 16  ;;  %v2625_v54 = vrot.slane %v2624_v12, 4  ;;  %v4265_v44 = vld [vmem:[%s5340_s1 + $0x10] sm:$0xf] }
  0xd6   : > { %v2601_v59 = vrot.slane %v2600_v62, 4  ;;  %v2615_v38 = vrot.slane %v2614_v6, 4  ;;  %v2637_v25 = vrot.slane %v2635_v40, 5  ;;  %v5089_v55 = vrot.slane %v2641_v26, 5  ;;  %v5099_v12 = vld [vmem:[#allocation2 + $0x50] sm:$0x1] }
  0xd7   : > { %v2661_v62 = vrot.slane %v2659_v14, 5  ;;  %v2680_v6 = vshrl.u32 %v2550_v41, 16  ;;  %v2671_v26 = vrot.slane %v2669_v58, 4  ;;  %v5116_v58 = vld [vmem:[#allocation2 + $0x64] sm:$0xf] }
  0xda   : > { %4016 = vmatmul.mubr.msk.bf16.gmra.mrb[8].mxu0 %vm963_vm13, %v4254_v36  ;;  %v2665_v36 = vshll.u32 %v5067_v45, 16 }
  0xdb   : > { %3936 = vmatmul.mubr.msk.bf16.vlgmr.msra.gmra.mrb[0].mxu1 %vm963_vm13, %v5363_v11  ;;  %4019 = vmatprep.mubr.msk.bf16.mxu0 %vm963_vm13, %v4255_v3  ;;  %v2629_v3 = vrot.slane %v2627_v30, 5  ;;  %v2634_v11 = vrot.slane %v2632_v53, 4  ;;  %v3671_v30 = vcombine.low %v2572_v15, %v2582_v39  ;;  %v2683_v53 = vshll.u32 %v2550_v41, 16 }
  0xdc   : > { %3952 = vmatpush3.bf16.msra.mxu1 %v1585_v37  ;;  %3939 = vmatprep.mubr.msk.bf16.mxu1 %vm963_vm13, %v5364_v29  ;;  %v5095_v37 = vld [vmem:[#allocation2 + $0x58] sm:$0xf]  ;;  %v5101_v40 = vrot.slane %v2665_v36, 5  ;;  %v2596_v29 = vsel %vm4613_vm12, %v2591_v10, %v5044_v42  ;;  %v2620_v15 = vsel %vm4613_vm12, %v2615_v38, %v5050_v4  ;;  %v2651_v36 = vshll.u32 %v5097_v13, 16 }
  0xdd   : > { %4194 = vmatprep.subr.msk.bf16.mxu1 %vm988_vm9, %v4265_v44  ;;  %v2606_v44 = vsel %vm4613_vm12, %v2601_v59, %v2605_v21  ;;  %v2689_v47 = vshll.u32 %v5095_v37, 16  ;;  %v2693_v32 = vshrl.u32 %v5095_v37, 16  ;;  %v2630_v14 = vsel %vm4613_vm12, %v2625_v54, %v2629_v3 }
  0xde   : > { %v2638_v39 = vor.u32 %v2637_v25, %v2634_v11  ;;  %v2648_v42 = vor.u32 %v2647_v31, %v5089_v55  ;;  %v2662_v21 = vor.u32 %v2661_v62, %v2658_v16  ;;  %v2675_v41 = vshll.u32 %v5099_v12, 16  ;;  %v5131_v11 = vld [vmem:[#allocation2 + $0x5c] sm:$0x1] }
  0xdf   : > { %v2682_v10 = vrot.slane %v2680_v6, 4  ;;  %v5365_v59 = vcombine.low %v4931_v49, %v4946_v46  ;;  %v2672_v4 = vor.u32 %v2671_v26, %v5101_v40  ;;  %v2685_v38 = vrot.slane %v2683_v53, 5 }
  0xe0   : > { %v2704_v3 = vshrl.u32 %v2553_v33, 16  ;;  %v2707_v54 = vshll.u32 %v2553_v33, 16  ;;  %v5133_v25 = vrot.slane %v2689_v47, 5  ;;  %v2695_v31 = vrot.slane %v2693_v32, 4  ;;  %v2556_v33 = vld [vmem:[#allocation2 + $0x6c] sm:$0xf] }
  0xe1   : > { %v2713_v49 = vshll.u32 %v5116_v58, 16  ;;  %v2717_v46 = vshrl.u32 %v5116_v58, 16  ;;  %v3672_v16 = vcombine.low %v2596_v29, %v2606_v44  ;;  %v3056_v62 = vsel %vm988_vm9, %v4995_v20, 0 }
  0xe2   : > { %4020 = vmatmul.mubr.msk.bf16.gmra.mrb[12].mxu0 %vm963_vm13, %v4256_v1  ;;  %v5366_v1 = vcombine.low %v4950_v23, %v4959_v63  ;;  %v3673_v6 = vcombine.low %v2620_v15, %v2630_v14  ;;  %v2639_v26 = vrot.slane %v2638_v39, 4  ;;  %v2649_v53 = vrot.slane %v2648_v42, 4  ;;  %v5148_v39 = vld [vmem:[#allocation2 + $0x68] sm:$0x1] }
  0xe3   : > { %3940 = vmatmul.mubr.msk.bf16.gmra.mrb[4].mxu1 %vm963_vm13, %v5365_v59  ;;  %4025 = vmatprep.mubr.msk.bf16.mxu0 %vm963_vm13, %v3671_v30  ;;  %v2653_v30 = vrot.slane %v2651_v36, 5  ;;  %v2663_v23 = vrot.slane %v2662_v21, 4  ;;  %v2677_v63 = vrot.slane %v2675_v41, 5  ;;  %v2673_v59 = vrot.slane %v2672_v4, 4 }
  0xe4   : > { %3943 = vmatprep.mubr.msk.bf16.mxu1 %vm963_vm13, %v5366_v1  ;;  %v2699_v47 = vshll.u32 %v5131_v11, 16  ;;  %v2706_v1 = vrot.slane %v2704_v3, 4  ;;  %v2709_v32 = vrot.slane %v2707_v54, 5  ;;  %v2686_v24 = vor.u32 %v2685_v38, %v2682_v10 }
  0xe5   : > { %v2696_v29 = vor.u32 %v2695_v31, %v5133_v25  ;;  %v5143_v44 = vrot.slane %v2713_v49, 5  ;;  %v2719_v20 = vrot.slane %v2717_v46, 4  ;;  %v1861_v15 = vor.u32 %v5056_v34, %v5046_v28 }
  0xe6   : > { %v1864_v14 = vshll.u32 %v4852_v43, 16  ;;  %v2728_v36 = vshrl.u32 %v2556_v33, 16  ;;  %v2731_v42 = vshll.u32 %v2556_v33, 16  ;;  %v2644_v21 = vsel %vm4613_vm12, %v2639_v26, %v5089_v55 }
  0xe7   : > { %v2654_v41 = vsel %vm4613_vm12, %v2649_v53, %v2653_v30  ;;  %v2737_v10 = vshll.u32 %v5140_v61, 16  ;;  %v2741_v4 = vshrl.u32 %v5140_v61, 16  ;;  %v5367_v43 = vcombine.low %v4969_v27, %v4983_v19 }
  0xe8   : > { %v2668_v34 = vsel %vm4613_vm12, %v2663_v23, %v5101_v40  ;;  %v2678_v55 = vsel %vm4613_vm12, %v2673_v59, %v2677_v63  ;;  %v2701_v38 = vrot.slane %v2699_v47, 5  ;;  %v2710_v3 = vor.u32 %v2709_v32, %v2706_v1  ;;  %v4257_v63 = vld [vmem:[#allocation2 + $0xc] sm:$0xff]   ;;  %v1715_v32 = vld [vmem:[#allocation2 + $0x48] sm:$0xf] }
  0xe9   : > { %v5368_v54 = vcombine.low %v5006_v56, %v5017_v60  ;;  %v2687_v27 = vrot.slane %v2686_v24, 4  ;;  %v2697_v19 = vrot.slane %v2696_v29, 4  ;;  %v2720_v31 = vor.u32 %v2719_v20, %v5143_v44  ;;  %v2917_v20 = vld [vmem:[#allocation2 + $0x18] sm:$0xe] }
  0xea   : > { %4026 = vmatmul.mubr.msk.bf16.vlgmr.msra.gmra.mrb[0].mxu0 %vm963_vm13, %v3672_v16  ;;  %v2723_v49 = vshll.u32 %v5148_v39, 16  ;;  %v2730_v46 = vrot.slane %v2728_v36, 4  ;;  %v2733_v40 = vrot.slane %v2731_v42, 5  ;;  %v3674_v16 = vcombine.low %v2644_v21, %v2654_v41 }
  0xeb   : > { %3944 = vmatmul.mubr.msk.bf16.gmra.mrb[8].mxu1 %vm963_vm13, %v5367_v43  ;;  %4042 = vmatpush3.bf16.msra.mxu0 %v3056_v62  ;;  %v5174_v62 = vld [vmem:[#allocation2 + $0x74] sm:$0x1]  ;;  %v5176_v30 = vrot.slane %v2737_v10, 5  ;;  %v2743_v26 = vrot.slane %v2741_v4, 4  ;;  %v1862_v53 = vrot.slane %v1861_v15, 4  ;;  %v1866_v56 = vrot.slane %v1864_v14, 5 }
  0xec   : > { %3947 = vmatprep.mubr.msk.bf16.mxu1 %vm963_vm13, %v5368_v54  ;;  %4029 = vmatprep.mubr.msk.bf16.mxu0 %vm963_vm13, %v3673_v6  ;;  %v3675_v60 = vcombine.low %v2668_v34, %v2678_v55  ;;  %v2711_v23 = vrot.slane %v2710_v3, 4  ;;  %v2692_v24 = vsel %vm4613_vm12, %v2687_v27, %v5133_v25  ;;  %v2702_v6 = vsel %vm4613_vm12, %v2697_v19, %v2701_v38  ;;  %v4259_v54 = vld [vmem:[#allocation2 + $0x24] sm:$0xff]   ;;  %v1712_v27 = vld [vmem:[#allocation2 + $0x3c] sm:$0xf] }
  0xed   : > { %v2721_v33 = vrot.slane %v2720_v31, 4  ;;  %v2725_v59 = vrot.slane %v2723_v49, 5  ;;  %v2734_v47 = vor.u32 %v2733_v40, %v2730_v46  ;;  %v2747_v1 = vshll.u32 %v5174_v62, 16  ;;  %v2918_v46 = vld [vmem:[#allocation2 + $0x24] sm:$0xe] }
  0xee   : > { %v2744_v29 = vor.u32 %v2743_v26, %v5176_v30  ;;  %v2951_v15 = vrot.slane %v4973_v52, 5  ;;  %v5369_v14 = vcombine.low %v5039_v9, %v5054_v22  ;;  %v3676_v25 = vcombine.low %v2692_v24, %v2702_v6  ;;  %v2919_v26 = vld [vmem:[#allocation2 + $0x30] sm:$0xe] }
  0xef   : > { %v2716_v36 = vsel %vm4613_vm12, %v2711_v23, %v5143_v44  ;;  %v2726_v42 = vsel %vm4613_vm12, %v2721_v33, %v2725_v59  ;;  %v1845_v21 = vshrl.u32 %v1715_v32, 16  ;;  %v1848_v41 = vshll.u32 %v1715_v32, 16  ;;  %v4258_v44 = vld [vmem:[#allocation2 + $0x18] sm:$0xff]  }
  0xf0   : > { %v1867_v52 = vsel %vm4613_vm12, %v1862_v53, %v1866_v56  ;;  %v2735_v9 = vrot.slane %v2734_v47, 4  ;;  %v2749_v22 = vrot.slane %v2747_v1, 5  ;;  %v3687_v10 = vrot.slane %v2917_v20, 9 }
  0xf1   : > { %v2954_v4 = vrot.slane %v5021_v8, 5  ;;  %v2745_v43 = vrot.slane %v2744_v29, 4  ;;  %v2953_v34 = vrot.slane %v2951_v15, 4  ;;  %v1847_v55 = vrot.slane %v1845_v21, 4  ;;  %v4260_v29 = vld [vmem:[#allocation2 + $0x30] sm:$0xff]  }
  0xf2   : > { %4030 = vmatmul.mubr.msk.bf16.gmra.mrb[4].mxu0 %vm963_vm13, %v3674_v16  ;;  %v1850_v38 = vrot.slane %v1848_v41, 5  ;;  %v3677_v3 = vcombine.low %v2716_v36, %v2726_v42  ;;  %v2740_v31 = vsel %vm4613_vm12, %v2735_v9, %v5176_v30  ;;  %v2952_v49 = vsel %vm4750_vm0, %v3687_v10, %v2951_v15  ;;  %v2920_v36 = vld [vmem:[#allocation2 + $0x3c] sm:$0xe]  ;;  %v1718_v41 = vld [vmem:[#allocation2 + $0x54] sm:$0xf] }
  0xf3   : > { %3948 = vmatmul.mubr.msk.bf16.gmra.mrb[12].mxu1 %vm963_vm13, %v5369_v14  ;;  %4033 = vmatprep.mubr.msk.bf16.mxu0 %vm963_vm13, %v3675_v60  ;;  %v2958_v40 = vrot.slane %v5002_v35, 5  ;;  %v2750_v8 = vsel %vm4613_vm12, %v2745_v43, %v2749_v22  ;;  %v2955_v16 = vsel %vm4750_vm0, %v2953_v34, %v2954_v4  ;;  %v2965_v53 = vrot.slane %v5019_v18, 5  ;;  %v2921_v10 = vld [vmem:[#allocation2 + $0x48] sm:$0xe] }
  0xf4   : > { %3953 = vmatprep.mubr.msk.bf16.mxu1 %vm963_vm13, %v4257_v63  ;;  %v1851_v19 = vor.u32 %v1850_v38, %v1847_v55  ;;  %v1821_v30 = vshrl.u32 %v1712_v27, 16  ;;  %v1824_v60 = vshll.u32 %v1712_v27, 16  ;;  %v1830_v35 = vshll.u32 %v4821_v51, 16 }
  0xf5   : > { %v1834_v23 = vshrl.u32 %v4821_v51, 16  ;;  %v3688_v63 = vrot.slane %v2918_v46, 9  ;;  %v2960_v24 = vrot.slane %v2958_v40, 4  ;;  %v2961_v6 = vrot.slane %v5042_v50, 5 }
  0xf6   : > { %v1852_v56 = vrot.slane %v1851_v19, 4  ;;  %v3689_v33 = vrot.slane %v2919_v26, 9  ;;  %v3678_v47 = vcombine.low %v2740_v31, %v2750_v8  ;;  %v3696_v1 = vcombine.low %v2952_v49, %v2955_v16  ;;  %v4262_v31 = vld [vmem:[#allocation2 + $0x48] sm:$0xff]   ;;  %v4263_v8 = vld [vmem:[#allocation2 + $0x54] sm:$0xff]  }
  0xf7   : > { %v2967_v32 = vrot.slane %v2965_v53, 4  ;;  %v2968_v51 = vrot.slane %v5048_v7, 5  ;;  %v1826_v20 = vrot.slane %v1824_v60, 5  ;;  %v5226_v15 = vrot.slane %v1830_v35, 5 }
  0xf8   : > { %v1857_v18 = vsel %vm4613_vm12, %v1852_v56, %v5046_v28  ;;  %v1836_v14 = vrot.slane %v1834_v23, 4  ;;  %v2959_v28 = vsel %vm4750_vm0, %v3688_v63, %v2958_v40  ;;  %v2962_v50 = vsel %vm4750_vm0, %v2960_v24, %v2961_v6  ;;  %v1721_v56 = vld [vmem:[#allocation2 + $0x60] sm:$0xf] }
  0xf9   : > { %v5223_v59 = vcombine.low %v1857_v18, %v1867_v52  ;;  %v2966_v42 = vsel %vm4750_vm0, %v3689_v33, %v2965_v53  ;;  %v2972_v7 = vrot.slane %v5060_v57, 5  ;;  %v1840_v21 = vshll.u32 %v4834_v2, 16  ;;  %v2922_v18 = vld [vmem:[#allocation2 + $0x54] sm:$0xe] }
  0xfa   : > { %4034 = vmatmul.mubr.msk.bf16.gmra.mrb[8].mxu0 %vm963_vm13, %v3676_v25  ;;  %v4261_v25 = vld [vmem:[#allocation2 + $0x3c] sm:$0xff]   ;;  %v2969_v52 = vsel %vm4750_vm0, %v2967_v32, %v2968_v51  ;;  %v1837_v22 = vor.u32 %v1836_v14, %v5226_v15  ;;  %v2979_v4 = vrot.slane %v5067_v45, 5  ;;  %v3697_v43 = vcombine.low %v2959_v28, %v2962_v50 }
  0xfb   : > { %3954 = vmatmul.mubr.msk.bf16.vlgmr.msra.gmra.mrb[0].mxu1 %vm963_vm13, %v4258_v44  ;;  %4037 = vmatprep.mubr.msk.bf16.mxu0 %vm963_vm13, %v3677_v3  ;;  %v3690_v57 = vrot.slane %v2920_v36, 9  ;;  %v2975_v2 = vrot.slane %v5097_v13, 5  ;;  %v1869_v34 = vshrl.u32 %v1718_v41, 16  ;;  %v1872_v55 = vshll.u32 %v1718_v41, 16 }
  0xfc   : > { %4060 = vmatpush3.bf16.msra.mxu1 %v4577_v5  ;;  %3957 = vmatprep.mubr.msk.bf16.mxu1 %vm963_vm13, %v4259_v54  ;;  %v1823_v5 = vrot.slane %v1821_v30, 4  ;;  %v1878_v38 = vshll.u32 %v4860_v48, 16  ;;  %v1882_v44 = vshrl.u32 %v4860_v48, 16  ;;  %v3698_v3 = vcombine.low %v2966_v42, %v2969_v52 }
  0xfd   : > { %v2974_v54 = vrot.slane %v2972_v7, 4  ;;  %v1842_v27 = vrot.slane %v1840_v21, 5  ;;  %v3691_v19 = vrot.slane %v2921_v10, 9  ;;  %v1838_v46 = vrot.slane %v1837_v22, 4 }
  0xfe   : > { %v1827_v9 = vor.u32 %v1826_v20, %v1823_v5  ;;  %v2981_v45 = vrot.slane %v2979_v4, 4  ;;  %v2982_v40 = vrot.slane %v5099_v12, 5  ;;  %v1871_v16 = vrot.slane %v1869_v34, 4  ;;  %v5371_v20 = vld [vmem:[#allocation3_spill] sm:$0xff] }
  0xff   : > { %v1874_v26 = vrot.slane %v1872_v55, 5  ;;  %v1880_v13 = vrot.slane %v1878_v38, 5  ;;  %v1884_v53 = vrot.slane %v1882_v44, 4  ;;  %v2973_v48 = vsel %vm4750_vm0, %v3690_v57, %v2972_v7  ;;  %v5372_v44 = vld [vmem:[#allocation5_spill] sm:$0xff] }
 0x100   : > { %v1828_v49 = vrot.slane %v1827_v9, 4  ;;  %v2976_v30 = vsel %vm4750_vm0, %v2974_v54, %v2975_v2  ;;  %v2980_v60 = vsel %vm4750_vm0, %v3691_v19, %v2979_v4  ;;  %v2986_v35 = vrot.slane %v5095_v37, 5  ;;  %v2923_v37 = vld [vmem:[#allocation2 + $0x60] sm:$0xe]  ;;  %v2924_v54 = vld [vmem:[#allocation2 + $0x6c] sm:$0xe] }
 0x101   : > { %v1843_v23 = vsel %vm4613_vm12, %v1838_v46, %v1842_v27  ;;  %v2983_v63 = vsel %vm4750_vm0, %v2981_v45, %v2982_v40  ;;  %v2993_v24 = vrot.slane %v5116_v58, 5  ;;  %v1893_v6 = vshrl.u32 %v1721_v56, 16  ;;  %v4264_v58 = vld [vmem:[#allocation2 + $0x60] sm:$0xff]  }
 0x102   : > { %4038 = vmatmul.mubr.msk.bf16.gmra.mrb[12].mxu0 %vm963_vm13, %v3678_v47  ;;  %v1833_v12 = vsel %vm4613_vm12, %v1828_v49, %v5226_v15  ;;  %v1896_v33 = vshll.u32 %v1721_v56, 16  ;;  %v5370_v47 = vld [vmem:[#allocation4_spill] sm:$0xff]  ;;  %v3699_v51 = vcombine.low %v2973_v48, %v2976_v30  ;;  %v1885_v5 = vor.u32 %v1884_v53, %v1880_v13 }
 0x103   : > { %3958 = vmatmul.mubr.msk.bf16.gmra.mrb[4].mxu1 %vm963_vm13, %v4260_v29  ;;  %4043 = vmatprep.mubr.msk.bf16.mxu0 %vm963_vm13, %v3696_v1  ;;  %v1902_v1 = vshll.u32 %v5370_v47, 16  ;;  %v1906_v32 = vshrl.u32 %v5370_v47, 16  ;;  %v1875_v29 = vor.u32 %v1874_v26, %v1871_v16  ;;  %v1888_v15 = vshll.u32 %v5371_v20, 16 }
 0x104   : > { %3961 = vmatprep.mubr.msk.bf16.mxu1 %vm963_vm13, %v4261_v25  ;;  %v3616_v14 = vcombine.low %v1833_v12, %v1843_v23  ;;  %v3700_v25 = vcombine.low %v2980_v60, %v2983_v63  ;;  %v3692_v28 = vrot.slane %v2922_v18, 9  ;;  %v2989_v50 = vrot.slane %v5131_v11, 5 }
 0x105   : > { %v2988_v36 = vrot.slane %v2986_v35, 4  ;;  %v3693_v42 = vrot.slane %v2923_v37, 9  ;;  %v2995_v7 = vrot.slane %v2993_v24, 4  ;;  %v2996_v21 = vrot.slane %v5148_v39, 5 }
 0x106   : > { %v1895_v41 = vrot.slane %v1893_v6, 4  ;;  %v1898_v52 = vrot.slane %v1896_v33, 5  ;;  %v1904_v9 = vrot.slane %v1902_v1, 5  ;;  %v1908_v22 = vrot.slane %v1906_v32, 4 }
 0x107   : > { %v1876_v10 = vrot.slane %v1875_v29, 4  ;;  %v1886_v4 = vrot.slane %v1885_v5, 4  ;;  %v2987_v11 = vsel %vm4750_vm0, %v3692_v28, %v2986_v35  ;;  %v2990_v57 = vsel %vm4750_vm0, %v2988_v36, %v2989_v50 }
 0x108   : > { %v2994_v39 = vsel %vm4750_vm0, %v3693_v42, %v2993_v24  ;;  %v3000_v2 = vrot.slane %v5140_v61, 5  ;;  %v2997_v34 = vsel %vm4750_vm0, %v2995_v7, %v2996_v21  ;;  %v1899_v55 = vor.u32 %v1898_v52, %v1895_v41 }
 0x109   : > { %v1909_v38 = vor.u32 %v1908_v22, %v1904_v9  ;;  %v1881_v27 = vsel %vm4613_vm12, %v1876_v10, %v1880_v13  ;;  %v3702_v49 = vcombine.low %v2994_v39, %v2997_v34  ;;  %v3694_v46 = vrot.slane %v2924_v54, 9 }
 0x10a   : > { %4044 = vmatmul.mubr.msk.bf16.vlgmr.msra.gmra.mrb[0].mxu0 %vm963_vm13, %v3697_v43  ;;  %v1890_v43 = vrot.slane %v1888_v15, 5  ;;  %v3002_v61 = vrot.slane %v3000_v2, 4  ;;  %v3003_v45 = vrot.slane %v5174_v62, 5 }
 0x10b   : > { %3962 = vmatmul.mubr.msk.bf16.gmra.mrb[8].mxu1 %vm963_vm13, %v4262_v31  ;;  %4047 = vmatprep.mubr.msk.bf16.mxu0 %vm963_vm13, %v3698_v3  ;;  %v1912_v3 = vshll.u32 %v5372_v44, 16  ;;  %v3701_v31 = vcombine.low %v2987_v11, %v2990_v57  ;;  %v1910_v16 = vrot.slane %v1909_v38, 4  ;;  %v3001_v13 = vsel %vm4750_vm0, %v3694_v46, %v3000_v2 }
 0x10c   : > { %3965 = vmatprep.mubr.msk.bf16.mxu1 %vm963_vm13, %v4263_v8  ;;  %v1891_v19 = vsel %vm4613_vm12, %v1886_v4, %v1890_v43  ;;  %v1900_v8 = vrot.slane %v1899_v55, 4  ;;  %v3004_v53 = vsel %vm4750_vm0, %v3002_v61, %v3003_v45 }
 0x10d   : > { %v3618_v40 = vcombine.low %v1881_v27, %v1891_v19  ;;  %v1914_v26 = vrot.slane %v1912_v3, 5  ;;  %v3703_v48 = vcombine.low %v3001_v13, %v3004_v53 }
 0x10e   : > { %v1905_v62 = vsel %vm4613_vm12, %v1900_v8, %v1904_v9 }
 0x10f   : > { %v1915_v56 = vsel %vm4613_vm12, %v1910_v16, %v1914_v26 }
 0x110   : > { %v3619_v30 = vcombine.low %v1905_v62, %v1915_v56 }
 0x112   : > { %4048 = vmatmul.mubr.msk.bf16.gmra.mrb[4].mxu0 %vm963_vm13, %v3699_v51 }
 0x113   : > { %3966 = vmatmul.mubr.msk.bf16.gmra.mrb[12].mxu1 %vm963_vm13, %v4264_v58  ;;  %4051 = vmatprep.mubr.msk.bf16.mxu0 %vm963_vm13, %v3700_v25 }
 0x114   : > { %3979 = vmatprep.mubr.msk.bf16.mxu1 %vm963_vm13, %v3616_v14 }
 0x11a   : > { %4052 = vmatmul.mubr.msk.bf16.gmra.mrb[8].mxu0 %vm963_vm13, %v3701_v31 }
 0x11b   : > { %3980 = vmatmul.mubr.msk.bf16.vlgmr.msra.gmra.mrb[8].mxu1 %vm963_vm13, %v5223_v59  ;;  %4055 = vmatprep.mubr.msk.bf16.mxu0 %vm963_vm13, %v3702_v49 }
 0x11c   : > { %3983 = vmatprep.mubr.msk.bf16.mxu1 %vm963_vm13, %v3618_v40 }
 0x122   : > { %4056 = vmatmul.mubr.msk.bf16.gmra.mrb[12].mxu0 %vm963_vm13, %v3703_v48 }
 0x123   : > { %3984 = vmatmul.mubr.msk.bf16.gmra.mrb[12].mxu1 %vm963_vm13, %v3619_v30 }
 0x1ce   : > { %v3955_v59 = vpop.f32.mrb[0].mxu1 }
 0x1cf   : > { %v1621_v60 = vpop.f32.mrb[1].mxu1 }
 0x1d0   : > { %v3956_v35 = vpop.f32.mrb[2].mxu1 }
 0x1d1   : > { %v1624_v12 = vpop.f32.mrb[3].mxu1 }
 0x1d6   : > { %v3959_v0 = vpop.f32.mrb[4].mxu1 }
 0x1d7   : > { %v1637_v23 = vpop.f32.mrb[5].mxu1 }
 0x1d8   : > { %v3960_v63 = vpop.f32.mrb[6].mxu1 }
 0x1d9   : > { %v1640_v18 = vpop.f32.mrb[7].mxu1 }
 0x1dd   : > { %v4045_v24 = vpop.f32.mrb[0].mxu0 }
 0x1de   : > { %v4061_v37 = vadd.f32 %v4045_v24, %v3955_v59  ;;  %v3092_v17 = vpop.f32.mrb[1].mxu0 }
 0x1df   : > { %v4062_v6 = vadd.f32 %v3092_v17, %v1621_v60  ;;  %v4046_v33 = vpop.f32.mrb[2].mxu0 }
 0x1e0   : > { %v4063_v47 = vadd.f32 %v4046_v33, %v3956_v35  ;;  %v3095_v1 = vpop.f32.mrb[3].mxu0  ;;  %v3275_v14 = vmul.f32 %v4061_v37, %v4061_v37 }
 0x1e1   : > { %v4064_v32 = vadd.f32 %v3095_v1, %v1624_v12  ;;  %v3273_v29 = vmul.f32 %v4062_v6, %v4062_v6 }
 0x1e2   : > { %v3777_v51 = vpack.c.bf16 %v4063_v47, %v4061_v37  ;;  %v3276_v42 = vmul.f32 %v4063_v47, %v4063_v47 }
 0x1e3   : > { %v3772_v5 = vpack.c.bf16 %v4064_v32, %v4062_v6  ;;  %v3251_v20 = vadd.f32 %v4064_v32, %v4062_v6  ;;  %v3274_v15 = vmul.f32 %v4064_v32, %v4064_v32 }
 0x1e4   : > { %3809 = vst [vmem:[%s4442_s10 + $0x8] sm:$0xff] %v3777_v51  }
 0x1e5   : > { %3773 = vst [vmem:[%s4442_s10] sm:$0xff] %v3772_v5   ;;  %v3252_v25 = vadd.f32 %v4061_v37, %v3251_v20  ;;  %v3289_v28 = vadd.f32 %v3274_v15, %v3273_v29  ;;  %v4049_v50 = vpop.f32.mrb[4].mxu0 }
 0x1e6   : > { %v4065_v58 = vadd.f32 %v4049_v50, %v3959_v0  ;;  %v3108_v36 = vpop.f32.mrb[5].mxu0 }
 0x1e7   : > { %v3290_v7 = vadd.f32 %v3289_v28, %v3275_v14  ;;  %v4066_v21 = vadd.f32 %v3108_v36, %v1637_v23  ;;  %v3253_v41 = vadd.f32 %v4063_v47, %v3252_v25  ;;  %v4050_v52 = vpop.f32.mrb[6].mxu0 }
 0x1e8   : > { %v4067_v9 = vadd.f32 %v4050_v52, %v3960_v63  ;;  %v3111_v22 = vpop.f32.mrb[7].mxu0  ;;  %v3279_v38 = vmul.f32 %v4065_v58, %v4065_v58 }
 0x1e9   : > { %v3254_v10 = vadd.f32 %v4066_v21, %v3253_v41  ;;  %v3277_v4 = vmul.f32 %v4066_v21, %v4066_v21  ;;  %v3291_v43 = vadd.f32 %v3290_v7, %v3276_v42  ;;  %v4068_v11 = vadd.f32 %v3111_v22, %v1640_v18 }
 0x1ea   : > { %v3787_v57 = vpack.c.bf16 %v4067_v9, %v4065_v58  ;;  %v3280_v31 = vmul.f32 %v4067_v9, %v4067_v9 }
 0x1eb   : > { %v3292_v39 = vadd.f32 %v3291_v43, %v3277_v4  ;;  %v3782_v2 = vpack.c.bf16 %v4068_v11, %v4066_v21  ;;  %v3255_v34 = vadd.f32 %v4068_v11, %v3254_v10  ;;  %v3278_v55 = vmul.f32 %v4068_v11, %v4068_v11 }
 0x1ec   : > { %3811 = vst [vmem:[%s4442_s10 + $0x18] sm:$0xff] %v3787_v57  }
 0x1ed   : > { %3810 = vst [vmem:[%s4442_s10 + $0x10] sm:$0xff] %v3782_v2   ;;  %v3256_v44 = vadd.f32 %v4065_v58, %v3255_v34  ;;  %v3293_v3 = vadd.f32 %v3292_v39, %v3278_v55  ;;  %v4053_v54 = vpop.f32.mrb[8].mxu0 }
 0x1ee   : > { %v3981_v27 = vpop.f32.mrb[8].mxu1  ;;  %v3124_v19 = vpop.f32.mrb[9].mxu0 }
 0x1ef   : > { %v3294_v49 = vadd.f32 %v3293_v3, %v3279_v38  ;;  %v4069_v46 = vadd.f32 %v4053_v54, %v3981_v27  ;;  %v2035_v61 = vpop.f32.mrb[9].mxu1  ;;  %v3257_v45 = vadd.f32 %v4067_v9, %v3256_v44  ;;  %v4054_v40 = vpop.f32.mrb[10].mxu0 }
 0x1f0   : > { %v4070_v8 = vadd.f32 %v3124_v19, %v2035_v61  ;;  %v3982_v16 = vpop.f32.mrb[10].mxu1  ;;  %v3127_v26 = vpop.f32.mrb[11].mxu0 }
 0x1f1   : > { %v3295_v13 = vadd.f32 %v3294_v49, %v3280_v31  ;;  %v4071_v53 = vadd.f32 %v4054_v40, %v3982_v16  ;;  %v2038_v62 = vpop.f32.mrb[11].mxu1  ;;  %v3283_v63 = vmul.f32 %v4069_v46, %v4069_v46 }
 0x1f2   : > { %v3258_v56 = vadd.f32 %v4070_v8, %v3257_v45  ;;  %v3281_v48 = vmul.f32 %v4070_v8, %v4070_v8  ;;  %v4072_v30 = vadd.f32 %v3127_v26, %v2038_v62 }
 0x1f3   : > { %v3797_v59 = vpack.c.bf16 %v4071_v53, %v4069_v46  ;;  %v3284_v1 = vmul.f32 %v4071_v53, %v4071_v53 }
 0x1f4   : > { %v3296_v60 = vadd.f32 %v3295_v13, %v3281_v48  ;;  %v3792_v35 = vpack.c.bf16 %v4072_v30, %v4070_v8  ;;  %v3259_v12 = vadd.f32 %v4072_v30, %v3258_v56  ;;  %v3282_v0 = vmul.f32 %v4072_v30, %v4072_v30 }
 0x1f5   : > { %3813 = vst [vmem:[%s4442_s10 + $0x28] sm:$0xff] %v3797_v59   ;;  %v4057_v23 = vpop.f32.mrb[12].mxu0 }
 0x1f6   : > { %3812 = vst [vmem:[%s4442_s10 + $0x20] sm:$0xff] %v3792_v35   ;;  %v3260_v18 = vadd.f32 %v4069_v46, %v3259_v12  ;;  %v3297_v24 = vadd.f32 %v3296_v60, %v3282_v0  ;;  %v3985_v37 = vpop.f32.mrb[12].mxu1  ;;  %v3140_v17 = vpop.f32.mrb[13].mxu0 }
 0x1f7   : > { %v4073_v6 = vadd.f32 %v4057_v23, %v3985_v37  ;;  %v2051_v33 = vpop.f32.mrb[13].mxu1  ;;  %v4058_v47 = vpop.f32.mrb[14].mxu0 }
 0x1f8   : > { %v3298_v32 = vadd.f32 %v3297_v24, %v3283_v63  ;;  %v4074_v51 = vadd.f32 %v3140_v17, %v2051_v33  ;;  %v3261_v29 = vadd.f32 %v4071_v53, %v3260_v18  ;;  %v3986_v5 = vpop.f32.mrb[14].mxu1  ;;  %v3143_v20 = vpop.f32.mrb[15].mxu0 }
 0x1f9   : > { %v4075_v15 = vadd.f32 %v4058_v47, %v3986_v5  ;;  %v2054_v14 = vpop.f32.mrb[15].mxu1  ;;  %v3287_v52 = vmul.f32 %v4073_v6, %v4073_v6 }
 0x1fa   : > { %v3262_v25 = vadd.f32 %v4074_v51, %v3261_v29  ;;  %v3285_v28 = vmul.f32 %v4074_v51, %v4074_v51  ;;  %v3299_v50 = vadd.f32 %v3298_v32, %v3284_v1  ;;  %v4076_v58 = vadd.f32 %v3143_v20, %v2054_v14 }
 0x1fb   : > { %v3807_v36 = vpack.c.bf16 %v4075_v15, %v4073_v6  ;;  %v3288_v10 = vmul.f32 %v4075_v15, %v4075_v15 }
 0x1fc   : > { %v3300_v42 = vadd.f32 %v3299_v50, %v3285_v28  ;;  %v3802_v7 = vpack.c.bf16 %v4076_v58, %v4074_v51  ;;  %v3263_v21 = vadd.f32 %v4076_v58, %v3262_v25  ;;  %v3286_v41 = vmul.f32 %v4076_v58, %v4076_v58 }
 0x1fd   : > { %3815 = vst [vmem:[%s4442_s10 + $0x38] sm:$0xff] %v3807_v36  }
 0x1fe   : > { %3814 = vst [vmem:[%s4442_s10 + $0x30] sm:$0xff] %v3802_v7   ;;  %v3264_v9 = vadd.f32 %v4073_v6, %v3263_v21  ;;  %v3301_v22 = vadd.f32 %v3300_v42, %v3286_v41 }
 0x200   : > { %v3265_v4 = vadd.f32 %v4075_v15, %v3264_v9  ;;  %v3302_v43 = vadd.f32 %v3301_v22, %v3287_v52 }
 0x202   : > { %v3266_v11 = vrot.slane %v3265_v4, 4  ;;  %v3303_v57 = vadd.f32 %v3302_v43, %v3288_v10 }
 0x204   : > { %v3267_v39 = vadd.f32 %v3266_v11, %v3265_v4  ;;  %v3304_v2 = vrot.slane %v3303_v57, 4 }
 0x206   : > { %v3268_v34 = vrot.slane %v3267_v39, 2  ;;  %v3305_v55 = vadd.f32 %v3304_v2, %v3303_v57 }
 0x208   : > { %v3269_v38 = vadd.f32 %v3268_v34, %v3267_v39  ;;  %v3306_v44 = vrot.slane %v3305_v55, 2 }
 0x20a   : > { %v3270_v3 = vrot.slane %v3269_v38, 1  ;;  %v3307_v54 = vadd.f32 %v3306_v44, %v3305_v55 }
 0x20c   : > { %v3271_v27 = vadd.f32 %v3270_v3, %v3269_v38  ;;  %v3308_v19 = vrot.slane %v3307_v54, 1 }
 0x20e   : > { %3272 = vst [vmem:[%s252_s23] sm:$0x1] %v3271_v27  ;;  %v3309_v31 = vadd.f32 %v3308_v19, %v3307_v54 }
 0x210   : > { %3310 = vst [vmem:[%s259_s27] sm:$0x1] %v3309_v31 }
 0x211 PF: > { %s15_s19 = sadd.s32 1, %s4304_s19   ;;  %s5373_s15 = smov %s4296_s17 }
 0x212   : > { %p12_p12 = scmp.ge.s32.totalorder %s15_s19, 6   ;;  %s5374_s16 = smov %s4300_s18 }
 0x213   : > { %s5375_s17 = smov %s5378_s20  ;;  %s5376_s18 = smov %s5382_s21 }
 0x214   :  { %14 = sbr.rel (!%p12_p12) target bundleno = 3 (0x3), region = 113 }

</bundles_post_ra>
